<compile_context>
chip_gen: v5e
topology: v5e:2x2
jax: 0.10.0
libtpu: 0.0.40
codegen_flags: <defaults>
</compile_context>

<pallas_src>
import functools

import numpy as np
import jax
import jax.numpy as jnp
from jax import lax
from jax.experimental import pallas as pl
from jax.experimental.pallas import tpu as pltpu


TILE_N_MAX = 256  # cap per grid step (multiple of 8; fits v7x 64 MiB VMEM)


# ------------------------------ fused kernel -------------------------------

def _lenet_kernel(x_ref, cb1w_ref, cb1b_ref, cb2w_ref, cb2b_ref,
                  f1w_ref, f1b_ref, f2w_ref, f2b_ref, f3w_ref, f3b_ref,
                  out_ref):
    """Whole LeNet forward for one batch tile of T images.

    x_ref    : (28, T, 84)   input packed as [h, n, w*3 + c]        (bf16/f32)
    cb1w_ref : (5, 84, 144)  conv1 banded weights (per dy); output columns in
                             pool-parity order (w%2)*72 + (w//2)*6 + o
    cb1b_ref : (1, 144)      conv1 bias per packed column            (f32)
    cb2w_ref : (5, 72, 128)  conv2 banded weights; cols (w%2)*64+(w//2)*16+o
    cb2b_ref : (1, 128)                                              (f32)
    f1w_ref  : (256, 128)    fc1 weights, rows = ph*64 + w2*16 + c, out padded
    f2w_ref  : (128, 128)    fc2 (zero-padded); f3w_ref : (128, 128) fc3
    out_ref  : (T, 128)      logits, zero-padded to 128 lanes        (f32)
    """
    T = x_ref.shape[1]
    f32 = jnp.float32
    cdt = cb1w_ref.dtype  # MXU operand dtype (bf16 fast path / f32 check path)

    # ---- conv1 (5x5, 3->6) + ReLU: 5 banded matmuls over the row offset dy.
    acc1 = jnp.dot(x_ref[0:24, :, :].reshape(24 * T, 84), cb1w_ref[0],
                   preferred_element_type=f32)
    for dy in range(1, 5):
        acc1 = acc1 + jnp.dot(x_ref[dy:dy + 24, :, :].reshape(24 * T, 84),
                              cb1w_ref[dy], preferred_element_type=f32)
    acc1 = jnp.maximum(acc1 + cb1b_ref[...], 0.0)              # (24T, 144)

    # ---- maxpool1 2x2: horizontal = parity-half max, vertical = pair max.
    #      Pure value-level reduction (no scratch, no per-row stores).
    hp1 = jnp.maximum(acc1[:, 0:72], acc1[:, 72:144])          # (24T, 72)
    hp1 = hp1.reshape(12, 2, T, 72)                            # leading split
    p1 = jnp.maximum(hp1[:, 0], hp1[:, 1]).astype(cdt)         # (12, T, 72)

    # ---- conv2 (5x5, 6->16) + ReLU.
    acc2 = jnp.dot(p1[0:8].reshape(8 * T, 72), cb2w_ref[0],
                   preferred_element_type=f32)
    for dy in range(1, 5):
        acc2 = acc2 + jnp.dot(p1[dy:dy + 8].reshape(8 * T, 72),
                              cb2w_ref[dy], preferred_element_type=f32)
    acc2 = jnp.maximum(acc2 + cb2b_ref[...], 0.0)              # (8T, 128)

    # ---- maxpool2 + flatten, then fc1 as a single K=256 matmul.
    hp2 = jnp.maximum(acc2[:, 0:64], acc2[:, 64:128])          # (8T, 64)
    hp2 = hp2.reshape(4, 2, T, 64)
    p2 = jnp.maximum(hp2[:, 0], hp2[:, 1])                     # (4, T, 64)
    xf = jnp.concatenate([p2[0], p2[1], p2[2], p2[3]],
                         axis=-1).astype(cdt)                  # (T, 256)

    h = jnp.maximum(jnp.dot(xf, f1w_ref[...], preferred_element_type=f32)
                    + f1b_ref[...], 0.0)                       # fc1 + ReLU
    h = jnp.maximum(jnp.dot(h.astype(cdt), f2w_ref[...],
                            preferred_element_type=f32)
                    + f2b_ref[...], 0.0)                       # fc2 + ReLU
    out = (jnp.dot(h.astype(cdt), f3w_ref[...], preferred_element_type=f32)
           + f3b_ref[...])                                     # fc3
    out_ref[...] = out.astype(out_ref.dtype)


# --------------------- one-time parameter repacking ------------------------

def prepare_params(params, num_classes, *, compute_dtype=jnp.bfloat16):
    """Repack torch-layout parameters into the kernel layouts (runs once)."""
    assert num_classes <= 128

    def conv_band(w_oihw, w_in):
        w = np.asarray(w_oihw, dtype=np.float32)
        out_c, in_c, kh, kw = w.shape
        wo = w_in - kw + 1
        half = (wo // 2) * out_c
        band = np.zeros((kh, w_in * in_c, wo * out_c), dtype=np.float32)
        for dy in range(kh):
            for dx in range(kw):
                blk = w[:, :, dy, dx].T                        # (Cin, O)
                for w0 in range(wo):
                    col = (w0 % 2) * half + (w0 // 2) * out_c  # parity-packed
                    row = (w0 + dx) * in_c
                    band[dy, row:row + in_c, col:col + out_c] = blk
        return band

    b1 = np.asarray(params["b1"], np.float32)
    b2 = np.asarray(params["b2"], np.float32)

    # fc1: torch flattens in (c, h, w) order; repack to rows ph*64 + w2*16 + c.
    f1 = np.asarray(params["fc1_w"], np.float32).reshape(120, 16, 4, 4)
    f1 = np.transpose(f1, (2, 3, 1, 0)).reshape(4, 64, 120)
    f1w = np.zeros((4, 64, 128), np.float32)
    f1w[..., :120] = f1
    f1w = f1w.reshape(256, 128)                 # single K=256 dot in-kernel
    f1b = np.zeros((1, 128), np.float32)
    f1b[0, :120] = np.asarray(params["fc1_b"], np.float32)

    f2w = np.zeros((128, 128), np.float32)
    f2w[:120, :84] = np.asarray(params["fc2_w"], np.float32).T
    f2b = np.zeros((1, 128), np.float32)
    f2b[0, :84] = np.asarray(params["fc2_b"], np.float32)

    f3w = np.zeros((128, 128), np.float32)
    f3w[:84, :num_classes] = np.asarray(params["fc3_w"], np.float32).T
    f3b = np.zeros((1, 128), np.float32)
    f3b[0, :num_classes] = np.asarray(params["fc3_b"], np.float32)

    prep = {
        "cb1w": conv_band(params["w1"], 28),            # (5, 84, 144)
        "cb1b": np.tile(b1, 24).reshape(1, 144),
        "cb2w": conv_band(params["w2"], 12),            # (5, 72, 128)
        "cb2b": np.tile(b2, 8).reshape(1, 128),
        "f1w": f1w, "f1b": f1b,
        "f2w": f2w, "f2b": f2b,
        "f3w": f3w, "f3b": f3b,
    }
    mxu_weights = {"cb1w", "cb2w", "f1w", "f2w", "f3w"}
    return {k: jnp.asarray(v, dtype=(compute_dtype if k in mxu_weights
                                     else jnp.float32))
            for k, v in prep.items()}


# ------------------------------- forward pass ------------------------------

def _choose_tile(n8):
    """Batch tile: big for MXU fill, >=2 grid steps when possible (v7x cores)."""
    if n8 >= 2 * TILE_N_MAX:
        return TILE_N_MAX
    return max(8, ((n8 + 15) // 16) * 8)        # ~half the batch, multiple of 8


def net_forward(x_nchw, prep, *, num_classes):
    N = x_nchw.shape[0]
    cdt = prep["cb1w"].dtype
    n8 = pl.cdiv(N, 8) * 8
    tile = _choose_tile(n8)
    n_pad = pl.cdiv(N, tile) * tile

    # NCHW -> (H, N, W*C) packed layout (one cheap XLA pass over the input).
    x = jnp.transpose(x_nchw, (2, 0, 3, 1)).reshape(28, N, 84)
    if n_pad != N:
        x = jnp.pad(x, ((0, 0), (0, n_pad - N), (0, 0)))
    x = x.astype(cdt)                            # bf16 input tile DMA

    def const_spec(a):
        nd = a.ndim
        return pl.BlockSpec(a.shape, lambda i, _nd=nd: (0,) * _nd)

    out = pl.pallas_call(
        _lenet_kernel,
        out_shape=jax.ShapeDtypeStruct((n_pad, 128), jnp.float32),
        grid_spec=pltpu.PrefetchScalarGridSpec(
            num_scalar_prefetch=0,
            grid=(n_pad // tile,),
            in_specs=[
                pl.BlockSpec((28, tile, 84), lambda i: (0, i, 0)),  # x tile
                const_spec(prep["cb1w"]), const_spec(prep["cb1b"]),
                const_spec(prep["cb2w"]), const_spec(prep["cb2b"]),
                const_spec(prep["f1w"]), const_spec(prep["f1b"]),
                const_spec(prep["f2w"]), const_spec(prep["f2b"]),
                const_spec(prep["f3w"]), const_spec(prep["f3b"]),
            ],
            out_specs=pl.BlockSpec((tile, 128), lambda i: (i, 0)),
        ),
        compiler_params=pltpu.CompilerParams(
            dimension_semantics=("parallel",),
            vmem_limit_bytes=32 * 1024 * 1024,
        ),
    )(x, prep["cb1w"], prep["cb1b"], prep["cb2w"], prep["cb2b"],
      prep["f1w"], prep["f1b"], prep["f2w"], prep["f2b"],
      prep["f3w"], prep["f3b"])
    return out[:N, :num_classes]


# ----------------------------- parameter init ------------------------------

def init_params(key, num_classes):
    ks = jax.random.split(key, 10)

    def _uniform(k, shape, fan_in):
        bound = 1.0 / jnp.sqrt(float(fan_in))
        return jax.random.uniform(k, shape, jnp.float32, -bound, bound)

    return {
        "w1": _uniform(ks[0], (6, 3, 5, 5), 3 * 5 * 5),
        "b1": _uniform(ks[1], (6,), 3 * 5 * 5),
        "w2": _uniform(ks[2], (16, 6, 5, 5), 6 * 5 * 5),
        "b2": _uniform(ks[3], (16,), 6 * 5 * 5),
        "fc1_w": _uniform(ks[4], (120, 256), 256),  # torch Linear layout (out, in)
        "fc1_b": _uniform(ks[5], (120,), 256),
        "fc2_w": _uniform(ks[6], (84, 120), 120),
        "fc2_b": _uniform(ks[7], (84,), 120),
        "fc3_w": _uniform(ks[8], (num_classes, 84), 84),
        "fc3_b": _uniform(ks[9], (num_classes,), 84),
    }


# ------------------------- pure-JAX reference check ------------------------

def _ref_forward(x_nchw, params):
    dn = ("NCHW", "OIHW", "NCHW")

    def conv(x, w, b):
        y = lax.conv_general_dilated(x, w, (1, 1), "VALID", dimension_numbers=dn)
        return jnp.maximum(y + b.reshape(1, -1, 1, 1), 0.0)

    def pool(x):
        return lax.reduce_window(x, -jnp.inf, lax.max,
                                 (1, 1, 2, 2), (1, 1, 2, 2), "VALID")

    h = pool(conv(x_nchw, params["w1"], params["b1"]))
    h = pool(conv(h, params["w2"], params["b2"]))
    h = h.reshape(h.shape[0], -1)
    h = jnp.maximum(h @ params["fc1_w"].T + params["fc1_b"], 0.0)
    h = jnp.maximum(h @ params["fc2_w"].T + params["fc2_b"], 0.0)
    return h @ params["fc3_w"].T + params["fc3_b"]


if __name__ == "__main__":
    num_classes = 10
    key = jax.random.PRNGKey(0)
    k_param, k_x, k_x2 = jax.random.split(key, 3)

    params = init_params(k_param, num_classes)
    fwd = jax.jit(functools.partial(net_forward, num_classes=num_classes))

    # 1) exact-packing check: f32 weights, small batch, tight tolerance.
    prep_f32 = prepare_params(params, num_classes, compute_dtype=jnp.float32)
    x = jax.random.normal(k_x, (2, 3, 28, 28), dtype=jnp.float32)   # NCHW
    out32 = jax.block_until_ready(fwd(x, prep_f32))
    assert out32.shape == (2, num_classes), out32.shape
    ref = _ref_forward(x, params)
    err32 = float(jnp.max(jnp.abs(out32 - ref)))
    assert err32 < 1e-3, f"f32 mismatch vs reference: max abs err = {err32}"

    # 2) fast path: bf16 weights/activations, batch large enough for >1 grid
    #    step and batch padding; looser tolerance for bf16 operands.
    prep_bf16 = prepare_params(params, num_classes)                 # bf16
    x2 = jax.random.normal(k_x2, (20, 3, 28, 28), dtype=jnp.float32)
    out = jax.block_until_ready(fwd(x2, prep_bf16))
    assert out.shape == (20, num_classes), out.shape
    ref2 = _ref_forward(x2, params)
    err = float(jnp.max(jnp.abs(out - ref2)))
    assert err < 5e-2, f"bf16 mismatch vs reference: max abs err = {err}"

    print("KERNEL_OK")
</pallas_src>

<mosaic_0001>
module attributes {stable_mosaic.version = 11 : i64} {
  func.func @_lenet_kernel(%arg0: i32, %arg1: memref<28x8x84xf32, #tpu.memory_space<vmem>>, %arg2: memref<5x84x144xf32, #tpu.memory_space<vmem>>, %arg3: memref<1x144xf32, #tpu.memory_space<vmem>>, %arg4: memref<5x72x128xf32, #tpu.memory_space<vmem>>, %arg5: memref<1x128xf32, #tpu.memory_space<vmem>>, %arg6: memref<256x128xf32, #tpu.memory_space<vmem>>, %arg7: memref<1x128xf32, #tpu.memory_space<vmem>>, %arg8: memref<128x128xf32, #tpu.memory_space<vmem>>, %arg9: memref<1x128xf32, #tpu.memory_space<vmem>>, %arg10: memref<128x128xf32, #tpu.memory_space<vmem>>, %arg11: memref<1x128xf32, #tpu.memory_space<vmem>>, %arg12: memref<8x128xf32, #tpu.memory_space<vmem>>) attributes {dimension_semantics = [#tpu.dimension_semantics<parallel>], iteration_bounds = array<i64: 1>, scalar_prefetch = 0 : i64, scratch_operands = 0 : i64, tpu.core_type = #tpu.core_type<tc>, window_params = [{transform_indices = @transform_0, window_bounds = array<i64: 28, 8, 84>}, {pipeline_mode = #tpu.pipeline_mode<synchronous>, transform_indices = @transform_1, window_bounds = array<i64: 5, 84, 144>}, {pipeline_mode = #tpu.pipeline_mode<synchronous>, transform_indices = @transform_2, window_bounds = array<i64: 1, 144>}, {pipeline_mode = #tpu.pipeline_mode<synchronous>, transform_indices = @transform_3, window_bounds = array<i64: 5, 72, 128>}, {pipeline_mode = #tpu.pipeline_mode<synchronous>, transform_indices = @transform_4, window_bounds = array<i64: 1, 128>}, {pipeline_mode = #tpu.pipeline_mode<synchronous>, transform_indices = @transform_5, window_bounds = array<i64: 256, 128>}, {pipeline_mode = #tpu.pipeline_mode<synchronous>, transform_indices = @transform_6, window_bounds = array<i64: 1, 128>}, {pipeline_mode = #tpu.pipeline_mode<synchronous>, transform_indices = @transform_7, window_bounds = array<i64: 128, 128>}, {pipeline_mode = #tpu.pipeline_mode<synchronous>, transform_indices = @transform_8, window_bounds = array<i64: 1, 128>}, {pipeline_mode = #tpu.pipeline_mode<synchronous>, transform_indices = @transform_9, window_bounds = array<i64: 128, 128>}, {pipeline_mode = #tpu.pipeline_mode<synchronous>, transform_indices = @transform_10, window_bounds = array<i64: 1, 128>}, {transform_indices = @transform_11, window_bounds = array<i64: 8, 128>}]} {
    %c0 = arith.constant 0 : index
    %c0_0 = arith.constant 0 : index
    %c0_1 = arith.constant 0 : index
    %0 = vector.load %arg1[%c0, %c0_0, %c0_1] : memref<28x8x84xf32, #tpu.memory_space<vmem>>, vector<24x8x84xf32>
    %1 = vector.shape_cast %0 : vector<24x8x84xf32> to vector<192x84xf32>
    %c0_2 = arith.constant 0 : index
    %c0_3 = arith.constant 0 : index
    %c0_4 = arith.constant 0 : index
    %2 = vector.load %arg2[%c0_2, %c0_3, %c0_4] : memref<5x84x144xf32, #tpu.memory_space<vmem>>, vector<1x84x144xf32>
    %3 = vector.shape_cast %2 : vector<1x84x144xf32> to vector<84x144xf32>
    %cst = arith.constant dense<0.000000e+00> : vector<192x144xf32>
    %4 = tpu.matmul %1, %3, %cst {dimension_numbers = #tpu.dot_dimension_numbers<[1], [0], [0], [1], [0, 0, 1, 1], [], []>} : vector<192x84xf32>, vector<84x144xf32>, vector<192x144xf32> -> vector<192x144xf32>
    %c1 = arith.constant 1 : index
    %c0_5 = arith.constant 0 : index
    %c0_6 = arith.constant 0 : index
    %5 = vector.load %arg1[%c1, %c0_5, %c0_6] : memref<28x8x84xf32, #tpu.memory_space<vmem>>, vector<24x8x84xf32>
    %6 = vector.shape_cast %5 : vector<24x8x84xf32> to vector<192x84xf32>
    %c1_7 = arith.constant 1 : index
    %c0_8 = arith.constant 0 : index
    %c0_9 = arith.constant 0 : index
    %7 = vector.load %arg2[%c1_7, %c0_8, %c0_9] : memref<5x84x144xf32, #tpu.memory_space<vmem>>, vector<1x84x144xf32>
    %8 = vector.shape_cast %7 : vector<1x84x144xf32> to vector<84x144xf32>
    %cst_10 = arith.constant dense<0.000000e+00> : vector<192x144xf32>
    %9 = tpu.matmul %6, %8, %cst_10 {dimension_numbers = #tpu.dot_dimension_numbers<[1], [0], [0], [1], [0, 0, 1, 1], [], []>} : vector<192x84xf32>, vector<84x144xf32>, vector<192x144xf32> -> vector<192x144xf32>
    %10 = arith.addf %4, %9 : vector<192x144xf32>
    %c2 = arith.constant 2 : index
    %c0_11 = arith.constant 0 : index
    %c0_12 = arith.constant 0 : index
    %11 = vector.load %arg1[%c2, %c0_11, %c0_12] : memref<28x8x84xf32, #tpu.memory_space<vmem>>, vector<24x8x84xf32>
    %12 = vector.shape_cast %11 : vector<24x8x84xf32> to vector<192x84xf32>
    %c2_13 = arith.constant 2 : index
    %c0_14 = arith.constant 0 : index
    %c0_15 = arith.constant 0 : index
    %13 = vector.load %arg2[%c2_13, %c0_14, %c0_15] : memref<5x84x144xf32, #tpu.memory_space<vmem>>, vector<1x84x144xf32>
    %14 = vector.shape_cast %13 : vector<1x84x144xf32> to vector<84x144xf32>
    %cst_16 = arith.constant dense<0.000000e+00> : vector<192x144xf32>
    %15 = tpu.matmul %12, %14, %cst_16 {dimension_numbers = #tpu.dot_dimension_numbers<[1], [0], [0], [1], [0, 0, 1, 1], [], []>} : vector<192x84xf32>, vector<84x144xf32>, vector<192x144xf32> -> vector<192x144xf32>
    %16 = arith.addf %10, %15 : vector<192x144xf32>
    %c3 = arith.constant 3 : index
    %c0_17 = arith.constant 0 : index
    %c0_18 = arith.constant 0 : index
    %17 = vector.load %arg1[%c3, %c0_17, %c0_18] : memref<28x8x84xf32, #tpu.memory_space<vmem>>, vector<24x8x84xf32>
    %18 = vector.shape_cast %17 : vector<24x8x84xf32> to vector<192x84xf32>
    %c3_19 = arith.constant 3 : index
    %c0_20 = arith.constant 0 : index
    %c0_21 = arith.constant 0 : index
    %19 = vector.load %arg2[%c3_19, %c0_20, %c0_21] : memref<5x84x144xf32, #tpu.memory_space<vmem>>, vector<1x84x144xf32>
    %20 = vector.shape_cast %19 : vector<1x84x144xf32> to vector<84x144xf32>
    %cst_22 = arith.constant dense<0.000000e+00> : vector<192x144xf32>
    %21 = tpu.matmul %18, %20, %cst_22 {dimension_numbers = #tpu.dot_dimension_numbers<[1], [0], [0], [1], [0, 0, 1, 1], [], []>} : vector<192x84xf32>, vector<84x144xf32>, vector<192x144xf32> -> vector<192x144xf32>
    %22 = arith.addf %16, %21 : vector<192x144xf32>
    %c4 = arith.constant 4 : index
    %c0_23 = arith.constant 0 : index
    %c0_24 = arith.constant 0 : index
    %23 = vector.load %arg1[%c4, %c0_23, %c0_24] : memref<28x8x84xf32, #tpu.memory_space<vmem>>, vector<24x8x84xf32>
    %24 = vector.shape_cast %23 : vector<24x8x84xf32> to vector<192x84xf32>
    %c4_25 = arith.constant 4 : index
    %c0_26 = arith.constant 0 : index
    %c0_27 = arith.constant 0 : index
    %25 = vector.load %arg2[%c4_25, %c0_26, %c0_27] : memref<5x84x144xf32, #tpu.memory_space<vmem>>, vector<1x84x144xf32>
    %26 = vector.shape_cast %25 : vector<1x84x144xf32> to vector<84x144xf32>
    %cst_28 = arith.constant dense<0.000000e+00> : vector<192x144xf32>
    %27 = tpu.matmul %24, %26, %cst_28 {dimension_numbers = #tpu.dot_dimension_numbers<[1], [0], [0], [1], [0, 0, 1, 1], [], []>} : vector<192x84xf32>, vector<84x144xf32>, vector<192x144xf32> -> vector<192x144xf32>
    %28 = arith.addf %22, %27 : vector<192x144xf32>
    %c0_29 = arith.constant 0 : index
    %c0_30 = arith.constant 0 : index
    %29 = vector.load %arg3[%c0_29, %c0_30] : memref<1x144xf32, #tpu.memory_space<vmem>>, vector<1x144xf32>
    %30 = vector.broadcast %29 : vector<1x144xf32> to vector<192x144xf32>
    %31 = arith.addf %28, %30 : vector<192x144xf32>
    %cst_31 = arith.constant 0.000000e+00 : f32
    %32 = vector.broadcast %cst_31 : f32 to vector<192x144xf32>
    %33 = arith.maximumf %31, %32 : vector<192x144xf32>
    %34 = vector.extract_strided_slice %33 {offsets = [0, 0], sizes = [192, 72], strides = [1, 1]} : vector<192x144xf32> to vector<192x72xf32>
    %35 = vector.extract_strided_slice %33 {offsets = [0, 72], sizes = [192, 72], strides = [1, 1]} : vector<192x144xf32> to vector<192x72xf32>
    %36 = arith.maximumf %34, %35 : vector<192x72xf32>
    %37 = vector.shape_cast %36 : vector<192x72xf32> to vector<12x2x8x72xf32>
    %38 = vector.extract_strided_slice %37 {offsets = [0, 0, 0, 0], sizes = [12, 1, 8, 72], strides = [1, 1, 1, 1]} : vector<12x2x8x72xf32> to vector<12x1x8x72xf32>
    %39 = vector.shape_cast %38 : vector<12x1x8x72xf32> to vector<12x8x72xf32>
    %40 = vector.extract_strided_slice %37 {offsets = [0, 1, 0, 0], sizes = [12, 1, 8, 72], strides = [1, 1, 1, 1]} : vector<12x2x8x72xf32> to vector<12x1x8x72xf32>
    %41 = vector.shape_cast %40 : vector<12x1x8x72xf32> to vector<12x8x72xf32>
    %42 = arith.maximumf %39, %41 : vector<12x8x72xf32>
    %43 = vector.extract_strided_slice %42 {offsets = [0, 0, 0], sizes = [8, 8, 72], strides = [1, 1, 1]} : vector<12x8x72xf32> to vector<8x8x72xf32>
    %44 = vector.shape_cast %43 : vector<8x8x72xf32> to vector<64x72xf32>
    %c0_32 = arith.constant 0 : index
    %c0_33 = arith.constant 0 : index
    %c0_34 = arith.constant 0 : index
    %45 = vector.load %arg4[%c0_32, %c0_33, %c0_34] : memref<5x72x128xf32, #tpu.memory_space<vmem>>, vector<1x72x128xf32>
    %46 = vector.shape_cast %45 : vector<1x72x128xf32> to vector<72x128xf32>
    %cst_35 = arith.constant dense<0.000000e+00> : vector<64x128xf32>
    %47 = tpu.matmul %44, %46, %cst_35 {dimension_numbers = #tpu.dot_dimension_numbers<[1], [0], [0], [1], [0, 0, 1, 1], [], []>} : vector<64x72xf32>, vector<72x128xf32>, vector<64x128xf32> -> vector<64x128xf32>
    %48 = vector.extract_strided_slice %42 {offsets = [1, 0, 0], sizes = [8, 8, 72], strides = [1, 1, 1]} : vector<12x8x72xf32> to vector<8x8x72xf32>
    %49 = vector.shape_cast %48 : vector<8x8x72xf32> to vector<64x72xf32>
    %c1_36 = arith.constant 1 : index
    %c0_37 = arith.constant 0 : index
    %c0_38 = arith.constant 0 : index
    %50 = vector.load %arg4[%c1_36, %c0_37, %c0_38] : memref<5x72x128xf32, #tpu.memory_space<vmem>>, vector<1x72x128xf32>
    %51 = vector.shape_cast %50 : vector<1x72x128xf32> to vector<72x128xf32>
    %cst_39 = arith.constant dense<0.000000e+00> : vector<64x128xf32>
    %52 = tpu.matmul %49, %51, %cst_39 {dimension_numbers = #tpu.dot_dimension_numbers<[1], [0], [0], [1], [0, 0, 1, 1], [], []>} : vector<64x72xf32>, vector<72x128xf32>, vector<64x128xf32> -> vector<64x128xf32>
    %53 = arith.addf %47, %52 : vector<64x128xf32>
    %54 = vector.extract_strided_slice %42 {offsets = [2, 0, 0], sizes = [8, 8, 72], strides = [1, 1, 1]} : vector<12x8x72xf32> to vector<8x8x72xf32>
    %55 = vector.shape_cast %54 : vector<8x8x72xf32> to vector<64x72xf32>
    %c2_40 = arith.constant 2 : index
    %c0_41 = arith.constant 0 : index
    %c0_42 = arith.constant 0 : index
    %56 = vector.load %arg4[%c2_40, %c0_41, %c0_42] : memref<5x72x128xf32, #tpu.memory_space<vmem>>, vector<1x72x128xf32>
    %57 = vector.shape_cast %56 : vector<1x72x128xf32> to vector<72x128xf32>
    %cst_43 = arith.constant dense<0.000000e+00> : vector<64x128xf32>
    %58 = tpu.matmul %55, %57, %cst_43 {dimension_numbers = #tpu.dot_dimension_numbers<[1], [0], [0], [1], [0, 0, 1, 1], [], []>} : vector<64x72xf32>, vector<72x128xf32>, vector<64x128xf32> -> vector<64x128xf32>
    %59 = arith.addf %53, %58 : vector<64x128xf32>
    %60 = vector.extract_strided_slice %42 {offsets = [3, 0, 0], sizes = [8, 8, 72], strides = [1, 1, 1]} : vector<12x8x72xf32> to vector<8x8x72xf32>
    %61 = vector.shape_cast %60 : vector<8x8x72xf32> to vector<64x72xf32>
    %c3_44 = arith.constant 3 : index
    %c0_45 = arith.constant 0 : index
    %c0_46 = arith.constant 0 : index
    %62 = vector.load %arg4[%c3_44, %c0_45, %c0_46] : memref<5x72x128xf32, #tpu.memory_space<vmem>>, vector<1x72x128xf32>
    %63 = vector.shape_cast %62 : vector<1x72x128xf32> to vector<72x128xf32>
    %cst_47 = arith.constant dense<0.000000e+00> : vector<64x128xf32>
    %64 = tpu.matmul %61, %63, %cst_47 {dimension_numbers = #tpu.dot_dimension_numbers<[1], [0], [0], [1], [0, 0, 1, 1], [], []>} : vector<64x72xf32>, vector<72x128xf32>, vector<64x128xf32> -> vector<64x128xf32>
    %65 = arith.addf %59, %64 : vector<64x128xf32>
    %66 = vector.extract_strided_slice %42 {offsets = [4, 0, 0], sizes = [8, 8, 72], strides = [1, 1, 1]} : vector<12x8x72xf32> to vector<8x8x72xf32>
    %67 = vector.shape_cast %66 : vector<8x8x72xf32> to vector<64x72xf32>
    %c4_48 = arith.constant 4 : index
    %c0_49 = arith.constant 0 : index
    %c0_50 = arith.constant 0 : index
    %68 = vector.load %arg4[%c4_48, %c0_49, %c0_50] : memref<5x72x128xf32, #tpu.memory_space<vmem>>, vector<1x72x128xf32>
    %69 = vector.shape_cast %68 : vector<1x72x128xf32> to vector<72x128xf32>
    %cst_51 = arith.constant dense<0.000000e+00> : vector<64x128xf32>
    %70 = tpu.matmul %67, %69, %cst_51 {dimension_numbers = #tpu.dot_dimension_numbers<[1], [0], [0], [1], [0, 0, 1, 1], [], []>} : vector<64x72xf32>, vector<72x128xf32>, vector<64x128xf32> -> vector<64x128xf32>
    %71 = arith.addf %65, %70 : vector<64x128xf32>
    %c0_52 = arith.constant 0 : index
    %c0_53 = arith.constant 0 : index
    %72 = vector.load %arg5[%c0_52, %c0_53] : memref<1x128xf32, #tpu.memory_space<vmem>>, vector<1x128xf32>
    %73 = vector.broadcast %72 : vector<1x128xf32> to vector<64x128xf32>
    %74 = arith.addf %71, %73 : vector<64x128xf32>
    %cst_54 = arith.constant 0.000000e+00 : f32
    %75 = vector.broadcast %cst_54 : f32 to vector<64x128xf32>
    %76 = arith.maximumf %74, %75 : vector<64x128xf32>
    %77 = vector.extract_strided_slice %76 {offsets = [0, 0], sizes = [64, 64], strides = [1, 1]} : vector<64x128xf32> to vector<64x64xf32>
    %78 = vector.extract_strided_slice %76 {offsets = [0, 64], sizes = [64, 64], strides = [1, 1]} : vector<64x128xf32> to vector<64x64xf32>
    %79 = arith.maximumf %77, %78 : vector<64x64xf32>
    %80 = vector.shape_cast %79 : vector<64x64xf32> to vector<4x2x8x64xf32>
    %81 = vector.extract_strided_slice %80 {offsets = [0, 0, 0, 0], sizes = [4, 1, 8, 64], strides = [1, 1, 1, 1]} : vector<4x2x8x64xf32> to vector<4x1x8x64xf32>
    %82 = vector.shape_cast %81 : vector<4x1x8x64xf32> to vector<4x8x64xf32>
    %83 = vector.extract_strided_slice %80 {offsets = [0, 1, 0, 0], sizes = [4, 1, 8, 64], strides = [1, 1, 1, 1]} : vector<4x2x8x64xf32> to vector<4x1x8x64xf32>
    %84 = vector.shape_cast %83 : vector<4x1x8x64xf32> to vector<4x8x64xf32>
    %85 = arith.maximumf %82, %84 : vector<4x8x64xf32>
    %86 = vector.extract_strided_slice %85 {offsets = [0, 0, 0], sizes = [1, 8, 64], strides = [1, 1, 1]} : vector<4x8x64xf32> to vector<1x8x64xf32>
    %87 = vector.shape_cast %86 : vector<1x8x64xf32> to vector<8x64xf32>
    %88 = vector.extract_strided_slice %85 {offsets = [1, 0, 0], sizes = [1, 8, 64], strides = [1, 1, 1]} : vector<4x8x64xf32> to vector<1x8x64xf32>
    %89 = vector.shape_cast %88 : vector<1x8x64xf32> to vector<8x64xf32>
    %90 = vector.extract_strided_slice %85 {offsets = [2, 0, 0], sizes = [1, 8, 64], strides = [1, 1, 1]} : vector<4x8x64xf32> to vector<1x8x64xf32>
    %91 = vector.shape_cast %90 : vector<1x8x64xf32> to vector<8x64xf32>
    %92 = vector.extract_strided_slice %85 {offsets = [3, 0, 0], sizes = [1, 8, 64], strides = [1, 1, 1]} : vector<4x8x64xf32> to vector<1x8x64xf32>
    %93 = vector.shape_cast %92 : vector<1x8x64xf32> to vector<8x64xf32>
    %94 = tpu.concatenate %87, %89, %91, %93 in 1 : vector<8x64xf32>, vector<8x64xf32>, vector<8x64xf32>, vector<8x64xf32> -> vector<8x256xf32>
    %c0_55 = arith.constant 0 : index
    %c0_56 = arith.constant 0 : index
    %95 = vector.load %arg6[%c0_55, %c0_56] : memref<256x128xf32, #tpu.memory_space<vmem>>, vector<256x128xf32>
    %cst_57 = arith.constant dense<0.000000e+00> : vector<8x128xf32>
    %96 = tpu.matmul %94, %95, %cst_57 {dimension_numbers = #tpu.dot_dimension_numbers<[1], [0], [0], [1], [0, 0, 1, 1], [], []>} : vector<8x256xf32>, vector<256x128xf32>, vector<8x128xf32> -> vector<8x128xf32>
    %c0_58 = arith.constant 0 : index
    %c0_59 = arith.constant 0 : index
    %97 = vector.load %arg7[%c0_58, %c0_59] : memref<1x128xf32, #tpu.memory_space<vmem>>, vector<1x128xf32>
    %98 = vector.broadcast %97 : vector<1x128xf32> to vector<8x128xf32>
    %99 = arith.addf %96, %98 : vector<8x128xf32>
    %cst_60 = arith.constant 0.000000e+00 : f32
    %100 = vector.broadcast %cst_60 : f32 to vector<8x128xf32>
    %101 = arith.maximumf %99, %100 : vector<8x128xf32>
    %c0_61 = arith.constant 0 : index
    %c0_62 = arith.constant 0 : index
    %102 = vector.load %arg8[%c0_61, %c0_62] : memref<128x128xf32, #tpu.memory_space<vmem>>, vector<128x128xf32>
    %cst_63 = arith.constant dense<0.000000e+00> : vector<8x128xf32>
    %103 = tpu.matmul %101, %102, %cst_63 {dimension_numbers = #tpu.dot_dimension_numbers<[1], [0], [0], [1], [0, 0, 1, 1], [], []>} : vector<8x128xf32>, vector<128x128xf32>, vector<8x128xf32> -> vector<8x128xf32>
    %c0_64 = arith.constant 0 : index
    %c0_65 = arith.constant 0 : index
    %104 = vector.load %arg9[%c0_64, %c0_65] : memref<1x128xf32, #tpu.memory_space<vmem>>, vector<1x128xf32>
    %105 = vector.broadcast %104 : vector<1x128xf32> to vector<8x128xf32>
    %106 = arith.addf %103, %105 : vector<8x128xf32>
    %cst_66 = arith.constant 0.000000e+00 : f32
    %107 = vector.broadcast %cst_66 : f32 to vector<8x128xf32>
    %108 = arith.maximumf %106, %107 : vector<8x128xf32>
    %c0_67 = arith.constant 0 : index
    %c0_68 = arith.constant 0 : index
    %109 = vector.load %arg10[%c0_67, %c0_68] : memref<128x128xf32, #tpu.memory_space<vmem>>, vector<128x128xf32>
    %cst_69 = arith.constant dense<0.000000e+00> : vector<8x128xf32>
    %110 = tpu.matmul %108, %109, %cst_69 {dimension_numbers = #tpu.dot_dimension_numbers<[1], [0], [0], [1], [0, 0, 1, 1], [], []>} : vector<8x128xf32>, vector<128x128xf32>, vector<8x128xf32> -> vector<8x128xf32>
    %c0_70 = arith.constant 0 : index
    %c0_71 = arith.constant 0 : index
    %111 = vector.load %arg11[%c0_70, %c0_71] : memref<1x128xf32, #tpu.memory_space<vmem>>, vector<1x128xf32>
    %112 = vector.broadcast %111 : vector<1x128xf32> to vector<8x128xf32>
    %113 = arith.addf %110, %112 : vector<8x128xf32>
    %c0_72 = arith.constant 0 : index
    %c0_73 = arith.constant 0 : index
    %114 = vector.load %arg12[%c0_72, %c0_73] : memref<8x128xf32, #tpu.memory_space<vmem>>, vector<8x128xf32>
    tpu.vector_store %arg12[%c0_72, %c0_73], %113 {strides = array<i32>} : memref<8x128xf32, #tpu.memory_space<vmem>>, vector<8x128xf32>,
    return
  }
  func.func @transform_0(%arg0: i32) -> (i32, i32, i32) {
    %c0_i32 = arith.constant 0 : i32
    %c0_i32_0 = arith.constant 0 : i32
    %c0_i32_1 = arith.constant 0 : i32
    return %c0_i32, %arg0, %c0_i32_0 : i32, i32, i32
  }
  func.func @transform_1(%arg0: i32) -> (i32, i32, i32) {
    %c0_i32 = arith.constant 0 : i32
    %c0_i32_0 = arith.constant 0 : i32
    %c0_i32_1 = arith.constant 0 : i32
    %c0_i32_2 = arith.constant 0 : i32
    return %c0_i32, %c0_i32_0, %c0_i32_1 : i32, i32, i32
  }
  func.func @transform_2(%arg0: i32) -> (i32, i32) {
    %c0_i32 = arith.constant 0 : i32
    %c0_i32_0 = arith.constant 0 : i32
    %c0_i32_1 = arith.constant 0 : i32
    return %c0_i32, %c0_i32_0 : i32, i32
  }
  func.func @transform_3(%arg0: i32) -> (i32, i32, i32) {
    %c0_i32 = arith.constant 0 : i32
    %c0_i32_0 = arith.constant 0 : i32
    %c0_i32_1 = arith.constant 0 : i32
    %c0_i32_2 = arith.constant 0 : i32
    return %c0_i32, %c0_i32_0, %c0_i32_1 : i32, i32, i32
  }
  func.func @transform_4(%arg0: i32) -> (i32, i32) {
    %c0_i32 = arith.constant 0 : i32
    %c0_i32_0 = arith.constant 0 : i32
    %c0_i32_1 = arith.constant 0 : i32
    return %c0_i32, %c0_i32_0 : i32, i32
  }
  func.func @transform_5(%arg0: i32) -> (i32, i32) {
    %c0_i32 = arith.constant 0 : i32
    %c0_i32_0 = arith.constant 0 : i32
    %c0_i32_1 = arith.constant 0 : i32
    return %c0_i32, %c0_i32_0 : i32, i32
  }
  func.func @transform_6(%arg0: i32) -> (i32, i32) {
    %c0_i32 = arith.constant 0 : i32
    %c0_i32_0 = arith.constant 0 : i32
    %c0_i32_1 = arith.constant 0 : i32
    return %c0_i32, %c0_i32_0 : i32, i32
  }
  func.func @transform_7(%arg0: i32) -> (i32, i32) {
    %c0_i32 = arith.constant 0 : i32
    %c0_i32_0 = arith.constant 0 : i32
    %c0_i32_1 = arith.constant 0 : i32
    return %c0_i32, %c0_i32_0 : i32, i32
  }
  func.func @transform_8(%arg0: i32) -> (i32, i32) {
    %c0_i32 = arith.constant 0 : i32
    %c0_i32_0 = arith.constant 0 : i32
    %c0_i32_1 = arith.constant 0 : i32
    return %c0_i32, %c0_i32_0 : i32, i32
  }
  func.func @transform_9(%arg0: i32) -> (i32, i32) {
    %c0_i32 = arith.constant 0 : i32
    %c0_i32_0 = arith.constant 0 : i32
    %c0_i32_1 = arith.constant 0 : i32
    return %c0_i32, %c0_i32_0 : i32, i32
  }
  func.func @transform_10(%arg0: i32) -> (i32, i32) {
    %c0_i32 = arith.constant 0 : i32
    %c0_i32_0 = arith.constant 0 : i32
    %c0_i32_1 = arith.constant 0 : i32
    return %c0_i32, %c0_i32_0 : i32, i32
  }
  func.func @transform_11(%arg0: i32) -> (i32, i32) {
    %c0_i32 = arith.constant 0 : i32
    %c0_i32_0 = arith.constant 0 : i32
    return %arg0, %c0_i32 : i32, i32
  }
}

</mosaic_0001>

<bundles_post_ra>
// kernel: net_forward.1
= control target key start
LH: loop header
LB: loop body
LE: loop exit
PB: predicated region body
PF: predicated region fallthrough
CT: control target
= control target key end

     0   :  { %vm205_vm0 = vcmask 1043456   ;;  %vm132_vm1 = vcmask 687104   ;;  %s3122_s23 = smov 56   ;;  %vm1948_vm2 = vcmask 457728   ;;  %vm2052_vm3 = vcmask 588800   ;;  %s5277_s1 = inlined_call_operand.vmem [shape: f32[5,84,144], index: 1, kind: input, shape index: {}]   ;;  %s5278_s0 = inlined_call_operand.vmem [shape: f32[28,8,84], index: 0, kind: input, shape index: {}]   ;;  %s5279_s3 = inlined_call_operand.vmem [shape: f32[5,72,128], index: 3, kind: input, shape index: {}]   ;;  %s5280_s2 = inlined_call_operand.vmem [shape: f32[1,144], index: 2, kind: input, shape index: {}]   ;;  %s5281_s4 = inlined_call_operand.vmem [shape: f32[1,128], index: 4, kind: input, shape index: {}]   ;;  %s5282_s5 = inlined_call_operand.vmem [shape: f32[256,128], index: 5, kind: input, shape index: {}]   ;;  %s5283_s7 = inlined_call_operand.vmem [shape: f32[128,128], index: 7, kind: input, shape index: {}]   ;;  %s5284_s6 = inlined_call_operand.vmem [shape: f32[1,128], index: 6, kind: input, shape index: {}]   ;;  %s5285_s9 = inlined_call_operand.vmem [shape: f32[128,128], index: 9, kind: input, shape index: {}]   ;;  %s5286_s8 = inlined_call_operand.vmem [shape: f32[1,128], index: 8, kind: input, shape index: {}]   ;;  %s5287_s10 = inlined_call_operand.vmem [shape: f32[1,128], index: 10, kind: input, shape index: {}]   ;;  %s5288_s11 = inlined_call_operand.vmem [shape: f32[8,128], index: 11, kind: output, shape index: {}]  }
   0x1   :  { %v2630_v0 = vld [vmem:[%s5277_s1 + $0x150] sm:$0xf]  ;;  %v2631_v1 = vld [vmem:[%s5277_s1 + $0x158] sm:$0xf]  ;;  %v82_v2 = vld [vmem:[%s5277_s1 + $0xa0] sm:$0xf] }
   0x2   :  { %2632 = vmatpush.msk.msra.mxu0 %vm205_vm0, %v2630_v0  ;;  %2657 = vmatpush.msk.msra.mxu1 %vm205_vm0, %v2631_v1  ;;  %v83_v3 = vld [vmem:[%s5277_s1 + $0xa8] sm:$0xf]  ;;  %v2628_v4 = vld [vmem:[%s5277_s1 + $0x140] sm:$0xff]  ;;  %v80_v6 = vld [vmem:[%s5277_s1 + $0x90] sm:$0xff]  ;;  %vm2420_vm4 = vcmask 523264  }
   0x3   :  { %v2629_v5 = vld [vmem:[%s5277_s1 + $0x148] sm:$0xff]  ;;  %2682 = vmatpush.msk.msra.mxu2 %vm205_vm0, %v82_v2  ;;  %2707 = vmatpush.msk.msra.mxu3 %vm205_vm0, %v83_v3  ;;  %v81_v7 = vld [vmem:[%s5277_s1 + $0x98] sm:$0xff]  ;;  %v2626_v8 = vld [vmem:[%s5277_s1 + $0x130] sm:$0xff] }
   0x4   :  { %218 = vmatpush.msra.mxu0 %v2628_v4  ;;  %307 = vmatpush.msra.mxu1 %v2629_v5  ;;  %v2627_v9 = vld [vmem:[%s5277_s1 + $0x138] sm:$0xff]  ;;  %v78_v10 = vld [vmem:[%s5277_s1 + $0x80] sm:$0xff]  ;;  %v79_v11 = vld [vmem:[%s5277_s1 + $0x88] sm:$0xff] }
   0x5   :  { %474 = vmatpush.msra.mxu2 %v80_v6  ;;  %563 = vmatpush.msra.mxu3 %v81_v7  ;;  %v2624_v12 = vld [vmem:[%s5277_s1 + $0x120] sm:$0xff]  ;;  %v2625_v13 = vld [vmem:[%s5277_s1 + $0x128] sm:$0xff]  ;;  %v76_v14 = vld [vmem:[%s5277_s1 + $0x70] sm:$0xff] }
   0x6   :  { %219 = vmatpush.msra.mxu0 %v2626_v8  ;;  %308 = vmatpush.msra.mxu1 %v2627_v9  ;;  %v77_v15 = vld [vmem:[%s5277_s1 + $0x78] sm:$0xff]  ;;  %v2622_v16 = vld [vmem:[%s5277_s1 + $0x110] sm:$0xff]  ;;  %v74_v18 = vld [vmem:[%s5277_s1 + $0x60] sm:$0xff] }
   0x7   :  { %475 = vmatpush.msra.mxu2 %v78_v10  ;;  %564 = vmatpush.msra.mxu3 %v79_v11  ;;  %v2623_v17 = vld [vmem:[%s5277_s1 + $0x118] sm:$0xff]  ;;  %v75_v19 = vld [vmem:[%s5277_s1 + $0x68] sm:$0xff]  ;;  %v2620_v20 = vld [vmem:[%s5277_s1 + $0x100] sm:$0xff] }
   0x8   :  { %220 = vmatpush.msra.mxu0 %v2624_v12  ;;  %309 = vmatpush.msra.mxu1 %v2625_v13  ;;  %v2621_v21 = vld [vmem:[%s5277_s1 + $0x108] sm:$0xff]  ;;  %v72_v22 = vld [vmem:[%s5277_s1 + $0x50] sm:$0xff]  ;;  %v73_v23 = vld [vmem:[%s5277_s1 + $0x58] sm:$0xff] }
   0x9   :  { %476 = vmatpush.msra.mxu2 %v76_v14  ;;  %565 = vmatpush.msra.mxu3 %v77_v15  ;;  %v2618_v24 = vld [vmem:[%s5277_s1 + $0xf0] sm:$0xff]  ;;  %v2619_v25 = vld [vmem:[%s5277_s1 + $0xf8] sm:$0xff]  ;;  %v70_v26 = vld [vmem:[%s5277_s1 + $0x40] sm:$0xff] }
   0xa   :  { %221 = vmatpush.msra.mxu0 %v2622_v16  ;;  %310 = vmatpush.msra.mxu1 %v2623_v17  ;;  %v71_v27 = vld [vmem:[%s5277_s1 + $0x48] sm:$0xff]  ;;  %v2616_v28 = vld [vmem:[%s5277_s1 + $0xe0] sm:$0xff]  ;;  %v68_v30 = vld [vmem:[%s5277_s1 + $0x30] sm:$0xff] }
   0xb   :  { %477 = vmatpush.msra.mxu2 %v74_v18  ;;  %566 = vmatpush.msra.mxu3 %v75_v19  ;;  %v2617_v29 = vld [vmem:[%s5277_s1 + $0xe8] sm:$0xff]  ;;  %v69_v31 = vld [vmem:[%s5277_s1 + $0x38] sm:$0xff]  ;;  %v2614_v32 = vld [vmem:[%s5277_s1 + $0xd0] sm:$0xff] }
   0xc   :  { %222 = vmatpush.msra.mxu0 %v2620_v20  ;;  %311 = vmatpush.msra.mxu1 %v2621_v21  ;;  %v2615_v33 = vld [vmem:[%s5277_s1 + $0xd8] sm:$0xff]  ;;  %v66_v34 = vld [vmem:[%s5277_s1 + $0x20] sm:$0xff]  ;;  %v67_v35 = vld [vmem:[%s5277_s1 + $0x28] sm:$0xff] }
   0xd   :  { %478 = vmatpush.msra.mxu2 %v72_v22  ;;  %567 = vmatpush.msra.mxu3 %v73_v23  ;;  %v2612_v36 = vld [vmem:[%s5277_s1 + $0xc0] sm:$0xff]  ;;  %v2613_v37 = vld [vmem:[%s5277_s1 + $0xc8] sm:$0xff]  ;;  %v64_v38 = vld [vmem:[%s5277_s1 + $0x10] sm:$0xff] }
   0xe   :  { %223 = vmatpush.msra.mxu0 %v2618_v24  ;;  %312 = vmatpush.msra.mxu1 %v2619_v25  ;;  %v65_v39 = vld [vmem:[%s5277_s1 + $0x18] sm:$0xff]  ;;  %v2610_v40 = vld [vmem:[%s5277_s1 + $0xb0] sm:$0xff]  ;;  %v62_v42 = vld [vmem:[%s5277_s1] sm:$0xff] }
   0xf   :  { %479 = vmatpush.msra.mxu2 %v70_v26  ;;  %568 = vmatpush.msra.mxu3 %v71_v27  ;;  %v2611_v41 = vld [vmem:[%s5277_s1 + $0xb8] sm:$0xff]  ;;  %v63_v43 = vld [vmem:[%s5277_s1 + $0x8] sm:$0xff]  ;;  %v38_v45 = vld [vmem:[%s5278_s0] sm:$0xff] }
  0x10   :  { %224 = vmatpush.msra.mxu0 %v2616_v28  ;;  %313 = vmatpush.msra.mxu1 %v2617_v29  ;;  %v2586_v44 = vld [vmem:[%s5278_s0 + $0x8] sm:$0xff]  ;;  %v2776_v46 = vld [vmem:[%s5277_s1 + $0x200] sm:$0xf]  ;;  %v2774_v48 = vld [vmem:[%s5277_s1 + $0x1f0] sm:$0xff] }
  0x11   :  { %480 = vmatpush.msra.mxu2 %v68_v30  ;;  %569 = vmatpush.msra.mxu3 %v69_v31  ;;  %v2777_v47 = vld [vmem:[%s5277_s1 + $0x208] sm:$0xf]  ;;  %v2775_v49 = vld [vmem:[%s5277_s1 + $0x1f8] sm:$0xff]  ;;  %v2772_v50 = vld [vmem:[%s5277_s1 + $0x1e0] sm:$0xff] }
  0x12   :  { %225 = vmatpush.msra.mxu0 %v2614_v32  ;;  %314 = vmatpush.msra.mxu1 %v2615_v33  ;;  %v2773_v51 = vld [vmem:[%s5277_s1 + $0x1e8] sm:$0xff]  ;;  %v3353_v52 = vld [vmem:[%s5278_s0 + $0x10] sm:$0xff]  ;;  %v3364_v53 = vld [vmem:[%s5278_s0 + $0x18] sm:$0xff] }
  0x13   :  { %481 = vmatpush.msra.mxu2 %v66_v34  ;;  %570 = vmatpush.msra.mxu3 %v67_v35  ;;  %v2770_v54 = vld [vmem:[%s5277_s1 + $0x1d0] sm:$0xff]  ;;  %v2771_v55 = vld [vmem:[%s5277_s1 + $0x1d8] sm:$0xff]  ;;  %v3383_v56 = vld [vmem:[%s5278_s0 + $0x20] sm:$0xff] }
  0x14   :  { %226 = vmatpush.msra.mxu0 %v2612_v36  ;;  %315 = vmatpush.msra.mxu1 %v2613_v37  ;;  %v3396_v57 = vld [vmem:[%s5278_s0 + $0x28] sm:$0xff]  ;;  %v2768_v58 = vld [vmem:[%s5277_s1 + $0x1c0] sm:$0xff]  ;;  %v3415_v60 = vld [vmem:[%s5278_s0 + $0x30] sm:$0xff] }
  0x15   :  { %482 = vmatpush.msra.mxu2 %v64_v38  ;;  %571 = vmatpush.msra.mxu3 %v65_v39  ;;  %v2769_v59 = vld [vmem:[%s5277_s1 + $0x1c8] sm:$0xff]  ;;  %v3428_v61 = vld [vmem:[%s5278_s0 + $0x38] sm:$0xff]  ;;  %v3441_v62 = vld [vmem:[%s5278_s0 + $0x40] sm:$0xff] }
  0x16   :  { %227 = vmatpush.msra.mxu0 %v2610_v40  ;;  %316 = vmatpush.msra.mxu1 %v2611_v41  ;;  %v2766_v63 = vld [vmem:[%s5277_s1 + $0x1b0] sm:$0xff]  ;;  %v2767_v0 = vld [vmem:[%s5277_s1 + $0x1b8] sm:$0xff]  ;;  %v3460_v1 = vld [vmem:[%s5278_s0 + $0x48] sm:$0xff] }
  0x17   :  { %483 = vmatpush.msra.mxu2 %v62_v42  ;;  %572 = vmatpush.msra.mxu3 %v63_v43  ;;  %v3473_v2 = vld [vmem:[%s5278_s0 + $0x50] sm:$0xff]  ;;  %v2764_v3 = vld [vmem:[%s5277_s1 + $0x1a0] sm:$0xff]  ;;  %v2765_v4 = vld [vmem:[%s5277_s1 + $0x1a8] sm:$0xff] }
  0x18   :  { %2633 = vmatmul.msk.f32.vlgmr.msra.gmra.mxu0 %vm132_vm1, %v2586_v44  ;;  %2658 = vmatmul.msk.f32.vlgmr.msra.gmra.mxu1 %vm132_vm1, %v2586_v44  ;;  %v3492_v5 = vld [vmem:[%s5278_s0 + $0x58] sm:$0xff]  ;;  %v3505_v6 = vld [vmem:[%s5278_s0 + $0x60] sm:$0xff]  ;;  %v2762_v7 = vld [vmem:[%s5277_s1 + $0x190] sm:$0xff] }
  0x19   :  { %2683 = vmatmul.msk.f32.vlgmr.msra.gmra.mxu2 %vm132_vm1, %v38_v45  ;;  %2708 = vmatmul.msk.f32.vlgmr.msra.gmra.mxu3 %vm132_vm1, %v38_v45  ;;  %v2763_v8 = vld [vmem:[%s5277_s1 + $0x198] sm:$0xff]  ;;  %v3524_v9 = vld [vmem:[%s5278_s0 + $0x68] sm:$0xff]  ;;  %v3537_v10 = vld [vmem:[%s5278_s0 + $0x70] sm:$0xff] }
  0x1a   :  { %2778 = vmatpush.msk.msrb.mxu0 %vm205_vm0, %v2776_v46  ;;  %2803 = vmatpush.msk.msrb.mxu1 %vm205_vm0, %v2777_v47  ;;  %v3550_v11 = vld [vmem:[%s5278_s0 + $0x78] sm:$0xff]  ;;  %v2760_v12 = vld [vmem:[%s5277_s1 + $0x180] sm:$0xff]  ;;  %v2761_v13 = vld [vmem:[%s5277_s1 + $0x188] sm:$0xff] }
  0x1b   :  { %v3569_v14 = vld [vmem:[%s5278_s0 + $0x80] sm:$0xff]  ;;  %v3582_v17 = vld [vmem:[%s5278_s0 + $0x88] sm:$0xff]  ;;  %v2758_v18 = vld [vmem:[%s5277_s1 + $0x170] sm:$0xff] }
  0x1c   :  { %778 = vmatpush.msrb.mxu0 %v2774_v48  ;;  %867 = vmatpush.msrb.mxu1 %v2775_v49  ;;  %v2759_v19 = vld [vmem:[%s5277_s1 + $0x178] sm:$0xff]  ;;  %v3605_v26 = vld [vmem:[%s5278_s0 + $0x90] sm:$0xff]  ;;  %v2870_v36 = vld [vmem:[%s5277_s1 + $0x2a0] sm:$0xff] }
  0x1d   :  { %v2872_v27 = vld [vmem:[%s5277_s1 + $0x2b0] sm:$0xf]  ;;  %v2873_v28 = vld [vmem:[%s5277_s1 + $0x2b8] sm:$0xf]  ;;  %v2871_v37 = vld [vmem:[%s5277_s1 + $0x2a8] sm:$0xff] }
  0x1e   :  { %779 = vmatpush.msrb.mxu0 %v2772_v50  ;;  %868 = vmatpush.msrb.mxu1 %v2773_v51  ;;  %v3624_v31 = vld [vmem:[%s5278_s0 + $0x98] sm:$0xff]  ;;  %v2756_v38 = vld [vmem:[%s5277_s1 + $0x160] sm:$0xff]  ;;  %v2757_v39 = vld [vmem:[%s5277_s1 + $0x168] sm:$0xff] }
  0x1f   :  { %2874 = vmatpush.msk.msrb.mxu2 %vm205_vm0, %v2872_v27  ;;  %2899 = vmatpush.msk.msrb.mxu3 %vm205_vm0, %v2873_v28  ;;  %v2868_v40 = vld [vmem:[%s5277_s1 + $0x290] sm:$0xff]  ;;  %v2869_v41 = vld [vmem:[%s5277_s1 + $0x298] sm:$0xff]  ;;  %v2866_v42 = vld [vmem:[%s5277_s1 + $0x280] sm:$0xff] }
  0x20   :  { %2634 = vmatmul.msk.f32.gmra.mxu0 %vm132_vm1, %v3353_v52  ;;  %2659 = vmatmul.msk.f32.gmra.mxu1 %vm132_vm1, %v3353_v52  ;;  %v2867_v43 = vld [vmem:[%s5277_s1 + $0x288] sm:$0xff]  ;;  %v2865_v45 = vld [vmem:[%s5277_s1 + $0x278] sm:$0xff]  ;;  %v2852_v27 = vld [vmem:[%s5277_s1 + $0x210] sm:$0xff] }
  0x21   :  { %2684 = vmatmul.msk.f32.gmra.mxu2 %vm132_vm1, %v2586_v44  ;;  %2709 = vmatmul.msk.f32.gmra.mxu3 %vm132_vm1, %v2586_v44  ;;  %v2864_v44 = vld [vmem:[%s5277_s1 + $0x270] sm:$0xff]  ;;  %v2853_v28 = vld [vmem:[%s5277_s1 + $0x218] sm:$0xff] }
  0x22   :  { %780 = vmatpush.msrb.mxu0 %v2770_v54  ;;  %869 = vmatpush.msrb.mxu1 %v2771_v55  ;;  %v3677_v54 = vld [vmem:[%s5278_s0 + $0xa0] sm:$0xff] }
  0x23   :  { %1130 = vmatpush.msrb.mxu2 %v2870_v36  ;;  %1219 = vmatpush.msrb.mxu3 %v2871_v37  ;;  %v2862_v55 = vld [vmem:[%s5277_s1 + $0x260] sm:$0xff] }
  0x24   :  { %781 = vmatpush.msrb.mxu0 %v2768_v58  ;;  %870 = vmatpush.msrb.mxu1 %v2769_v59  ;;  %v2863_v58 = vld [vmem:[%s5277_s1 + $0x268] sm:$0xff]  ;;  %v2860_v59 = vld [vmem:[%s5277_s1 + $0x250] sm:$0xff] }
  0x25   :  { %1131 = vmatpush.msrb.mxu2 %v2868_v40  ;;  %1220 = vmatpush.msrb.mxu3 %v2869_v41 }
  0x26   :  { %782 = vmatpush.msrb.mxu0 %v2766_v63  ;;  %871 = vmatpush.msrb.mxu1 %v2767_v0  ;;  %v2861_v63 = vld [vmem:[%s5277_s1 + $0x258] sm:$0xff]  ;;  %v2858_v0 = vld [vmem:[%s5277_s1 + $0x240] sm:$0xff] }
  0x27   :  { %1132 = vmatpush.msrb.mxu2 %v2866_v42  ;;  %1221 = vmatpush.msrb.mxu3 %v2867_v43 }
  0x28   :  { %2635 = vmatmul.msk.f32.gmra.mxu0 %vm132_vm1, %v3364_v53  ;;  %2660 = vmatmul.msk.f32.gmra.mxu1 %vm132_vm1, %v3364_v53 }
  0x29   :  { %2685 = vmatmul.msk.f32.gmra.mxu2 %vm132_vm1, %v3353_v52  ;;  %2710 = vmatmul.msk.f32.gmra.mxu3 %vm132_vm1, %v3353_v52 }
  0x2a   :  { %783 = vmatpush.msrb.mxu0 %v2764_v3  ;;  %872 = vmatpush.msrb.mxu1 %v2765_v4  ;;  %v2859_v3 = vld [vmem:[%s5277_s1 + $0x248] sm:$0xff] }
  0x2b   :  { %1133 = vmatpush.msrb.mxu2 %v2864_v44  ;;  %1222 = vmatpush.msrb.mxu3 %v2865_v45  ;;  %v3772_v45 = vld [vmem:[%s5278_s0 + $0xb8] sm:$0xff] }
  0x2c   :  { %784 = vmatpush.msrb.mxu0 %v2762_v7  ;;  %873 = vmatpush.msrb.mxu1 %v2763_v8 }
  0x2d   :  { %1134 = vmatpush.msrb.mxu2 %v2862_v55  ;;  %1223 = vmatpush.msrb.mxu3 %v2863_v58 }
  0x2e   :  { %785 = vmatpush.msrb.mxu0 %v2760_v12  ;;  %874 = vmatpush.msrb.mxu1 %v2761_v13 }
  0x2f   :  { %1135 = vmatpush.msrb.mxu2 %v2860_v59  ;;  %1224 = vmatpush.msrb.mxu3 %v2861_v63 }
  0x30   :  { %2636 = vmatmul.msk.f32.gmra.mxu0 %vm132_vm1, %v3383_v56  ;;  %2661 = vmatmul.msk.f32.gmra.mxu1 %vm132_vm1, %v3383_v56 }
  0x31   :  { %2686 = vmatmul.msk.f32.gmra.mxu2 %vm132_vm1, %v3364_v53  ;;  %2711 = vmatmul.msk.f32.gmra.mxu3 %vm132_vm1, %v3364_v53 }
  0x32   :  { %786 = vmatpush.msrb.mxu0 %v2758_v18  ;;  %875 = vmatpush.msrb.mxu1 %v2759_v19  ;;  %v2856_v18 = vld [vmem:[%s5277_s1 + $0x230] sm:$0xff]  ;;  %v2857_v19 = vld [vmem:[%s5277_s1 + $0x238] sm:$0xff] }
  0x33   :  { %1136 = vmatpush.msrb.mxu2 %v2858_v0  ;;  %1225 = vmatpush.msrb.mxu3 %v2859_v3  ;;  %v3795_v0 = vld [vmem:[%s5278_s0 + $0xc0] sm:$0xff] }
  0x34   :  { %787 = vmatpush.msrb.mxu0 %v2756_v38  ;;  %876 = vmatpush.msrb.mxu1 %v2757_v39  ;;  %v3755_v38 = vld [vmem:[%s5278_s0 + $0xb0] sm:$0xff] }
  0x35   :  { %1137 = vmatpush.msrb.mxu2 %v2856_v18  ;;  %1226 = vmatpush.msrb.mxu3 %v2857_v19 }
  0x38   :  { %2637 = vmatmul.msk.f32.gmra.mxu0 %vm132_vm1, %v3396_v57  ;;  %2662 = vmatmul.msk.f32.gmra.mxu1 %vm132_vm1, %v3396_v57 }
  0x39   :  { %2687 = vmatmul.msk.f32.gmra.mxu2 %vm132_vm1, %v3383_v56  ;;  %2712 = vmatmul.msk.f32.gmra.mxu3 %vm132_vm1, %v3383_v56 }
  0x40   :  { %2638 = vmatmul.msk.f32.gmra.mxu0 %vm132_vm1, %v3415_v60  ;;  %2663 = vmatmul.msk.f32.gmra.mxu1 %vm132_vm1, %v3415_v60 }
  0x41   :  { %2688 = vmatmul.msk.f32.gmra.mxu2 %vm132_vm1, %v3396_v57  ;;  %2713 = vmatmul.msk.f32.gmra.mxu3 %vm132_vm1, %v3396_v57 }
  0x48   :  { %2639 = vmatmul.msk.f32.gmra.mxu0 %vm132_vm1, %v3428_v61  ;;  %2664 = vmatmul.msk.f32.gmra.mxu1 %vm132_vm1, %v3428_v61 }
  0x49   :  { %2689 = vmatmul.msk.f32.gmra.mxu2 %vm132_vm1, %v3415_v60  ;;  %2714 = vmatmul.msk.f32.gmra.mxu3 %vm132_vm1, %v3415_v60 }
  0x50   :  { %2640 = vmatmul.msk.f32.gmra.mxu0 %vm132_vm1, %v3441_v62  ;;  %2665 = vmatmul.msk.f32.gmra.mxu1 %vm132_vm1, %v3441_v62 }
  0x51   :  { %2690 = vmatmul.msk.f32.gmra.mxu2 %vm132_vm1, %v3428_v61  ;;  %2715 = vmatmul.msk.f32.gmra.mxu3 %vm132_vm1, %v3428_v61 }
  0x58   :  { %2641 = vmatmul.msk.f32.gmra.mxu0 %vm132_vm1, %v3460_v1  ;;  %2666 = vmatmul.msk.f32.gmra.mxu1 %vm132_vm1, %v3460_v1 }
  0x59   :  { %2691 = vmatmul.msk.f32.gmra.mxu2 %vm132_vm1, %v3441_v62  ;;  %2716 = vmatmul.msk.f32.gmra.mxu3 %vm132_vm1, %v3441_v62 }
  0x60   :  { %2642 = vmatmul.msk.f32.gmra.mxu0 %vm132_vm1, %v3473_v2  ;;  %2667 = vmatmul.msk.f32.gmra.mxu1 %vm132_vm1, %v3473_v2 }
  0x61   :  { %2692 = vmatmul.msk.f32.gmra.mxu2 %vm132_vm1, %v3460_v1  ;;  %2717 = vmatmul.msk.f32.gmra.mxu3 %vm132_vm1, %v3460_v1 }
  0x68   :  { %2643 = vmatmul.msk.f32.gmra.mxu0 %vm132_vm1, %v3492_v5  ;;  %2668 = vmatmul.msk.f32.gmra.mxu1 %vm132_vm1, %v3492_v5 }
  0x69   :  { %2693 = vmatmul.msk.f32.gmra.mxu2 %vm132_vm1, %v3473_v2  ;;  %2718 = vmatmul.msk.f32.gmra.mxu3 %vm132_vm1, %v3473_v2 }
  0x70   :  { %2644 = vmatmul.msk.f32.gmra.mxu0 %vm132_vm1, %v3505_v6  ;;  %2669 = vmatmul.msk.f32.gmra.mxu1 %vm132_vm1, %v3505_v6 }
  0x71   :  { %2694 = vmatmul.msk.f32.gmra.mxu2 %vm132_vm1, %v3492_v5  ;;  %2719 = vmatmul.msk.f32.gmra.mxu3 %vm132_vm1, %v3492_v5 }
  0x78   :  { %2645 = vmatmul.msk.f32.gmra.mxu0 %vm132_vm1, %v3524_v9  ;;  %2670 = vmatmul.msk.f32.gmra.mxu1 %vm132_vm1, %v3524_v9 }
  0x79   :  { %2695 = vmatmul.msk.f32.gmra.mxu2 %vm132_vm1, %v3505_v6  ;;  %2720 = vmatmul.msk.f32.gmra.mxu3 %vm132_vm1, %v3505_v6 }
  0x80   :  { %2646 = vmatmul.msk.f32.gmra.mxu0 %vm132_vm1, %v3537_v10  ;;  %2671 = vmatmul.msk.f32.gmra.mxu1 %vm132_vm1, %v3537_v10 }
  0x81   :  { %2696 = vmatmul.msk.f32.gmra.mxu2 %vm132_vm1, %v3524_v9  ;;  %2721 = vmatmul.msk.f32.gmra.mxu3 %vm132_vm1, %v3524_v9 }
  0x88   :  { %2647 = vmatmul.msk.f32.gmra.mxu0 %vm132_vm1, %v3550_v11  ;;  %2672 = vmatmul.msk.f32.gmra.mxu1 %vm132_vm1, %v3550_v11 }
  0x89   :  { %2697 = vmatmul.msk.f32.gmra.mxu2 %vm132_vm1, %v3537_v10  ;;  %2722 = vmatmul.msk.f32.gmra.mxu3 %vm132_vm1, %v3537_v10 }
  0x90   :  { %2648 = vmatmul.msk.f32.gmra.mxu0 %vm132_vm1, %v3569_v14  ;;  %2673 = vmatmul.msk.f32.gmra.mxu1 %vm132_vm1, %v3569_v14 }
  0x91   :  { %2698 = vmatmul.msk.f32.gmra.mxu2 %vm132_vm1, %v3550_v11  ;;  %2723 = vmatmul.msk.f32.gmra.mxu3 %vm132_vm1, %v3550_v11 }
  0x95   :  { %v229_v15 = vpop.f32.mrf.mxu0  ;;  %v318_v16 = vpop.f32.mrf.mxu1 }
  0x98   :  { %2649 = vmatmul.msk.f32.gmra.mxu0 %vm132_vm1, %v3582_v17  ;;  %2674 = vmatmul.msk.f32.gmra.mxu1 %vm132_vm1, %v3582_v17 }
  0x99   :  { %2699 = vmatmul.msk.f32.gmra.mxu2 %vm132_vm1, %v3569_v14  ;;  %2724 = vmatmul.msk.f32.gmra.mxu3 %vm132_vm1, %v3569_v14 }
  0x9c   :  { %v485_v20 = vpop.f32.mrf.mxu2  ;;  %v574_v21 = vpop.f32.mrf.mxu3 }
  0x9d   :  { %v3598_v22 = vadd.f32 %v485_v20, %v229_v15  ;;  %v3600_v23 = vadd.f32 %v574_v21, %v318_v16  ;;  %v232_v24 = vpop.f32.mrf.mxu0  ;;  %v321_v25 = vpop.f32.mrf.mxu1  ;;  %v3712_v16 = vld [vmem:[%s5278_s0 + $0xa8] sm:$0xff]  ;;  %v2854_v20 = vld [vmem:[%s5277_s1 + $0x220] sm:$0xff] }
  0x9e   :  { %v2855_v21 = vld [vmem:[%s5277_s1 + $0x228] sm:$0xff]  ;;  %1138 = vmatpush.msrb.mxu2 %v2854_v20 }
  0x9f   :  { %5290 = vst [vmem:[#allocation2_spill] sm:$0xff] %v3600_v23  ;;  %1227 = vmatpush.msrb.mxu3 %v2855_v21 }
  0xa0   :  { %2650 = vmatmul.msk.f32.gmra.mxu0 %vm132_vm1, %v3605_v26  ;;  %2675 = vmatmul.msk.f32.gmra.mxu1 %vm132_vm1, %v3605_v26 }
  0xa1   :  { %2700 = vmatmul.msk.f32.gmra.mxu2 %vm132_vm1, %v3582_v17  ;;  %2725 = vmatmul.msk.f32.gmra.mxu3 %vm132_vm1, %v3582_v17 }
  0xa2   :  { %1139 = vmatpush.msrb.mxu2 %v2852_v27  ;;  %1228 = vmatpush.msrb.mxu3 %v2853_v28  ;;  %v2964_v28 = vld [vmem:[%s5277_s1 + $0x340] sm:$0xff] }
  0xa4   :  { %v488_v29 = vpop.f32.mrf.mxu2  ;;  %v577_v30 = vpop.f32.mrf.mxu3 }
  0xa5   :  { %v3628_v32 = vadd.f32 %v488_v29, %v232_v24  ;;  %v3630_v33 = vadd.f32 %v577_v30, %v321_v25  ;;  %v235_v34 = vpop.f32.mrf.mxu0  ;;  %v324_v35 = vpop.f32.mrf.mxu1  ;;  %v2968_v24 = vld [vmem:[%s5277_s1 + $0x360] sm:$0xf]  ;;  %v2969_v25 = vld [vmem:[%s5277_s1 + $0x368] sm:$0xf] }
  0xa6   :  { %2970 = vmatpush.msk.msra.mxu0 %vm205_vm0, %v2968_v24  ;;  %2995 = vmatpush.msk.msra.mxu1 %vm205_vm0, %v2969_v25 }
  0xa8   :  { %2651 = vmatmul.msk.f32.gmra.mxu0 %vm132_vm1, %v3624_v31  ;;  %2676 = vmatmul.msk.f32.gmra.mxu1 %vm132_vm1, %v3624_v31 }
  0xa9   :  { %2701 = vmatmul.msk.f32.gmra.mxu2 %vm132_vm1, %v3605_v26  ;;  %2726 = vmatmul.msk.f32.gmra.mxu3 %vm132_vm1, %v3605_v26 }
  0xac   :  { %v491_v46 = vpop.f32.mrf.mxu2  ;;  %v580_v47 = vpop.f32.mrf.mxu3 }
  0xad   :  { %v3670_v48 = vadd.f32 %v491_v46, %v235_v34  ;;  %v3672_v49 = vadd.f32 %v580_v47, %v324_v35  ;;  %v238_v50 = vpop.f32.mrf.mxu0  ;;  %v327_v51 = vpop.f32.mrf.mxu1  ;;  %v2966_v46 = vld [vmem:[%s5277_s1 + $0x350] sm:$0xff]  ;;  %v2967_v47 = vld [vmem:[%s5277_s1 + $0x358] sm:$0xff] }
  0xae   :  { %1482 = vmatpush.msra.mxu0 %v2966_v46  ;;  %1571 = vmatpush.msra.mxu1 %v2967_v47 }
  0xb0   :  { %2652 = vmatmul.msk.f32.gmra.mxu0 %vm132_vm1, %v3677_v54  ;;  %2677 = vmatmul.msk.f32.gmra.mxu1 %vm132_vm1, %v3677_v54 }
  0xb1   :  { %2702 = vmatmul.msk.f32.gmra.mxu2 %vm132_vm1, %v3624_v31  ;;  %2727 = vmatmul.msk.f32.gmra.mxu3 %vm132_vm1, %v3624_v31 }
  0xb2   :  { %1483 = vmatpush.msra.mxu0 %v2964_v28 }
  0xb4   :  { %v494_v4 = vpop.f32.mrf.mxu2  ;;  %v583_v7 = vpop.f32.mrf.mxu3 }
  0xb5   :  { %v3705_v8 = vadd.f32 %v494_v4, %v238_v50  ;;  %v3707_v12 = vadd.f32 %v583_v7, %v327_v51  ;;  %v241_v13 = vpop.f32.mrf.mxu0  ;;  %v330_v15 = vpop.f32.mrf.mxu1 }
  0xb8   :  { %2653 = vmatmul.msk.f32.gmra.mxu0 %vm132_vm1, %v3712_v16  ;;  %2678 = vmatmul.msk.f32.gmra.mxu1 %vm132_vm1, %v3712_v16 }
  0xb9   :  { %2703 = vmatmul.msk.f32.gmra.mxu2 %vm132_vm1, %v3677_v54  ;;  %2728 = vmatmul.msk.f32.gmra.mxu3 %vm132_vm1, %v3677_v54 }
  0xbc   :  { %v497_v29 = vpop.f32.mrf.mxu2  ;;  %v586_v30 = vpop.f32.mrf.mxu3 }
  0xbd   :  { %v3748_v34 = vadd.f32 %v497_v29, %v241_v13  ;;  %v3750_v35 = vadd.f32 %v586_v30, %v330_v15  ;;  %v244_v36 = vpop.f32.mrf.mxu0  ;;  %v333_v37 = vpop.f32.mrf.mxu1 }
  0xc0   :  { %2654 = vmatmul.msk.f32.gmra.mxu0 %vm132_vm1, %v3755_v38  ;;  %2679 = vmatmul.msk.f32.gmra.mxu1 %vm132_vm1, %v3755_v38 }
  0xc1   :  { %2704 = vmatmul.msk.f32.gmra.mxu2 %vm132_vm1, %v3712_v16  ;;  %2729 = vmatmul.msk.f32.gmra.mxu3 %vm132_vm1, %v3712_v16 }
  0xc4   :  { %v500_v39 = vpop.f32.mrf.mxu2  ;;  %v589_v40 = vpop.f32.mrf.mxu3 }
  0xc5   :  { %v3765_v41 = vadd.f32 %v500_v39, %v244_v36  ;;  %v3767_v42 = vadd.f32 %v589_v40, %v333_v37  ;;  %v247_v43 = vpop.f32.mrf.mxu0  ;;  %v336_v44 = vpop.f32.mrf.mxu1 }
  0xc8   :  { %2655 = vmatmul.msk.f32.gmra.mxu0 %vm132_vm1, %v3772_v45  ;;  %2680 = vmatmul.msk.f32.gmra.mxu1 %vm132_vm1, %v3772_v45 }
  0xc9   :  { %2705 = vmatmul.msk.f32.gmra.mxu2 %vm132_vm1, %v3755_v38  ;;  %2730 = vmatmul.msk.f32.gmra.mxu3 %vm132_vm1, %v3755_v38 }
  0xcc   :  { %v503_v50 = vpop.f32.mrf.mxu2  ;;  %v592_v51 = vpop.f32.mrf.mxu3 }
  0xcd   :  { %v3788_v55 = vadd.f32 %v503_v50, %v247_v43  ;;  %v3790_v58 = vadd.f32 %v592_v51, %v336_v44  ;;  %v250_v59 = vpop.f32.mrf.mxu0  ;;  %v339_v63 = vpop.f32.mrf.mxu1  ;;  %v2962_v51 = vld [vmem:[%s5277_s1 + $0x330] sm:$0xff] }
  0xce   :  { %1484 = vmatpush.msra.mxu0 %v2962_v51 }
  0xd0   :  { %2656 = vmatmul.msk.f32.gmra.mxu0 %vm132_vm1, %v3795_v0  ;;  %2681 = vmatmul.msk.f32.gmra.mxu1 %vm132_vm1, %v3795_v0 }
  0xd1   :  { %2706 = vmatmul.msk.f32.gmra.mxu2 %vm132_vm1, %v3772_v45  ;;  %2731 = vmatmul.msk.f32.gmra.mxu3 %vm132_vm1, %v3772_v45 }
  0xd4   :  { %v506_v3 = vpop.f32.mrf.mxu2  ;;  %v595_v4 = vpop.f32.mrf.mxu3 }
  0xd5   :  { %v3805_v7 = vadd.f32 %v506_v3, %v250_v59  ;;  %v3807_v13 = vadd.f32 %v595_v4, %v339_v63  ;;  %v253_v15 = vpop.f32.mrf.mxu0  ;;  %v342_v18 = vpop.f32.mrf.mxu1 }
  0xd8   :  { %2779 = vmatmul.msk.f32.vlgmr.msrb.gmra.mxu0 %vm132_vm1, %v3353_v52  ;;  %2804 = vmatmul.msk.f32.vlgmr.msrb.gmra.mxu1 %vm132_vm1, %v3353_v52  ;;  %v2965_v52 = vld [vmem:[%s5277_s1 + $0x348] sm:$0xff] }
  0xd9   :  { %2875 = vmatmul.msk.f32.vlgmr.msrb.gmra.mxu2 %vm132_vm1, %v3364_v53  ;;  %2900 = vmatmul.msk.f32.vlgmr.msrb.gmra.mxu3 %vm132_vm1, %v3364_v53 }
  0xda   :  { %1572 = vmatpush.msra.mxu1 %v2965_v52  ;;  %v2960_v52 = vld [vmem:[%s5277_s1 + $0x320] sm:$0xff] }
  0xdb   :  { %1485 = vmatpush.msra.mxu0 %v2960_v52 }
  0xdc   :  { %v509_v19 = vpop.f32.mrf.mxu2  ;;  %v598_v20 = vpop.f32.mrf.mxu3 }
  0xdd   :  { %v3817_v21 = vadd.f32 %v509_v19, %v253_v15  ;;  %v3819_v24 = vadd.f32 %v598_v20, %v342_v18  ;;  %v256_v25 = vpop.f32.mrf.mxu0  ;;  %v345_v27 = vpop.f32.mrf.mxu1 }
  0xe0   :  { %2780 = vmatmul.msk.f32.gmra.mxu0 %vm132_vm1, %v3364_v53  ;;  %2805 = vmatmul.msk.f32.gmra.mxu1 %vm132_vm1, %v3364_v53 }
  0xe1   :  { %2876 = vmatmul.msk.f32.gmra.mxu2 %vm132_vm1, %v3383_v56  ;;  %2901 = vmatmul.msk.f32.gmra.mxu3 %vm132_vm1, %v3383_v56 }
  0xe4   :  { %v512_v29 = vpop.f32.mrf.mxu2  ;;  %v601_v30 = vpop.f32.mrf.mxu3 }
  0xe5   :  { %v3835_v36 = vadd.f32 %v512_v29, %v256_v25  ;;  %v3837_v37 = vadd.f32 %v601_v30, %v345_v27  ;;  %v259_v39 = vpop.f32.mrf.mxu0  ;;  %v348_v40 = vpop.f32.mrf.mxu1 }
  0xe8   :  { %2781 = vmatmul.msk.f32.gmra.mxu0 %vm132_vm1, %v3383_v56  ;;  %2806 = vmatmul.msk.f32.gmra.mxu1 %vm132_vm1, %v3383_v56  ;;  %v2963_v56 = vld [vmem:[%s5277_s1 + $0x338] sm:$0xff] }
  0xe9   :  { %2877 = vmatmul.msk.f32.gmra.mxu2 %vm132_vm1, %v3396_v57  ;;  %2902 = vmatmul.msk.f32.gmra.mxu3 %vm132_vm1, %v3396_v57 }
  0xea   :  { %1573 = vmatpush.msra.mxu1 %v2963_v56 }
  0xec   :  { %v515_v53 = vpop.f32.mrf.mxu2  ;;  %v604_v43 = vpop.f32.mrf.mxu3 }
  0xed   :  { %v3847_v44 = vadd.f32 %v515_v53, %v259_v39  ;;  %v3849_v46 = vadd.f32 %v604_v43, %v348_v40  ;;  %v262_v47 = vpop.f32.mrf.mxu0  ;;  %v351_v50 = vpop.f32.mrf.mxu1 }
  0xf0   :  { %2782 = vmatmul.msk.f32.gmra.mxu0 %vm132_vm1, %v3396_v57  ;;  %2807 = vmatmul.msk.f32.gmra.mxu1 %vm132_vm1, %v3396_v57 }
  0xf1   :  { %2878 = vmatmul.msk.f32.gmra.mxu2 %vm132_vm1, %v3415_v60  ;;  %2903 = vmatmul.msk.f32.gmra.mxu3 %vm132_vm1, %v3415_v60 }
  0xf4   :  { %v518_v59 = vpop.f32.mrf.mxu2  ;;  %v607_v63 = vpop.f32.mrf.mxu3 }
  0xf5   :  { %v3865_v3 = vadd.f32 %v518_v59, %v262_v47  ;;  %v3867_v4 = vadd.f32 %v607_v63, %v351_v50  ;;  %v265_v15 = vpop.f32.mrf.mxu0  ;;  %v354_v18 = vpop.f32.mrf.mxu1  ;;  %v2959_v63 = vld [vmem:[%s5277_s1 + $0x318] sm:$0xff] }
  0xf7   :  { %5291 = vst [vmem:[#allocation3_spill] sm:$0xff] %v3865_v3 }
  0xf8   :  { %5292 = vst [vmem:[#allocation4_spill] sm:$0xff] %v3867_v4  ;;  %2783 = vmatmul.msk.f32.gmra.mxu0 %vm132_vm1, %v3415_v60  ;;  %2808 = vmatmul.msk.f32.gmra.mxu1 %vm132_vm1, %v3415_v60  ;;  %v2961_v60 = vld [vmem:[%s5277_s1 + $0x328] sm:$0xff] }
  0xf9   :  { %2879 = vmatmul.msk.f32.gmra.mxu2 %vm132_vm1, %v3428_v61  ;;  %2904 = vmatmul.msk.f32.gmra.mxu3 %vm132_vm1, %v3428_v61 }
  0xfa   :  { %1574 = vmatpush.msra.mxu1 %v2961_v60 }
  0xfc   :  { %v521_v57 = vpop.f32.mrf.mxu2  ;;  %v610_v19 = vpop.f32.mrf.mxu3  ;;  %1575 = vmatpush.msra.mxu1 %v2959_v63 }
  0xfd   :  { %v3877_v20 = vadd.f32 %v521_v57, %v265_v15  ;;  %v3879_v25 = vadd.f32 %v610_v19, %v354_v18  ;;  %v268_v27 = vpop.f32.mrf.mxu0  ;;  %v357_v28 = vpop.f32.mrf.mxu1 }
  0xff   :  { %5293 = vst [vmem:[#allocation5_spill] sm:$0xff] %v3877_v20 }
 0x100   :  { %5294 = vst [vmem:[#allocation6_spill] sm:$0xff] %v3879_v25  ;;  %2784 = vmatmul.msk.f32.gmra.mxu0 %vm132_vm1, %v3428_v61  ;;  %2809 = vmatmul.msk.f32.gmra.mxu1 %vm132_vm1, %v3428_v61  ;;  %v2939_v25 = vld [vmem:[%s5278_s0 + $0x98] sm:$0xff] }
 0x101   :  { %2880 = vmatmul.msk.f32.gmra.mxu2 %vm132_vm1, %v3441_v62  ;;  %2905 = vmatmul.msk.f32.gmra.mxu3 %vm132_vm1, %v3441_v62 }
 0x104   :  { %v524_v29 = vpop.f32.mrf.mxu2  ;;  %v613_v30 = vpop.f32.mrf.mxu3 }
 0x105   :  { %v3895_v39 = vadd.f32 %v524_v29, %v268_v27  ;;  %v3897_v40 = vadd.f32 %v613_v30, %v357_v28  ;;  %v271_v53 = vpop.f32.mrf.mxu0  ;;  %v360_v43 = vpop.f32.mrf.mxu1 }
 0x107   :  { %5295 = vst [vmem:[#allocation7_spill] sm:$0xff] %v3895_v39 }
 0x108   :  { %5296 = vst [vmem:[#allocation8_spill] sm:$0xff] %v3897_v40  ;;  %2785 = vmatmul.msk.f32.gmra.mxu0 %vm132_vm1, %v3441_v62  ;;  %2810 = vmatmul.msk.f32.gmra.mxu1 %vm132_vm1, %v3441_v62  ;;  %v2958_v62 = vld [vmem:[%s5277_s1 + $0x310] sm:$0xff] }
 0x109   :  { %2881 = vmatmul.msk.f32.gmra.mxu2 %vm132_vm1, %v3460_v1  ;;  %2906 = vmatmul.msk.f32.gmra.mxu3 %vm132_vm1, %v3460_v1 }
 0x10a   :  { %1486 = vmatpush.msra.mxu0 %v2958_v62 }
 0x10c   :  { %v527_v61 = vpop.f32.mrf.mxu2  ;;  %v616_v47 = vpop.f32.mrf.mxu3 }
 0x10d   :  { %v3907_v50 = vadd.f32 %v527_v61, %v271_v53  ;;  %v3909_v51 = vadd.f32 %v616_v47, %v360_v43  ;;  %v274_v56 = vpop.f32.mrf.mxu0  ;;  %v363_v59 = vpop.f32.mrf.mxu1  ;;  %v2957_v43 = vld [vmem:[%s5277_s1 + $0x308] sm:$0xff] }
 0x10e   :  { %1576 = vmatpush.msra.mxu1 %v2957_v43 }
 0x10f   :  { %5297 = vst [vmem:[#allocation9_spill] sm:$0xff] %v3907_v50 }
 0x110   :  { %5298 = vst [vmem:[#allocation10_spill] sm:$0xff] %v3909_v51  ;;  %2786 = vmatmul.msk.f32.gmra.mxu0 %vm132_vm1, %v3460_v1  ;;  %2811 = vmatmul.msk.f32.gmra.mxu1 %vm132_vm1, %v3460_v1 }
 0x111   :  { %2882 = vmatmul.msk.f32.gmra.mxu2 %vm132_vm1, %v3473_v2  ;;  %2907 = vmatmul.msk.f32.gmra.mxu3 %vm132_vm1, %v3473_v2 }
 0x114   :  { %v530_v15 = vpop.f32.mrf.mxu2  ;;  %v619_v18 = vpop.f32.mrf.mxu3 }
 0x115   :  { %v3925_v57 = vadd.f32 %v530_v15, %v274_v56  ;;  %v3927_v1 = vadd.f32 %v619_v18, %v363_v59  ;;  %v277_v19 = vpop.f32.mrf.mxu0  ;;  %v366_v27 = vpop.f32.mrf.mxu1 }
 0x117   :  { %5299 = vst [vmem:[#allocation11_spill] sm:$0xff] %v3925_v57 }
 0x118   :  { %5300 = vst [vmem:[#allocation12_spill] sm:$0xff] %v3927_v1  ;;  %2787 = vmatmul.msk.f32.gmra.mxu0 %vm132_vm1, %v3473_v2  ;;  %2812 = vmatmul.msk.f32.gmra.mxu1 %vm132_vm1, %v3473_v2  ;;  %v2956_v2 = vld [vmem:[%s5277_s1 + $0x300] sm:$0xff] }
 0x119   :  { %2883 = vmatmul.msk.f32.gmra.mxu2 %vm132_vm1, %v3492_v5  ;;  %2908 = vmatmul.msk.f32.gmra.mxu3 %vm132_vm1, %v3492_v5 }
 0x11a   :  { %1487 = vmatpush.msra.mxu0 %v2956_v2 }
 0x11c   :  { %v533_v28 = vpop.f32.mrf.mxu2  ;;  %v622_v52 = vpop.f32.mrf.mxu3 }
 0x11d   :  { %v3937_v60 = vadd.f32 %v533_v28, %v277_v19  ;;  %v3939_v29 = vadd.f32 %v622_v52, %v366_v27  ;;  %v280_v30 = vpop.f32.mrf.mxu0  ;;  %v369_v53 = vpop.f32.mrf.mxu1 }
 0x11f   :  { %5301 = vst [vmem:[#allocation13_spill] sm:$0xff] %v3937_v60 }
 0x120   :  { %5302 = vst [vmem:[#allocation14_spill] sm:$0xff] %v3939_v29  ;;  %2788 = vmatmul.msk.f32.gmra.mxu0 %vm132_vm1, %v3492_v5  ;;  %2813 = vmatmul.msk.f32.gmra.mxu1 %vm132_vm1, %v3492_v5 }
 0x121   :  { %2884 = vmatmul.msk.f32.gmra.mxu2 %vm132_vm1, %v3505_v6  ;;  %2909 = vmatmul.msk.f32.gmra.mxu3 %vm132_vm1, %v3505_v6 }
 0x124   :  { %v536_v61 = vpop.f32.mrf.mxu2  ;;  %v625_v47 = vpop.f32.mrf.mxu3 }
 0x125   :  { %v3955_v56 = vadd.f32 %v536_v61, %v280_v30  ;;  %v3957_v5 = vadd.f32 %v625_v47, %v369_v53  ;;  %v283_v59 = vpop.f32.mrf.mxu0  ;;  %v372_v62 = vpop.f32.mrf.mxu1  ;;  %v2954_v61 = vld [vmem:[%s5277_s1 + $0x2f0] sm:$0xff] }
 0x126   :  { %1488 = vmatpush.msra.mxu0 %v2954_v61  ;;  %v2952_v61 = vld [vmem:[%s5277_s1 + $0x2e0] sm:$0xff] }
 0x127   :  { %5303 = vst [vmem:[#allocation15_spill] sm:$0xff] %v3955_v56 }
 0x128   :  { %5304 = vst [vmem:[#allocation16_spill] sm:$0xff] %v3957_v5  ;;  %2789 = vmatmul.msk.f32.gmra.mxu0 %vm132_vm1, %v3505_v6  ;;  %2814 = vmatmul.msk.f32.gmra.mxu1 %vm132_vm1, %v3505_v6 }
 0x129   :  { %2885 = vmatmul.msk.f32.gmra.mxu2 %vm132_vm1, %v3524_v9  ;;  %2910 = vmatmul.msk.f32.gmra.mxu3 %vm132_vm1, %v3524_v9 }
 0x12a   :  { %1489 = vmatpush.msra.mxu0 %v2952_v61 }
 0x12c   :  { %v539_v63 = vpop.f32.mrf.mxu2  ;;  %v628_v15 = vpop.f32.mrf.mxu3 }
 0x12d   :  { %v3967_v18 = vadd.f32 %v539_v63, %v283_v59  ;;  %v3969_v19 = vadd.f32 %v628_v15, %v372_v62  ;;  %v286_v27 = vpop.f32.mrf.mxu0  ;;  %v375_v28 = vpop.f32.mrf.mxu1 }
 0x12f   :  { %5305 = vst [vmem:[#allocation17_spill] sm:$0xff] %v3967_v18 }
 0x130   :  { %5306 = vst [vmem:[#allocation18_spill] sm:$0xff] %v3969_v19  ;;  %2790 = vmatmul.msk.f32.gmra.mxu0 %vm132_vm1, %v3524_v9  ;;  %2815 = vmatmul.msk.f32.gmra.mxu1 %vm132_vm1, %v3524_v9  ;;  %v2955_v9 = vld [vmem:[%s5277_s1 + $0x2f8] sm:$0xff] }
 0x131   :  { %2886 = vmatmul.msk.f32.gmra.mxu2 %vm132_vm1, %v3537_v10  ;;  %2911 = vmatmul.msk.f32.gmra.mxu3 %vm132_vm1, %v3537_v10 }
 0x132   :  { %1577 = vmatpush.msra.mxu1 %v2955_v9 }
 0x134   :  { %v542_v6 = vpop.f32.mrf.mxu2  ;;  %v631_v52 = vpop.f32.mrf.mxu3 }
 0x135   :  { %v3979_v30 = vadd.f32 %v542_v6, %v286_v27  ;;  %v3981_v53 = vadd.f32 %v631_v52, %v375_v28  ;;  %v289_v2 = vpop.f32.mrf.mxu0  ;;  %v378_v43 = vpop.f32.mrf.mxu1 }
 0x137   :  { %5307 = vst [vmem:[#allocation19_spill] sm:$0xff] %v3979_v30 }
 0x138   :  { %5308 = vst [vmem:[#allocation20_spill] sm:$0xff] %v3981_v53  ;;  %2791 = vmatmul.msk.f32.gmra.mxu0 %vm132_vm1, %v3537_v10  ;;  %2816 = vmatmul.msk.f32.gmra.mxu1 %vm132_vm1, %v3537_v10 }
 0x139   :  { %2887 = vmatmul.msk.f32.gmra.mxu2 %vm132_vm1, %v3550_v11  ;;  %2912 = vmatmul.msk.f32.gmra.mxu3 %vm132_vm1, %v3550_v11 }
 0x13c   :  { %v545_v47 = vpop.f32.mrf.mxu2  ;;  %v634_v59 = vpop.f32.mrf.mxu3 }
 0x13d   :  { %v3997_v62 = vadd.f32 %v545_v47, %v289_v2  ;;  %v3999_v63 = vadd.f32 %v634_v59, %v378_v43  ;;  %v292_v15 = vpop.f32.mrf.mxu0  ;;  %v381_v27 = vpop.f32.mrf.mxu1 }
 0x13f   :  { %5309 = vst [vmem:[#allocation21_spill] sm:$0xff] %v3997_v62  ;;  %v2925_v62 = vld [vmem:[%s5278_s0 + $0x28] sm:$0xff] }
 0x140   :  { %5310 = vst [vmem:[#allocation22_spill] sm:$0xff] %v3999_v63  ;;  %2792 = vmatmul.msk.f32.gmra.mxu0 %vm132_vm1, %v3550_v11  ;;  %2817 = vmatmul.msk.f32.gmra.mxu1 %vm132_vm1, %v3550_v11  ;;  %v2953_v11 = vld [vmem:[%s5277_s1 + $0x2e8] sm:$0xff] }
 0x141   :  { %2888 = vmatmul.msk.f32.gmra.mxu2 %vm132_vm1, %v3569_v14  ;;  %2913 = vmatmul.msk.f32.gmra.mxu3 %vm132_vm1, %v3569_v14 }
 0x142   :  { %1578 = vmatpush.msra.mxu1 %v2953_v11 }
 0x144   :  { %v548_v10 = vpop.f32.mrf.mxu2  ;;  %v637_v28 = vpop.f32.mrf.mxu3 }
 0x145   :  { %v4009_v6 = vadd.f32 %v548_v10, %v292_v15  ;;  %v4011_v52 = vadd.f32 %v637_v28, %v381_v27  ;;  %v295_v2 = vpop.f32.mrf.mxu0  ;;  %v384_v43 = vpop.f32.mrf.mxu1 }
 0x147   :  { %5311 = vst [vmem:[#allocation23_spill] sm:$0xff] %v4009_v6 }
 0x148   :  { %5312 = vst [vmem:[#allocation24_spill] sm:$0xff] %v4011_v52  ;;  %2793 = vmatmul.msk.f32.gmra.mxu0 %vm132_vm1, %v3569_v14  ;;  %2818 = vmatmul.msk.f32.gmra.mxu1 %vm132_vm1, %v3569_v14  ;;  %v2924_v52 = vld [vmem:[%s5278_s0 + $0x20] sm:$0xff] }
 0x149   :  { %2889 = vmatmul.msk.f32.gmra.mxu2 %vm132_vm1, %v3582_v17  ;;  %2914 = vmatmul.msk.f32.gmra.mxu3 %vm132_vm1, %v3582_v17 }
 0x14c   :  { %v551_v9 = vpop.f32.mrf.mxu2  ;;  %v640_v47 = vpop.f32.mrf.mxu3 }
 0x14d   :  { %v4027_v59 = vadd.f32 %v551_v9, %v295_v2  ;;  %v4029_v15 = vadd.f32 %v640_v47, %v384_v43  ;;  %v298_v27 = vpop.f32.mrf.mxu0  ;;  %v387_v10 = vpop.f32.mrf.mxu1  ;;  %v2951_v9 = vld [vmem:[%s5277_s1 + $0x2d8] sm:$0xff] }
 0x14e   :  { %1579 = vmatpush.msra.mxu1 %v2951_v9 }
 0x14f   :  { %5313 = vst [vmem:[#allocation25_spill] sm:$0xff] %v4027_v59 }
 0x150   :  { %5314 = vst [vmem:[#allocation26_spill] sm:$0xff] %v4029_v15  ;;  %2794 = vmatmul.msk.f32.gmra.mxu0 %vm132_vm1, %v3582_v17  ;;  %2819 = vmatmul.msk.f32.gmra.mxu1 %vm132_vm1, %v3582_v17  ;;  %v2950_v17 = vld [vmem:[%s5277_s1 + $0x2d0] sm:$0xff] }
 0x151   :  { %2890 = vmatmul.msk.f32.gmra.mxu2 %vm132_vm1, %v3605_v26  ;;  %2915 = vmatmul.msk.f32.gmra.mxu3 %vm132_vm1, %v3605_v26  ;;  %v4151_v15 = vld [vmem:[%s5278_s0 + $0xd0] sm:$0xff] }
 0x152   :  { %1490 = vmatpush.msra.mxu0 %v2950_v17 }
 0x154   :  { %v554_v14 = vpop.f32.mrf.mxu2  ;;  %v643_v28 = vpop.f32.mrf.mxu3 }
 0x155   :  { %v4039_v2 = vadd.f32 %v554_v14, %v298_v27  ;;  %v4041_v43 = vadd.f32 %v643_v28, %v387_v10  ;;  %v4043_v61 = vpop.f32.mrf.mxu0  ;;  %v4045_v11 = vpop.f32.mrf.mxu1  ;;  %v2948_v14 = vld [vmem:[%s5277_s1 + $0x2c0] sm:$0xff]  ;;  %v2949_v28 = vld [vmem:[%s5277_s1 + $0x2c8] sm:$0xff] }
 0x156   :  { %5317 = vst [vmem:[#allocation29_spill] sm:$0xff] %v4045_v11  ;;  %1491 = vmatpush.msra.mxu0 %v2948_v14  ;;  %1580 = vmatpush.msra.mxu1 %v2949_v28 }
 0x157   :  { %5315 = vst [vmem:[#allocation27_spill] sm:$0xff] %v4039_v2 }
 0x158   :  { %5316 = vst [vmem:[#allocation28_spill] sm:$0xff] %v4041_v43  ;;  %2795 = vmatmul.msk.f32.gmra.mxu0 %vm132_vm1, %v3605_v26  ;;  %2820 = vmatmul.msk.f32.gmra.mxu1 %vm132_vm1, %v3605_v26  ;;  %v4134_v43 = vld [vmem:[%s5278_s0 + $0xc8] sm:$0xff] }
 0x159   :  { %2891 = vmatmul.msk.f32.gmra.mxu2 %vm132_vm1, %v3624_v31  ;;  %2916 = vmatmul.msk.f32.gmra.mxu3 %vm132_vm1, %v3624_v31 }
 0x15d   :  { %v4061_v47 = vpop.f32.mrf.mxu0  ;;  %v4063_v27 = vpop.f32.mrf.mxu1 }
 0x160   :  { %2796 = vmatmul.msk.f32.gmra.mxu0 %vm132_vm1, %v3624_v31  ;;  %2821 = vmatmul.msk.f32.gmra.mxu1 %vm132_vm1, %v3624_v31 }
 0x161   :  { %2892 = vmatmul.msk.f32.gmra.mxu2 %vm132_vm1, %v3677_v54  ;;  %2917 = vmatmul.msk.f32.gmra.mxu3 %vm132_vm1, %v3677_v54 }
 0x165   :  { %v4073_v26 = vpop.f32.mrf.mxu0  ;;  %v4075_v10 = vpop.f32.mrf.mxu1 }
 0x168   :  { %2797 = vmatmul.msk.f32.gmra.mxu0 %vm132_vm1, %v3677_v54  ;;  %2822 = vmatmul.msk.f32.gmra.mxu1 %vm132_vm1, %v3677_v54 }
 0x169   :  { %2893 = vmatmul.msk.f32.gmra.mxu2 %vm132_vm1, %v3712_v16  ;;  %2918 = vmatmul.msk.f32.gmra.mxu3 %vm132_vm1, %v3712_v16 }
 0x16d   :  { %v4091_v31 = vpop.f32.mrf.mxu0  ;;  %v4093_v17 = vpop.f32.mrf.mxu1 }
 0x170   :  { %2798 = vmatmul.msk.f32.gmra.mxu0 %vm132_vm1, %v3712_v16  ;;  %2823 = vmatmul.msk.f32.gmra.mxu1 %vm132_vm1, %v3712_v16 }
 0x171   :  { %2894 = vmatmul.msk.f32.gmra.mxu2 %vm132_vm1, %v3755_v38  ;;  %2919 = vmatmul.msk.f32.gmra.mxu3 %vm132_vm1, %v3755_v38 }
 0x175   :  { %v4103_v54 = vpop.f32.mrf.mxu0  ;;  %v4105_v9 = vpop.f32.mrf.mxu1 }
 0x178   :  { %2799 = vmatmul.msk.f32.gmra.mxu0 %vm132_vm1, %v3755_v38  ;;  %2824 = vmatmul.msk.f32.gmra.mxu1 %vm132_vm1, %v3755_v38 }
 0x179   :  { %2895 = vmatmul.msk.f32.gmra.mxu2 %vm132_vm1, %v3772_v45  ;;  %2920 = vmatmul.msk.f32.gmra.mxu3 %vm132_vm1, %v3772_v45 }
 0x17d   :  { %v4115_v16 = vpop.f32.mrf.mxu0  ;;  %v4117_v14 = vpop.f32.mrf.mxu1 }
 0x180   :  { %2800 = vmatmul.msk.f32.gmra.mxu0 %vm132_vm1, %v3772_v45  ;;  %2825 = vmatmul.msk.f32.gmra.mxu1 %vm132_vm1, %v3772_v45 }
 0x181   :  { %2896 = vmatmul.msk.f32.gmra.mxu2 %vm132_vm1, %v3795_v0  ;;  %2921 = vmatmul.msk.f32.gmra.mxu3 %vm132_vm1, %v3795_v0 }
 0x185   :  { %v4127_v38 = vpop.f32.mrf.mxu0  ;;  %v4129_v28 = vpop.f32.mrf.mxu1 }
 0x188   :  { %2801 = vmatmul.msk.f32.gmra.mxu0 %vm132_vm1, %v3795_v0  ;;  %2826 = vmatmul.msk.f32.gmra.mxu1 %vm132_vm1, %v3795_v0 }
 0x189   :  { %2897 = vmatmul.msk.f32.gmra.mxu2 %vm132_vm1, %v4134_v43  ;;  %2922 = vmatmul.msk.f32.gmra.mxu3 %vm132_vm1, %v4134_v43 }
 0x18d   :  { %v4144_v45 = vpop.f32.mrf.mxu0  ;;  %v4146_v2 = vpop.f32.mrf.mxu1 }
 0x190   :  { %2802 = vmatmul.msk.f32.gmra.mxu0 %vm132_vm1, %v4134_v43  ;;  %2827 = vmatmul.msk.f32.gmra.mxu1 %vm132_vm1, %v4134_v43 }
 0x191   :  { %2898 = vmatmul.msk.f32.gmra.mxu2 %vm132_vm1, %v4151_v15  ;;  %2923 = vmatmul.msk.f32.gmra.mxu3 %vm132_vm1, %v4151_v15 }
 0x195   :  { %v4161_v0 = vpop.f32.mrf.mxu0  ;;  %v4163_v59 = vpop.f32.mrf.mxu1 }
 0x198   :  { %2971 = vmatmul.msk.f32.vlgmr.msra.gmra.mxu0 %vm132_vm1, %v2924_v52  ;;  %2996 = vmatmul.msk.f32.vlgmr.msra.gmra.mxu1 %vm132_vm1, %v2924_v52  ;;  %v2926_v52 = vld [vmem:[%s5278_s0 + $0x30] sm:$0xff] }
 0x19d   :  { %v4170_v6 = vpop.f32.mrf.mxu0  ;;  %v4172_v63 = vpop.f32.mrf.mxu1 }
 0x1a0   :  { %2972 = vmatmul.msk.f32.gmra.mxu0 %vm132_vm1, %v2925_v62  ;;  %2997 = vmatmul.msk.f32.gmra.mxu1 %vm132_vm1, %v2925_v62  ;;  %v2927_v62 = vld [vmem:[%s5278_s0 + $0x38] sm:$0xff] }
 0x1a5   :  { %v4179_v53 = vpop.f32.mrf.mxu0  ;;  %v4181_v30 = vpop.f32.mrf.mxu1 }
 0x1a8   :  { %2973 = vmatmul.msk.f32.gmra.mxu0 %vm132_vm1, %v2926_v52  ;;  %2998 = vmatmul.msk.f32.gmra.mxu1 %vm132_vm1, %v2926_v52  ;;  %v2928_v52 = vld [vmem:[%s5278_s0 + $0x40] sm:$0xff] }
 0x1ad   :  { %v4188_v19 = vpop.f32.mrf.mxu0  ;;  %v4190_v18 = vpop.f32.mrf.mxu1 }
 0x1ae   :  { %5318 = vst [vmem:[#allocation30_spill] sm:$0xff] %v4188_v19 }
 0x1af   :  { %5319 = vst [vmem:[#allocation31_spill] sm:$0xff] %v4190_v18 }
 0x1b0   :  { %2974 = vmatmul.msk.f32.gmra.mxu0 %vm132_vm1, %v2927_v62  ;;  %2999 = vmatmul.msk.f32.gmra.mxu1 %vm132_vm1, %v2927_v62  ;;  %v2929_v62 = vld [vmem:[%s5278_s0 + $0x48] sm:$0xff] }
 0x1b5   :  { %v4197_v11 = vpop.f32.mrf.mxu0  ;;  %v4199_v23 = vpop.f32.mrf.mxu1 }
 0x1b6   :  { %5320 = vst [vmem:[#allocation32_spill] sm:$0xff] %v4197_v11  ;;  %v950_v11 = vadd.f32 %v4043_v61, %v3598_v22  ;;  %v953_v61 = vadd.f32 %v4063_v27, %v3630_v33 }
 0x1b7   :  { %5321 = vst [vmem:[#allocation33_spill] sm:$0xff] %v4199_v23 }
 0x1b8   :  { %2975 = vmatmul.msk.f32.gmra.mxu0 %vm132_vm1, %v2928_v52  ;;  %3000 = vmatmul.msk.f32.gmra.mxu1 %vm132_vm1, %v2928_v52  ;;  %v2930_v52 = vld [vmem:[%s5278_s0 + $0x50] sm:$0xff] }
 0x1bd   :  { %v4206_v5 = vpop.f32.mrf.mxu0  ;;  %v4208_v56 = vpop.f32.mrf.mxu1 }
 0x1be   :  { %5322 = vst [vmem:[#allocation34_spill] sm:$0xff] %v4206_v5 }
 0x1bf   :  { %5323 = vst [vmem:[#allocation35_spill] sm:$0xff] %v4208_v56 }
 0x1c0   :  { %2976 = vmatmul.msk.f32.gmra.mxu0 %vm132_vm1, %v2929_v62  ;;  %3001 = vmatmul.msk.f32.gmra.mxu1 %vm132_vm1, %v2929_v62  ;;  %v2931_v62 = vld [vmem:[%s5278_s0 + $0x58] sm:$0xff] }
 0x1c5   :  { %v4215_v29 = vpop.f32.mrf.mxu0  ;;  %v4217_v60 = vpop.f32.mrf.mxu1 }
 0x1c6   :  { %5324 = vst [vmem:[#allocation36_spill] sm:$0xff] %v4215_v29  ;;  %v1141_v29 = vpop.f32.mrf.mxu2 }
 0x1c7   :  { %5325 = vst [vmem:[#allocation37_spill] sm:$0xff] %v4217_v60 }
 0x1c8   :  { %2977 = vmatmul.msk.f32.gmra.mxu0 %vm132_vm1, %v2930_v52  ;;  %3002 = vmatmul.msk.f32.gmra.mxu1 %vm132_vm1, %v2930_v52  ;;  %v2932_v52 = vld [vmem:[%s5278_s0 + $0x60] sm:$0xff] }
 0x1cd   :  { %v4224_v1 = vpop.f32.mrf.mxu0  ;;  %v4226_v57 = vpop.f32.mrf.mxu1 }
 0x1ce   :  { %5326 = vst [vmem:[#allocation38_spill] sm:$0xff] %v4224_v1 }
 0x1cf   :  { %5327 = vst [vmem:[#allocation39_spill] sm:$0xff] %v4226_v57 }
 0x1d0   :  { %2978 = vmatmul.msk.f32.gmra.mxu0 %vm132_vm1, %v2931_v62  ;;  %3003 = vmatmul.msk.f32.gmra.mxu1 %vm132_vm1, %v2931_v62  ;;  %v2933_v62 = vld [vmem:[%s5278_s0 + $0x68] sm:$0xff] }
 0x1d5   :  { %v4233_v60 = vpop.f32.mrf.mxu0  ;;  %v4235_v51 = vpop.f32.mrf.mxu1 }
 0x1d6   :  { %5328 = vst [vmem:[#allocation40_spill] sm:$0xff] %v4233_v60  ;;  %v4249_v60 = vpop.f32.mrf.mxu3 }
 0x1d7   :  { %5329 = vst [vmem:[#allocation41_spill] sm:$0xff] %v4235_v51 }
 0x1d8   :  { %2979 = vmatmul.msk.f32.gmra.mxu0 %vm132_vm1, %v2932_v52  ;;  %3004 = vmatmul.msk.f32.gmra.mxu1 %vm132_vm1, %v2932_v52  ;;  %5332 = vst [vmem:[#allocation44_spill] sm:$0xff] %v4249_v60  ;;  %v2934_v52 = vld [vmem:[%s5278_s0 + $0x70] sm:$0xff] }
 0x1dd   :  { %v4242_v57 = vpop.f32.mrf.mxu0  ;;  %v4244_v1 = vpop.f32.mrf.mxu1 }
 0x1de   :  { %5330 = vst [vmem:[#allocation42_spill] sm:$0xff] %v4242_v57  ;;  %v1233_v57 = vpop.f32.mrf.mxu3 }
 0x1df   :  { %5331 = vst [vmem:[#allocation43_spill] sm:$0xff] %v4244_v1  ;;  %v1144_v1 = vpop.f32.mrf.mxu2 }
 0x1e0   :  { %2980 = vmatmul.msk.f32.gmra.mxu0 %vm132_vm1, %v2933_v62  ;;  %3005 = vmatmul.msk.f32.gmra.mxu1 %vm132_vm1, %v2933_v62  ;;  %v2935_v62 = vld [vmem:[%s5278_s0 + $0x78] sm:$0xff] }
 0x1e5   :  { %v4253_v51 = vpop.f32.mrf.mxu0  ;;  %v4255_v50 = vpop.f32.mrf.mxu1 }
 0x1e6   :  { %5333 = vst [vmem:[#allocation45_spill] sm:$0xff] %v4253_v51  ;;  %v4271_v51 = vpop.f32.mrf.mxu3 }
 0x1e7   :  { %5334 = vst [vmem:[#allocation46_spill] sm:$0xff] %v4255_v50  ;;  %v1147_v50 = vpop.f32.mrf.mxu2 }
 0x1e8   :  { %2981 = vmatmul.msk.f32.gmra.mxu0 %vm132_vm1, %v2934_v52  ;;  %3006 = vmatmul.msk.f32.gmra.mxu1 %vm132_vm1, %v2934_v52 }
 0x1ed   :  { %v4262_v56 = vpop.f32.mrf.mxu0  ;;  %v4264_v60 = vpop.f32.mrf.mxu1 }
 0x1ee   :  { %5335 = vst [vmem:[#allocation47_spill] sm:$0xff] %v4262_v56  ;;  %v2936_v56 = vld [vmem:[%s5278_s0 + $0x80] sm:$0xff] }
 0x1ef   :  { %5336 = vst [vmem:[#allocation48_spill] sm:$0xff] %v4264_v60  ;;  %v4289_v39 = vpop.f32.mrf.mxu2 }
 0x1f0   :  { %2982 = vmatmul.msk.f32.gmra.mxu0 %vm132_vm1, %v2935_v62  ;;  %3007 = vmatmul.msk.f32.gmra.mxu1 %vm132_vm1, %v2935_v62  ;;  %v2937_v62 = vld [vmem:[%s5278_s0 + $0x88] sm:$0xff] }
 0x1f5   :  { %v4273_v40 = vpop.f32.mrf.mxu0  ;;  %v4275_v52 = vpop.f32.mrf.mxu1 }
 0x1f6   :  { %5337 = vst [vmem:[#allocation49_spill] sm:$0xff] %v4273_v40  ;;  %v4291_v40 = vpop.f32.mrf.mxu3 }
 0x1f7   :  { %5338 = vst [vmem:[#allocation50_spill] sm:$0xff] %v4275_v52 }
 0x1f8   :  { %2983 = vmatmul.msk.f32.gmra.mxu0 %vm132_vm1, %v2936_v56  ;;  %3008 = vmatmul.msk.f32.gmra.mxu1 %vm132_vm1, %v2936_v56  ;;  %v2938_v56 = vld [vmem:[%s5278_s0 + $0x90] sm:$0xff] }
 0x1fd   :  { %v4282_v60 = vpop.f32.mrf.mxu0  ;;  %v4284_v5 = vpop.f32.mrf.mxu1 }
 0x1fe   :  { %5339 = vst [vmem:[#allocation51_spill] sm:$0xff] %v4282_v60  ;;  %v4304_v60 = vpop.f32.mrf.mxu3 }
 0x1ff   :  { %5340 = vst [vmem:[#allocation52_spill] sm:$0xff] %v4284_v5  ;;  %v4302_v5 = vpop.f32.mrf.mxu2 }
 0x200   :  { %2984 = vmatmul.msk.f32.gmra.mxu0 %vm132_vm1, %v2937_v62  ;;  %3009 = vmatmul.msk.f32.gmra.mxu1 %vm132_vm1, %v2937_v62  ;;  %v3028_v62 = vld [vmem:[%s5279_s3 + $0x88] sm:$0xff] }
 0x201   :  { %2084 = vmatpush.msra.mxu2 %v3028_v62 }
 0x205   :  { %v4295_v52 = vpop.f32.mrf.mxu0  ;;  %v4297_v23 = vpop.f32.mrf.mxu1 }
 0x206   :  { %5341 = vst [vmem:[#allocation53_spill] sm:$0xff] %v4295_v52 }
 0x207   :  { %5342 = vst [vmem:[#allocation54_spill] sm:$0xff] %v4297_v23  ;;  %v4325_v62 = vpop.f32.mrf.mxu2 }
 0x208   :  { %2985 = vmatmul.msk.f32.gmra.mxu0 %vm132_vm1, %v2938_v56  ;;  %3010 = vmatmul.msk.f32.gmra.mxu1 %vm132_vm1, %v2938_v56  ;;  %v1702_v56 = vld [vmem:[%s5280_s2] sm:$0x3] }
 0x209   :  { %v4329_v20 = vperm.slane %v1702_v56, 0 }
 0x20d   :  { %v4311_v52 = vpop.f32.mrf.mxu0  ;;  %v4313_v23 = vpop.f32.mrf.mxu1 }
 0x20e   :  { %5343 = vst [vmem:[#allocation55_spill] sm:$0xff] %v4311_v52  ;;  %v4327_v52 = vpop.f32.mrf.mxu3 }
 0x20f   :  { %5344 = vst [vmem:[#allocation56_spill] sm:$0xff] %v4313_v23  ;;  %v1302_v23 = vadd.f32 %v1141_v29, %v950_v11  ;;  %v952_v29 = vadd.f32 %v4061_v47, %v3628_v32  ;;  %v4349_v3 = vpop.f32.mrf.mxu2 }
 0x210   :  { %2986 = vmatmul.msk.f32.gmra.mxu0 %vm132_vm1, %v2939_v25  ;;  %3011 = vmatmul.msk.f32.gmra.mxu1 %vm132_vm1, %v2939_v25  ;;  %v2940_v25 = vld [vmem:[%s5278_s0 + $0xa0] sm:$0xff] }
 0x215   :  { %v1493_v18 = vpop.f32.mrf.mxu0  ;;  %v4331_v4 = vpop.f32.mrf.mxu1 }
 0x216   :  { %5345 = vst [vmem:[#allocation57_spill] sm:$0xff] %v4331_v4  ;;  %v1654_v19 = vadd.f32 %v1493_v18, %v1302_v23  ;;  %v3027_v4 = vld [vmem:[%s5279_s3 + $0x80] sm:$0xff]  ;;  %v1304_v23 = vadd.f32 %v1144_v1, %v952_v29  ;;  %v1305_v18 = vadd.f32 %v1233_v57, %v953_v61  ;;  %v954_v57 = vadd.f32 %v4073_v26, %v3670_v48  ;;  %v2942_v61 = vld [vmem:[%s5278_s0 + $0xb0] sm:$0xff] }
 0x217   :  { %2085 = vmatpush.msra.mxu2 %v3027_v4 }
 0x218   :  { %2987 = vmatmul.msk.f32.gmra.mxu0 %vm132_vm1, %v2940_v25  ;;  %3012 = vmatmul.msk.f32.gmra.mxu1 %vm132_vm1, %v2940_v25  ;;  %v4339_v22 = vadd.f32 %v4329_v20, %v1654_v19  ;;  %v4351_v25 = vpop.f32.mrf.mxu3  ;;  %v2941_v19 = vld [vmem:[%s5278_s0 + $0xa8] sm:$0xff]  ;;  %v1306_v1 = vadd.f32 %v1147_v50, %v954_v57  ;;  %v956_v50 = vadd.f32 %v4091_v31, %v3705_v8  ;;  %v4386_v57 = vperm.slane %v1702_v56, 1 }
 0x219   :  { %v957_v8 = vadd.f32 %v4093_v17, %v3707_v12 }
 0x21a   :  { %v5289_v11 = vmax.f32 %v4339_v22, 0.0 }
 0x21c   :  { %1852 = vrot.lane.b32.xlu2 %v5289_v11, %s3122_s23 }
 0x21d   :  { %v1496_v32 = vpop.f32.mrf.mxu0  ;;  %v1585_v33 = vpop.f32.mrf.mxu1 }
 0x21e   :  { %v4359_v47 = vadd.f32 %v1496_v32, %v1304_v23  ;;  %v4361_v4 = vadd.f32 %v1585_v33, %v1305_v18  ;;  %v955_v23 = vadd.f32 %v4075_v10, %v3672_v49  ;;  %v4372_v32 = vpop.f32.mrf.mxu2  ;;  %v1308_v10 = vadd.f32 %v4289_v39, %v956_v50 }
 0x21f   :  { %v1309_v39 = vadd.f32 %v4291_v40, %v957_v8  ;;  %v3026_v40 = vld [vmem:[%s5279_s3 + $0x78] sm:$0xff]  ;;  %v960_v8 = vadd.f32 %v4115_v16, %v3765_v41 }
 0x220   :  { %2988 = vmatmul.msk.f32.gmra.mxu0 %vm132_vm1, %v2941_v19  ;;  %3013 = vmatmul.msk.f32.gmra.mxu1 %vm132_vm1, %v2941_v19  ;;  %v4374_v18 = vpop.f32.mrf.mxu3  ;;  %v1307_v19 = vadd.f32 %v4271_v51, %v955_v23 }
 0x221   :  { %2086 = vmatpush.msra.mxu2 %v3026_v40 }
 0x225   :  { %v1499_v27 = vpop.f32.mrf.mxu0  ;;  %v1588_v29 = vpop.f32.mrf.mxu1 }
 0x226   :  { %v1658_v33 = vadd.f32 %v1499_v27, %v1306_v1  ;;  %v1659_v26 = vadd.f32 %v1588_v29, %v1307_v19  ;;  %v2943_v27 = vld [vmem:[%s5278_s0 + $0xb8] sm:$0xff]  ;;  %v4398_v56 = vpop.f32.mrf.mxu2 }
 0x228   :  { %2989 = vmatmul.msk.f32.gmra.mxu0 %vm132_vm1, %v2942_v61  ;;  %3014 = vmatmul.msk.f32.gmra.mxu1 %vm132_vm1, %v2942_v61  ;;  %v4380_v48 = vadd.f32 %v4329_v20, %v1658_v33  ;;  %v1713_v31 = vadd.f32 %v4386_v57, %v1659_v26  ;;  %v4400_v61 = vpop.f32.mrf.mxu3  ;;  %v958_v33 = vadd.f32 %v4103_v54, %v3748_v34  ;;  %v2944_v34 = vld [vmem:[%s5278_s0 + $0xc0] sm:$0xff] }
 0x22a   :  { %v1760_v49 = vmax.f32 %v4380_v48, 0.0  ;;  %v1761_v12 = vmax.f32 %v1713_v31, 0.0  ;;  %v1310_v50 = vadd.f32 %v4302_v5, %v958_v33  ;;  %v961_v31 = vadd.f32 %v4117_v14, %v3767_v42 }
 0x22c   :  { %1860 = vrot.lane.b32.xlu0 %v1760_v49, %s3122_s23 }
 0x22d   :  { %v1502_v51 = vpop.f32.mrf.mxu0  ;;  %v1591_v1 = vpop.f32.mrf.mxu1 }
 0x22e   :  { %v1660_v29 = vadd.f32 %v1502_v51, %v1308_v10  ;;  %v1661_v17 = vadd.f32 %v1591_v1, %v1309_v39  ;;  %v959_v1 = vadd.f32 %v4105_v9, %v3750_v35 }
 0x230   :  { %2990 = vmatmul.msk.f32.gmra.mxu0 %vm132_vm1, %v2943_v27  ;;  %3015 = vmatmul.msk.f32.gmra.mxu1 %vm132_vm1, %v2943_v27  ;;  %v4405_v23 = vadd.f32 %v4329_v20, %v1660_v29  ;;  %v1715_v54 = vadd.f32 %v4386_v57, %v1661_v17  ;;  %v1311_v27 = vadd.f32 %v4304_v60, %v959_v1  ;;  %v4434_v29 = vpop.f32.mrf.mxu2  ;;  %v4436_v39 = vpop.f32.mrf.mxu3 }
 0x231   :  { %v1313_v17 = vadd.f32 %v4327_v52, %v961_v31  ;;  %v962_v52 = vadd.f32 %v4127_v38, %v3788_v55  ;;  %v965_v31 = vadd.f32 %v4146_v2, %v3807_v13 }
 0x232   :  { %v1762_v19 = vmax.f32 %v4405_v23, 0.0  ;;  %v1763_v35 = vmax.f32 %v1715_v54, 0.0  ;;  %v2036_v23 = vld [vmem:[%s5279_s3 + $0x18] sm:$0xff] }
 0x234   :  { %1864 = vrot.lane.b32.xlu1 %v1762_v19, %s3122_s23  ;;  %1862 = vrot.lane.b32.xlu0 %v1761_v12, %s3122_s23  ;;  %v1312_v12 = vadd.f32 %v4325_v62, %v960_v8  ;;  %v963_v62 = vadd.f32 %v4129_v28, %v3790_v58  ;;  %v964_v8 = vadd.f32 %v4144_v45, %v3805_v7 }
 0x235   :  { %v1505_v26 = vpop.f32.mrf.mxu0  ;;  %v1594_v10 = vpop.f32.mrf.mxu1 }
 0x236   :  { %v1662_v51 = vadd.f32 %v1505_v26, %v1310_v50  ;;  %v1663_v33 = vadd.f32 %v1594_v10, %v1311_v27  ;;  %v1315_v1 = vadd.f32 %v4351_v25, %v963_v62 }
 0x238   :  { %v4425_v5 = vadd.f32 %v4329_v20, %v1662_v51  ;;  %2991 = vmatmul.msk.f32.gmra.mxu0 %vm132_vm1, %v2944_v34  ;;  %3016 = vmatmul.msk.f32.gmra.mxu1 %vm132_vm1, %v2944_v34  ;;  %v1717_v14 = vadd.f32 %v4386_v57, %v1663_v33  ;;  %v2041_v34 = vld [vmem:[%s5279_s3 + $0x40] sm:$0xff]  ;;  %v1314_v51 = vadd.f32 %v4349_v3, %v962_v52  ;;  %v4466_v27 = vpop.f32.mrf.mxu3 }
 0x239   :  { %2128 = vmatpush.msra.mxu3 %v2041_v34 }
 0x23a   :  { %v1764_v9 = vmax.f32 %v4425_v5, 0.0  ;;  %v1765_v54 = vmax.f32 %v1717_v14, 0.0  ;;  %v967_v14 = vadd.f32 %v4163_v59, %v3819_v24 }
 0x23c   :  { %1866 = vrot.lane.b32.xlu1 %v1763_v35, %s3122_s23  ;;  %1868 = vrot.lane.b32.xlu2 %v1764_v9, %s3122_s23 }
 0x23d   :  { %v1508_v41 = vpop.f32.mrf.mxu0  ;;  %v1597_v42 = vpop.f32.mrf.mxu1 }
 0x23e   :  { %v1664_v60 = vadd.f32 %v1508_v41, %v1312_v12  ;;  %v1665_v16 = vadd.f32 %v1597_v42, %v1313_v17  ;;  %v3025_v12 = vld [vmem:[%s5279_s3 + $0x70] sm:$0xff]  ;;  %v1316_v17 = vadd.f32 %v4372_v32, %v964_v8  ;;  %v1317_v41 = vadd.f32 %v4374_v18, %v965_v31 }
 0x23f   :  { %2087 = vmatpush.msra.mxu2 %v3025_v12 }
 0x240   :  { %v4447_v40 = vadd.f32 %v4329_v20, %v1664_v60  ;;  %v1719_v50 = vadd.f32 %v4386_v57, %v1665_v16  ;;  %2992 = vmatmul.msk.f32.gmra.mxu0 %vm132_vm1, %v4134_v43  ;;  %3017 = vmatmul.msk.f32.gmra.mxu1 %vm132_vm1, %v4134_v43  ;;  %v4464_v43 = vpop.f32.mrf.mxu2  ;;  %v1263_v45 = vpop.f32.mrf.mxu3  ;;  %v966_v16 = vadd.f32 %v4161_v0, %v3817_v21 }
 0x242   :  { %v1766_v26 = vmax.f32 %v4447_v40, 0.0  ;;  %v1767_v10 = vmax.f32 %v1719_v50, 0.0  ;;  %v1318_v62 = vadd.f32 %v4398_v56, %v966_v16  ;;  %v968_v56 = vadd.f32 %v4170_v6, %v3835_v36  ;;  %v5347_v16 = vld [vmem:[#allocation30_spill] sm:$0xff] }
 0x244   :  { %1874 = vrot.lane.b32.xlu1 %v1767_v10, %s3122_s23  ;;  %1872 = vrot.lane.b32.xlu0 %v1766_v26, %s3122_s23  ;;  %v1319_v10 = vadd.f32 %v4400_v61, %v967_v14  ;;  %v969_v61 = vadd.f32 %v4172_v63, %v3837_v37  ;;  %v5348_v14 = vld [vmem:[#allocation4_spill] sm:$0xff] }
 0x245   :  { %1870 = vrot.lane.b32.xlu2 %v1765_v54, %s3122_s23  ;;  %v1511_v55 = vpop.f32.mrf.mxu0  ;;  %v1600_v58 = vpop.f32.mrf.mxu1 }
 0x246   :  { %v1666_v38 = vadd.f32 %v1511_v55, %v1314_v51  ;;  %v1667_v28 = vadd.f32 %v1600_v58, %v1315_v1  ;;  %v1321_v36 = vadd.f32 %v4436_v39, %v969_v61  ;;  %v971_v39 = vadd.f32 %v4181_v30, %v3849_v46 }
 0x248   :  { %v4474_v3 = vadd.f32 %v4329_v20, %v1666_v38  ;;  %v1721_v25 = vadd.f32 %v4386_v57, %v1667_v28  ;;  %2993 = vmatmul.msk.f32.gmra.mxu0 %vm132_vm1, %v4151_v15  ;;  %3018 = vmatmul.msk.f32.gmra.mxu1 %vm132_vm1, %v4151_v15  ;;  %v2947_v15 = vld [vmem:[%s5278_s0 + $0xd8] sm:$0xff]  ;;  %v1174_v2 = vpop.f32.mrf.mxu2  ;;  %v1266_v1 = vpop.f32.mrf.mxu3  ;;  %v3024_v28 = vld [vmem:[%s5279_s3 + $0x68] sm:$0xff] }
 0x249   :  { %v2040_v38 = vld [vmem:[%s5279_s3 + $0x38] sm:$0xff]  ;;  %2088 = vmatpush.msra.mxu2 %v3024_v28 }
 0x24a   :  { %v1768_v35 = vmax.f32 %v4474_v3, 0.0  ;;  %v1769_v33 = vmax.f32 %v1721_v25, 0.0  ;;  %2129 = vmatpush.msra.mxu3 %v2040_v38  ;;  %v1320_v25 = vadd.f32 %v4434_v29, %v968_v56  ;;  %v970_v29 = vadd.f32 %v4179_v53, %v3847_v44 }
 0x24c   :  { %1878 = vrot.lane.b32.xlu0 %v1769_v33, %s3122_s23 }
 0x24d   :  { %1876 = vrot.lane.b32.xlu2 %v1768_v35, %s3122_s23  ;;  %v1514_v7 = vpop.f32.mrf.mxu0  ;;  %v1603_v13 = vpop.f32.mrf.mxu1 }
 0x24e   :  { %v1668_v42 = vadd.f32 %v1514_v7, %v1316_v17  ;;  %v1669_v60 = vadd.f32 %v1603_v13, %v1317_v41  ;;  %v1322_v13 = vadd.f32 %v4464_v43, %v970_v29  ;;  %v3023_v29 = vld [vmem:[%s5279_s3 + $0x60] sm:$0xff] }
 0x24f   :  { %2089 = vmatpush.msra.mxu2 %v3023_v29 }
 0x250   :  { %v4499_v32 = vadd.f32 %v4329_v20, %v1668_v42  ;;  %v1723_v18 = vadd.f32 %v4386_v57, %v1669_v60  ;;  %2994 = vmatmul.msk.f32.gmra.mxu0 %vm132_vm1, %v2947_v15  ;;  %3019 = vmatmul.msk.f32.gmra.mxu1 %vm132_vm1, %v2947_v15  ;;  %v1177_v0 = vpop.f32.mrf.mxu2  ;;  %v1269_v17 = vpop.f32.mrf.mxu3  ;;  %v1323_v15 = vadd.f32 %v4466_v27, %v971_v39  ;;  %v5349_v27 = vld [vmem:[#allocation31_spill] sm:$0xff] }
 0x252   :  { %v1770_v50 = vmax.f32 %v4499_v32, 0.0  ;;  %v1771_v52 = vmax.f32 %v1723_v18, 0.0  ;;  %v5346_v18 = vld [vmem:[#allocation3_spill] sm:$0xff] }
 0x253   :  { %v972_v43 = vadd.f32 %v5347_v16, %v5346_v18  ;;  %v5354_v16 = vld [vmem:[#allocation7_spill] sm:$0xff] }
 0x254   :  { %1880 = vrot.lane.b32.xlu1 %v1770_v50, %s3122_s23  ;;  %v3052_v32 = vld [vmem:[%s5279_s3 + $0xc8] sm:$0xff] }
 0x255   :  { %1882 = vrot.lane.b32.xlu2 %v1771_v52, %s3122_s23  ;;  %v1517_v34 = vpop.f32.mrf.mxu0  ;;  %v1606_v54 = vpop.f32.mrf.mxu1  ;;  %v973_v52 = vadd.f32 %v5349_v27, %v5348_v14  ;;  %v5357_v14 = vld [vmem:[#allocation35_spill] sm:$0xff] }
 0x256   :  { %v1670_v51 = vadd.f32 %v1517_v34, %v1318_v62  ;;  %v1671_v21 = vadd.f32 %v1606_v54, %v1319_v10  ;;  %v1324_v34 = vadd.f32 %v1174_v2, %v972_v43  ;;  %v5351_v2 = vld [vmem:[#allocation32_spill] sm:$0xff] }
 0x257   :  { %v1325_v54 = vadd.f32 %v1263_v45, %v973_v52  ;;  %v5356_v43 = vld [vmem:[#allocation8_spill] sm:$0xff] }
 0x258   :  { %v4516_v24 = vadd.f32 %v4329_v20, %v1670_v51  ;;  %v1725_v59 = vadd.f32 %v4386_v57, %v1671_v21  ;;  %v1180_v12 = vpop.f32.mrf.mxu2  ;;  %v1272_v21 = vpop.f32.mrf.mxu3  ;;  %v977_v27 = vadd.f32 %v5357_v14, %v5356_v43  ;;  %v5363_v43 = vld [vmem:[#allocation38_spill] sm:$0xff] }
 0x25a   :  { %v1772_v55 = vmax.f32 %v4516_v24, 0.0  ;;  %v1773_v58 = vmax.f32 %v1725_v59, 0.0 }
 0x25c   :  { %1886 = vrot.lane.b32.xlu1 %v1773_v58, %s3122_s23  ;;  %1884 = vrot.lane.b32.xlu0 %v1772_v55, %s3122_s23 }
 0x25d   :  { %v1520_v37 = vpop.f32.mrf.mxu0  ;;  %v1609_v63 = vpop.f32.mrf.mxu1 }
 0x25e   :  { %v1672_v6 = vadd.f32 %v1520_v37, %v1320_v25  ;;  %v1673_v8 = vadd.f32 %v1609_v63, %v1321_v36  ;;  %v5350_v25 = vld [vmem:[#allocation5_spill] sm:$0xff]  ;;  %v5352_v36 = vld [vmem:[#allocation6_spill] sm:$0xff] }
 0x25f   :  { %v974_v45 = vadd.f32 %v5351_v2, %v5350_v25  ;;  %v5353_v37 = vld [vmem:[#allocation33_spill] sm:$0xff] }
 0x260   :  { %v4537_v31 = vadd.f32 %v4329_v20, %v1672_v6  ;;  %v1727_v33 = vadd.f32 %v4386_v57, %v1673_v8  ;;  %v1183_v51 = vpop.f32.mrf.mxu2  ;;  %v975_v63 = vadd.f32 %v5353_v37, %v5352_v36  ;;  %v5358_v36 = vld [vmem:[#allocation9_spill] sm:$0xff]  ;;  %v5360_v37 = vld [vmem:[#allocation10_spill] sm:$0xff] }
 0x261   :  { %v1326_v39 = vadd.f32 %v1177_v0, %v974_v45  ;;  %v5355_v0 = vld [vmem:[#allocation34_spill] sm:$0xff] }
 0x262   :  { %v1774_v41 = vmax.f32 %v4537_v31, 0.0  ;;  %v1775_v7 = vmax.f32 %v1727_v33, 0.0  ;;  %v2039_v33 = vld [vmem:[%s5279_s3 + $0x30] sm:$0xff] }
 0x263   :  { %2130 = vmatpush.msra.mxu3 %v2039_v33 }
 0x264   :  { %1890 = vrot.lane.b32.xlu0 %v1775_v7, %s3122_s23  ;;  %1888 = vrot.lane.b32.xlu2 %v1774_v41, %s3122_s23  ;;  %v1327_v7 = vadd.f32 %v1266_v1, %v975_v63  ;;  %v976_v1 = vadd.f32 %v5355_v0, %v5354_v16  ;;  %v5361_v63 = vld [vmem:[#allocation37_spill] sm:$0xff] }
 0x265   :  { %v1523_v42 = vpop.f32.mrf.mxu0  ;;  %v1612_v44 = vpop.f32.mrf.mxu1 }
 0x266   :  { %v1674_v53 = vadd.f32 %v1523_v42, %v1322_v13  ;;  %v1675_v60 = vadd.f32 %v1612_v44, %v1323_v15  ;;  %v1275_v44 = vpop.f32.mrf.mxu3 }
 0x268   :  { %v4552_v46 = vadd.f32 %v4329_v20, %v1674_v53  ;;  %v1729_v30 = vadd.f32 %v4386_v57, %v1675_v60  ;;  %v1186_v42 = vpop.f32.mrf.mxu2 }
 0x26a   :  { %v1776_v62 = vmax.f32 %v4552_v46, 0.0  ;;  %v1777_v10 = vmax.f32 %v1729_v30, 0.0  ;;  %v3047_v46 = vld [vmem:[%s5279_s3 + $0xa0] sm:$0xff] }
 0x26c   :  { %1892 = vrot.lane.b32.xlu1 %v1776_v62, %s3122_s23  ;;  %1894 = vrot.lane.b32.xlu2 %v1777_v10, %s3122_s23 }
 0x26d   :  { %v1526_v59 = vpop.f32.mrf.mxu0  ;;  %v1615_v56 = vpop.f32.mrf.mxu1 }
 0x26e   :  { %v1676_v61 = vadd.f32 %v1526_v59, %v1324_v34  ;;  %v1677_v58 = vadd.f32 %v1615_v56, %v1325_v54  ;;  %v1328_v34 = vadd.f32 %v1180_v12, %v976_v1  ;;  %v1329_v54 = vadd.f32 %v1269_v17, %v977_v27  ;;  %v1278_v25 = vpop.f32.mrf.mxu3  ;;  %v5359_v12 = vld [vmem:[#allocation36_spill] sm:$0xff]  ;;  %v5362_v1 = vld [vmem:[#allocation11_spill] sm:$0xff] }
 0x26f   :  { %v978_v17 = vadd.f32 %v5359_v12, %v5358_v36  ;;  %v980_v14 = vadd.f32 %v5363_v43, %v5362_v1 }
 0x270   :  { %v4565_v38 = vadd.f32 %v4329_v20, %v1676_v61  ;;  %v1731_v28 = vadd.f32 %v4386_v57, %v1677_v58 }
 0x272   :  { %v1778_v6 = vmax.f32 %v4565_v38, 0.0  ;;  %v1779_v8 = vmax.f32 %v1731_v28, 0.0  ;;  %v1189_v28 = vpop.f32.mrf.mxu2 }
 0x274   :  { %1898 = vrot.lane.b32.xlu1 %v1779_v8, %s3122_s23  ;;  %1896 = vrot.lane.b32.xlu0 %v1778_v6, %s3122_s23  ;;  %v979_v8 = vadd.f32 %v5361_v63, %v5360_v37 }
 0x275   :  { %v1529_v13 = vpop.f32.mrf.mxu0  ;;  %v1618_v15 = vpop.f32.mrf.mxu1 }
 0x276   :  { %v1678_v53 = vadd.f32 %v1529_v13, %v1326_v39  ;;  %v1679_v60 = vadd.f32 %v1618_v15, %v1327_v7  ;;  %v2038_v39 = vld [vmem:[%s5279_s3 + $0x28] sm:$0xff]  ;;  %v1330_v7 = vadd.f32 %v1183_v51, %v978_v17  ;;  %v1331_v13 = vadd.f32 %v1272_v21, %v979_v8  ;;  %v5364_v51 = vld [vmem:[#allocation12_spill] sm:$0xff] }
 0x277   :  { %2131 = vmatpush.msra.mxu3 %v2038_v39  ;;  %v5365_v21 = vld [vmem:[#allocation39_spill] sm:$0xff]  ;;  %v5367_v8 = vld [vmem:[#allocation40_spill] sm:$0xff]  ;;  %v5368_v39 = vld [vmem:[#allocation14_spill] sm:$0xff] }
 0x278   :  { %v4584_v30 = vadd.f32 %v4329_v20, %v1678_v53  ;;  %v1733_v18 = vadd.f32 %v4386_v57, %v1679_v60  ;;  %v981_v27 = vadd.f32 %v5365_v21, %v5364_v51 }
 0x27a   :  { %v1780_v52 = vmax.f32 %v4584_v30, 0.0  ;;  %v1781_v10 = vmax.f32 %v1733_v18, 0.0  ;;  %v3045_v30 = vld [vmem:[%s5279_s3 + $0x90] sm:$0xff] }
 0x27c   :  { %1902 = vrot.lane.b32.xlu0 %v1781_v10, %s3122_s23  ;;  %1900 = vrot.lane.b32.xlu2 %v1780_v52, %s3122_s23  ;;  %v1192_v10 = vpop.f32.mrf.mxu2 }
 0x27d   :  { %v1532_v59 = vpop.f32.mrf.mxu0  ;;  %v1621_v56 = vpop.f32.mrf.mxu1 }
 0x27e   :  { %v1680_v61 = vadd.f32 %v1532_v59, %v1328_v34  ;;  %v1681_v58 = vadd.f32 %v1621_v56, %v1329_v54  ;;  %v1281_v34 = vpop.f32.mrf.mxu3  ;;  %v3022_v56 = vld [vmem:[%s5279_s3 + $0x58] sm:$0xff] }
 0x27f   :  { %2090 = vmatpush.msra.mxu2 %v3022_v56 }
 0x280   :  { %v4597_v2 = vadd.f32 %v4329_v20, %v1680_v61  ;;  %v1735_v45 = vadd.f32 %v4386_v57, %v1681_v58  ;;  %v1332_v61 = vadd.f32 %v1186_v42, %v980_v14  ;;  %v1333_v58 = vadd.f32 %v1275_v44, %v981_v27  ;;  %v3021_v42 = vld [vmem:[%s5279_s3 + $0x50] sm:$0xff]  ;;  %v5366_v44 = vld [vmem:[#allocation13_spill] sm:$0xff] }
 0x281   :  { %2091 = vmatpush.msra.mxu2 %v3021_v42 }
 0x282   :  { %v1782_v33 = vmax.f32 %v4597_v2, 0.0  ;;  %v1783_v29 = vmax.f32 %v1735_v45, 0.0  ;;  %v3087_v2 = vld [vmem:[%s5279_s3 + $0x160] sm:$0xff] }
 0x284   :  { %1904 = vrot.lane.b32.xlu1 %v1782_v33, %s3122_s23  ;;  %1906 = vrot.lane.b32.xlu2 %v1783_v29, %s3122_s23  ;;  %v982_v29 = vadd.f32 %v5367_v8, %v5366_v44  ;;  %v1195_v1 = vpop.f32.mrf.mxu2 }
 0x285   :  { %v1535_v15 = vpop.f32.mrf.mxu0  ;;  %v1624_v53 = vpop.f32.mrf.mxu1 }
 0x286   :  { %v1682_v60 = vadd.f32 %v1535_v15, %v1330_v7  ;;  %v1683_v18 = vadd.f32 %v1624_v53, %v1331_v13  ;;  %v5369_v7 = vld [vmem:[#allocation41_spill] sm:$0xff]  ;;  %v1284_v43 = vpop.f32.mrf.mxu3 }
 0x287   :  { %v983_v13 = vadd.f32 %v5369_v7, %v5368_v39  ;;  %v5374_v39 = vld [vmem:[#allocation2_spill] sm:$0xff]  ;;  %v5375_v7 = vld [vmem:[#allocation29_spill] sm:$0xff] }
 0x288   :  { %v4613_v16 = vadd.f32 %v4329_v20, %v1682_v60  ;;  %v1737_v0 = vadd.f32 %v4386_v57, %v1683_v18  ;;  %v3020_v60 = vld [vmem:[%s5279_s3 + $0x48] sm:$0xff]  ;;  %v1334_v18 = vadd.f32 %v1189_v28, %v982_v29 }
 0x289   :  { %2092 = vmatpush.msra.mxu2 %v3020_v60  ;;  %v5370_v28 = vld [vmem:[#allocation15_spill] sm:$0xff] }
 0x28a   :  { %v1784_v54 = vmax.f32 %v4613_v16, 0.0  ;;  %v1785_v59 = vmax.f32 %v1737_v0, 0.0  ;;  %v1335_v0 = vadd.f32 %v1278_v25, %v983_v13  ;;  %v5371_v25 = vld [vmem:[#allocation42_spill] sm:$0xff]  ;;  %v951_v13 = vadd.f32 %v5375_v7, %v5374_v39 }
 0x28b   :  { %v5380_v39 = vld [vmem:[#allocation18_spill] sm:$0xff] }
 0x28c   :  { %1910 = vrot.lane.b32.xlu1 %v1785_v59, %s3122_s23  ;;  %1908 = vrot.lane.b32.xlu0 %v1784_v54, %s3122_s23  ;;  %v5381_v7 = vld [vmem:[#allocation46_spill] sm:$0xff] }
 0x28d   :  { %v1538_v45 = vpop.f32.mrf.mxu0  ;;  %v1627_v36 = vpop.f32.mrf.mxu1 }
 0x28e   :  { %v1684_v12 = vadd.f32 %v1538_v45, %v1332_v61  ;;  %v1685_v17 = vadd.f32 %v1627_v36, %v1333_v58  ;;  %v984_v61 = vadd.f32 %v5371_v25, %v5370_v28  ;;  %v5372_v58 = vld [vmem:[#allocation16_spill] sm:$0xff]  ;;  %v5373_v45 = vld [vmem:[#allocation43_spill] sm:$0xff]  ;;  %v5377_v28 = vld [vmem:[#allocation57_spill] sm:$0xff] }
 0x28f   :  { %v985_v36 = vadd.f32 %v5373_v45, %v5372_v58 }
 0x290   :  { %v4629_v37 = vadd.f32 %v4329_v20, %v1684_v12  ;;  %v1739_v63 = vadd.f32 %v4386_v57, %v1685_v17  ;;  %v1336_v42 = vadd.f32 %v1192_v10, %v984_v61  ;;  %v5376_v10 = vld [vmem:[#allocation44_spill] sm:$0xff] }
 0x291   :  { %v1337_v44 = vadd.f32 %v1281_v34, %v985_v36  ;;  %v1303_v34 = vadd.f32 %v5376_v10, %v951_v13  ;;  %v987_v13 = vadd.f32 %v5381_v7, %v5380_v39  ;;  %v5384_v39 = vld [vmem:[#allocation20_spill] sm:$0xff] }
 0x292   :  { %v1786_v15 = vmax.f32 %v4629_v37, 0.0  ;;  %v1787_v53 = vmax.f32 %v1739_v63, 0.0  ;;  %v2037_v63 = vld [vmem:[%s5279_s3 + $0x20] sm:$0xff]  ;;  %v5385_v7 = vld [vmem:[#allocation48_spill] sm:$0xff] }
 0x293   :  { %2132 = vmatpush.msra.mxu3 %v2037_v63  ;;  %v1655_v25 = vadd.f32 %v5377_v28, %v1303_v34  ;;  %v5379_v63 = vld [vmem:[#allocation45_spill] sm:$0xff]  ;;  %v5382_v34 = vld [vmem:[#allocation19_spill] sm:$0xff] }
 0x294   :  { %1914 = vrot.lane.b32.xlu0 %v1787_v53, %s3122_s23  ;;  %1912 = vrot.lane.b32.xlu2 %v1786_v15, %s3122_s23 }
 0x295   :  { %v1541_v14 = vpop.f32.mrf.mxu0  ;;  %v1630_v51 = vpop.f32.mrf.mxu1  ;;  %2133 = vmatpush.msra.mxu3 %v2036_v23 }
 0x296   :  { %v1686_v21 = vadd.f32 %v1541_v14, %v1334_v18  ;;  %v1687_v27 = vadd.f32 %v1630_v51, %v1335_v0  ;;  %v1198_v18 = vpop.f32.mrf.mxu2  ;;  %v1287_v0 = vpop.f32.mrf.mxu3  ;;  %v1711_v14 = vadd.f32 %v4386_v57, %v4361_v4 }
 0x297   :  { %v4668_v51 = vpop.permute.xlu2 %1852 }
 0x298   :  { %v4648_v59 = vadd.f32 %v4329_v20, %v1686_v21  ;;  %v1741_v56 = vadd.f32 %v4386_v57, %v1687_v27  ;;  %v1759_v45 = vmax.f32 %v1711_v14, 0.0  ;;  %v1339_v14 = vadd.f32 %v1284_v43, %v987_v13 }
 0x299   :  { %v989_v13 = vadd.f32 %v5385_v7, %v5384_v39 }
 0x29a   :  { %v1788_v12 = vmax.f32 %v4648_v59, 0.0  ;;  %v1789_v17 = vmax.f32 %v1741_v56, 0.0 }
 0x29c   :  { %1916 = vrot.lane.b32.xlu1 %v1788_v12, %s3122_s23  ;;  %1918 = vrot.lane.b32.xlu2 %v1789_v17, %s3122_s23  ;;  %v5378_v17 = vld [vmem:[#allocation17_spill] sm:$0xff] }
 0x29d   :  { %v1544_v8 = vpop.f32.mrf.mxu0  ;;  %v1633_v29 = vpop.f32.mrf.mxu1 }
 0x29e   :  { %v1688_v53 = vadd.f32 %v1544_v8, %v1336_v42  ;;  %v1689_v60 = vadd.f32 %v1633_v29, %v1337_v44  ;;  %v1861_v56 = vpop.permute.xlu0 %1860  ;;  %v986_v42 = vadd.f32 %v5379_v63, %v5378_v17  ;;  %v1709_v44 = vadd.f32 %v4386_v57, %v1655_v25  ;;  %v1201_v10 = vpop.f32.mrf.mxu2 }
 0x29f   :  { %v4686_v8 = vadd.f32 %v4329_v20, %v4359_v47 }
 0x2a0   :  { %v4671_v21 = vadd.f32 %v4329_v20, %v1688_v53  ;;  %v1743_v27 = vadd.f32 %v4386_v57, %v1689_v60  ;;  %v1338_v53 = vadd.f32 %v1195_v1, %v986_v42  ;;  %v1869_v60 = vpop.permute.xlu2 %1868  ;;  %v1757_v63 = vmax.f32 %v1709_v44, 0.0 }
 0x2a2   :  { %v1790_v61 = vmax.f32 %v4671_v21, 0.0  ;;  %v1791_v58 = vmax.f32 %v1743_v27, 0.0  ;;  %v5383_v27 = vld [vmem:[#allocation47_spill] sm:$0xff] }
 0x2a3   :  { %v988_v28 = vadd.f32 %v5383_v27, %v5382_v34 }
 0x2a4   :  { %1922 = vrot.lane.b32.xlu1 %v1791_v58, %s3122_s23  ;;  %1920 = vrot.lane.b32.xlu0 %v1790_v61, %s3122_s23  ;;  %v1290_v58 = vpop.f32.mrf.mxu3 }
 0x2a5   :  { %1858 = vrot.lane.b32.xlu2 %v1759_v45, %s3122_s23  ;;  %v1547_v4 = vpop.f32.mrf.mxu0  ;;  %v1636_v36 = vpop.f32.mrf.mxu1  ;;  %v1758_v45 = vmax.f32 %v4686_v8, 0.0  ;;  %v1340_v47 = vadd.f32 %v1198_v18, %v988_v28  ;;  %v5386_v28 = vld [vmem:[#allocation21_spill] sm:$0xff]  ;;  %v3064_v8 = vld [vmem:[%s5279_s3 + $0xe8] sm:$0xff] }
 0x2a6   :  { %v1865_v29 = vpop.permute.xlu1 %1864  ;;  %v1690_v17 = vadd.f32 %v1547_v4, %v1338_v53  ;;  %v1863_v25 = vpop.permute.xlu0 %1862  ;;  %v1691_v11 = vadd.f32 %v1636_v36, %v1339_v14  ;;  %v1341_v14 = vadd.f32 %v1287_v0, %v989_v13 }
 0x2a7   :  { %v1951_v1 = vsel %vm1948_vm2, %v1861_v56, %v1863_v25  ;;  %v5387_v25 = vld [vmem:[#allocation49_spill] sm:$0xff]  ;;  %v1204_v7 = vpop.f32.mrf.mxu2 }
 0x2a8   :  { %v4701_v4 = vadd.f32 %v4329_v20, %v1690_v17  ;;  %v1745_v18 = vadd.f32 %v4386_v57, %v1691_v11  ;;  %v1999_v34 = vmax.f32 %v1760_v49, %v1951_v1  ;;  %v990_v17 = vadd.f32 %v5387_v25, %v5386_v28  ;;  %v1871_v11 = vpop.permute.xlu2 %1870 }
 0x2aa   :  { %v1342_v1 = vadd.f32 %v1201_v10, %v990_v17  ;;  %v5390_v17 = vld [vmem:[#allocation23_spill] sm:$0xff] }
 0x2ac   :  { %1854 = vrot.lane.b32.xlu0 %v1757_v63, %s3122_s23  ;;  %1856 = vrot.lane.b32.xlu1 %v1758_v45, %s3122_s23  ;;  %v5388_v63 = vld [vmem:[#allocation22_spill] sm:$0xff]  ;;  %v1293_v13 = vpop.f32.mrf.mxu3 }
 0x2ad   :  { %v1550_v43 = vpop.f32.mrf.mxu0  ;;  %v1639_v42 = vpop.f32.mrf.mxu1 }
 0x2ae   :  { %v1692_v44 = vadd.f32 %v1550_v43, %v1340_v47  ;;  %v1867_v36 = vpop.permute.xlu1 %1866  ;;  %v5389_v47 = vld [vmem:[#allocation50_spill] sm:$0xff]  ;;  %v1693_v48 = vadd.f32 %v1639_v42, %v1341_v14  ;;  %v1953_v42 = vsel %vm1948_vm2, %v1869_v60, %v1871_v11  ;;  %v5393_v11 = vld [vmem:[#allocation52_spill] sm:$0xff] }
 0x2af   :  { %v1952_v53 = vsel %vm1948_vm2, %v1865_v29, %v1867_v36  ;;  %v991_v43 = vadd.f32 %v5389_v47, %v5388_v63  ;;  %v1792_v29 = vmax.f32 %v4701_v4, 0.0  ;;  %v5391_v63 = vld [vmem:[#allocation51_spill] sm:$0xff] }
 0x2b0   :  { %v4708_v56 = vadd.f32 %v4329_v20, %v1692_v44  ;;  %v2000_v27 = vmax.f32 %v1762_v19, %v1952_v53  ;;  %v1793_v19 = vmax.f32 %v1745_v18, 0.0  ;;  %v992_v47 = vadd.f32 %v5391_v63, %v5390_v17 }
 0x2b1   :  { %v1343_v39 = vadd.f32 %v1290_v58, %v991_v43  ;;  %v1747_v58 = vadd.f32 %v4386_v57, %v1693_v48  ;;  %v5392_v43 = vld [vmem:[#allocation24_spill] sm:$0xff] }
 0x2b2   :  { %v1794_v0 = vmax.f32 %v4708_v56, 0.0  ;;  %v4718_v49 = vmax.f32 %v1999_v34, %v2000_v27  ;;  %v2001_v27 = vmax.f32 %v1764_v9, %v1953_v42  ;;  %v993_v48 = vadd.f32 %v5393_v11, %v5392_v43  ;;  %v1877_v42 = vpop.permute.xlu2 %1876 }
 0x2b3   :  { %v1795_v23 = vmax.f32 %v1747_v58, 0.0  ;;  %v1344_v9 = vadd.f32 %v1204_v7, %v992_v47  ;;  %v1207_v58 = vpop.f32.mrf.mxu2 }
 0x2b4   :  { %1924 = vrot.lane.b32.xlu0 %v1792_v29, %s3122_s23  ;;  %3029 = vmatmul.msk.f32.vlgmr.msra.gmra.mxu2 %vm2052_vm3, %v4718_v49 }
 0x2b5   :  { %1926 = vrot.lane.b32.xlu1 %v1793_v19, %s3122_s23  ;;  %1928 = vrot.lane.b32.xlu2 %v1794_v0, %s3122_s23  ;;  %v1553_v44 = vpop.f32.mrf.mxu0  ;;  %v1642_v10 = vpop.f32.mrf.mxu1 }
 0x2b6   :  { %v1694_v36 = vadd.f32 %v1553_v44, %v1342_v1  ;;  %v1695_v18 = vadd.f32 %v1642_v10, %v1343_v39  ;;  %v1875_v53 = vpop.permute.xlu1 %1874  ;;  %v1873_v14 = vpop.permute.xlu0 %1872  ;;  %v1345_v39 = vadd.f32 %v1293_v13, %v993_v48 }
 0x2b7   :  { %v1954_v34 = vsel %vm1948_vm2, %v1873_v14, %v1875_v53  ;;  %v3053_v53 = vld [vmem:[%s5279_s3 + $0xd0] sm:$0xff]  ;;  %v5394_v14 = vld [vmem:[#allocation25_spill] sm:$0xff] }
 0x2b8   :  { %v4738_v60 = vadd.f32 %v4329_v20, %v1694_v36  ;;  %v1749_v28 = vadd.f32 %v4386_v57, %v1695_v18  ;;  %v2002_v25 = vmax.f32 %v1766_v26, %v1954_v34  ;;  %v1296_v36 = vpop.f32.mrf.mxu3  ;;  %v2035_v18 = vld [vmem:[%s5279_s3 + $0x10] sm:$0xff]  ;;  %2182 = vmatpush.msrb.mxu2 %v3053_v53  ;;  %v5395_v34 = vld [vmem:[#allocation53_spill] sm:$0xff]  ;;  %v5399_v53 = vld [vmem:[#allocation55_spill] sm:$0xff] }
 0x2b9   :  { %2134 = vmatpush.msra.mxu3 %v2035_v18  ;;  %v5398_v18 = vld [vmem:[#allocation27_spill] sm:$0xff] }
 0x2ba   :  { %v1796_v19 = vmax.f32 %v4738_v60, 0.0  ;;  %v1797_v1 = vmax.f32 %v1749_v28, 0.0  ;;  %v4748_v5 = vmax.f32 %v2001_v27, %v2002_v25  ;;  %v994_v27 = vadd.f32 %v5395_v34, %v5394_v14  ;;  %v5396_v28 = vld [vmem:[#allocation26_spill] sm:$0xff]  ;;  %2183 = vmatpush.msrb.mxu2 %v3052_v32  ;;  %v3048_v32 = vld [vmem:[%s5279_s3 + $0xa8] sm:$0xff] }
 0x2bb   :  { %v5397_v25 = vld [vmem:[#allocation54_spill] sm:$0xff]  ;;  %v996_v14 = vadd.f32 %v5399_v53, %v5398_v18  ;;  %v1210_v34 = vpop.f32.mrf.mxu2 }
 0x2bc   :  { %1930 = vrot.lane.b32.xlu0 %v1795_v23, %s3122_s23  ;;  %3030 = vmatmul.msk.f32.gmra.mxu2 %vm2052_vm3, %v4748_v5  ;;  %v995_v17 = vadd.f32 %v5397_v25, %v5396_v28  ;;  %v1346_v11 = vadd.f32 %v1207_v58, %v994_v27  ;;  %v5400_v28 = vld [vmem:[#allocation28_spill] sm:$0xff] }
 0x2bd   :  { %1932 = vrot.lane.b32.xlu1 %v1796_v19, %s3122_s23  ;;  %1934 = vrot.lane.b32.xlu2 %v1797_v1, %s3122_s23  ;;  %v1556_v40 = vpop.f32.mrf.mxu0  ;;  %v1645_v26 = vpop.f32.mrf.mxu1  ;;  %v5401_v25 = vld [vmem:[#allocation56_spill] sm:$0xff] }
 0x2be   :  { %v1696_v44 = vadd.f32 %v1556_v40, %v1344_v9  ;;  %v1697_v10 = vadd.f32 %v1645_v26, %v1345_v39  ;;  %v1879_v43 = vpop.permute.xlu0 %1878  ;;  %v1347_v48 = vadd.f32 %v1296_v36, %v995_v17  ;;  %v1883_v39 = vpop.permute.xlu2 %1882  ;;  %v997_v17 = vadd.f32 %v5401_v25, %v5400_v28 }
 0x2bf   :  { %v1955_v23 = vsel %vm1948_vm2, %v1877_v42, %v1879_v43  ;;  %v1348_v43 = vadd.f32 %v1210_v34, %v996_v14  ;;  %v2034_v34 = vld [vmem:[%s5279_s3 + $0x8] sm:$0xff] }
 0x2c0   :  { %v4758_v7 = vadd.f32 %v4329_v20, %v1696_v44  ;;  %v1751_v13 = vadd.f32 %v4386_v57, %v1697_v10  ;;  %v2003_v58 = vmax.f32 %v1768_v35, %v1955_v23  ;;  %v1299_v27 = vpop.f32.mrf.mxu3  ;;  %2135 = vmatpush.msra.mxu3 %v2034_v34 }
 0x2c2   :  { %v1798_v63 = vmax.f32 %v4758_v7, 0.0  ;;  %v1799_v47 = vmax.f32 %v1751_v13, 0.0 }
 0x2c4   :  { %1936 = vrot.lane.b32.xlu0 %v1798_v63, %s3122_s23 }
 0x2c5   :  { %1938 = vrot.lane.b32.xlu1 %v1799_v47, %s3122_s23  ;;  %v1559_v1 = vpop.f32.mrf.mxu0  ;;  %v1648_v9 = vpop.f32.mrf.mxu1 }
 0x2c6   :  { %v1698_v40 = vadd.f32 %v1559_v1, %v1346_v11  ;;  %v1699_v26 = vadd.f32 %v1648_v9, %v1347_v48  ;;  %v1881_v44 = vpop.permute.xlu1 %1880  ;;  %v1349_v11 = vadd.f32 %v1299_v27, %v997_v17  ;;  %v3050_v27 = vld [vmem:[%s5279_s3 + $0xb8] sm:$0xff] }
 0x2c7   :  { %v1956_v10 = vsel %vm1948_vm2, %v1881_v44, %v1883_v39 }
 0x2c8   :  { %v4781_v36 = vadd.f32 %v4329_v20, %v1698_v40  ;;  %v1753_v13 = vadd.f32 %v4386_v57, %v1699_v26  ;;  %v2004_v42 = vmax.f32 %v1770_v50, %v1956_v10  ;;  %v3051_v26 = vld [vmem:[%s5279_s3 + $0xc0] sm:$0xff] }
 0x2c9   :  { %2184 = vmatpush.msrb.mxu2 %v3051_v26 }
 0x2ca   :  { %v1800_v47 = vmax.f32 %v4781_v36, 0.0  ;;  %v1801_v3 = vmax.f32 %v1753_v13, 0.0  ;;  %v4791_v35 = vmax.f32 %v2003_v58, %v2004_v42  ;;  %v1889_v13 = vpop.permute.xlu2 %1888 }
 0x2cb   :  { %2185 = vmatpush.msrb.mxu2 %v3050_v27  ;;  %v3069_v27 = vld [vmem:[%s5279_s3 + $0x110] sm:$0xff] }
 0x2cc   :  { %1942 = vrot.lane.b32.xlu0 %v1801_v3, %s3122_s23  ;;  %1940 = vrot.lane.b32.xlu2 %v1800_v47, %s3122_s23 }
 0x2cd   :  { %3031 = vmatmul.msk.f32.gmra.mxu2 %vm2052_vm3, %v4791_v35  ;;  %v1562_v50 = vpop.f32.mrf.mxu0  ;;  %v1651_v48 = vpop.f32.mrf.mxu1 }
 0x2ce   :  { %v1700_v23 = vadd.f32 %v1562_v50, %v1348_v43  ;;  %v1701_v1 = vadd.f32 %v1651_v48, %v1349_v11  ;;  %v1885_v9 = vpop.permute.xlu0 %1884  ;;  %v1887_v58 = vpop.permute.xlu1 %1886  ;;  %v2033_v48 = vld [vmem:[%s5279_s3] sm:$0xff] }
 0x2cf   :  { %2136 = vmatpush.msra.mxu3 %v2033_v48  ;;  %v5402_v48 = vmax.f32 %v4339_v22, 0.0  ;;  %v3065_v22 = vld [vmem:[%s5279_s3 + $0xf0] sm:$0xff] }
 0x2d0   :  { %v4803_v39 = vadd.f32 %v4329_v20, %v1700_v23  ;;  %v1755_v40 = vadd.f32 %v4386_v57, %v1701_v1  ;;  %v1957_v20 = vsel %vm1948_vm2, %v1885_v9, %v1887_v58 }
 0x2d1   :  { %v2005_v18 = vmax.f32 %v1772_v55, %v1957_v20  ;;  %v3049_v55 = vld [vmem:[%s5279_s3 + $0xb0] sm:$0xff] }
 0x2d2   :  { %v1802_v44 = vmax.f32 %v4803_v39, 0.0  ;;  %v1803_v10 = vmax.f32 %v1755_v40, 0.0  ;;  %2186 = vmatpush.msrb.mxu2 %v3049_v55  ;;  %v1895_v31 = vpop.permute.xlu2 %1894 }
 0x2d4   :  { %1944 = vrot.lane.b32.xlu1 %v1802_v44, %s3122_s23  ;;  %1946 = vrot.lane.b32.xlu2 %v1803_v10, %s3122_s23  ;;  %v3046_v10 = vld [vmem:[%s5279_s3 + $0x98] sm:$0xff] }
 0x2d5   :  { %2187 = vmatpush.msrb.mxu2 %v3048_v32  ;;  %v3084_v32 = vld [vmem:[%s5279_s3 + $0x148] sm:$0xff] }
 0x2d6   :  { %v1891_v42 = vpop.permute.xlu0 %1890 }
 0x2d7   :  { %v1958_v57 = vsel %vm1948_vm2, %v1889_v13, %v1891_v42  ;;  %2188 = vmatpush.msrb.mxu2 %v3047_v46 }
 0x2d8   :  { %v2006_v53 = vmax.f32 %v1774_v41, %v1958_v57 }
 0x2d9   :  { %2189 = vmatpush.msrb.mxu2 %v3046_v10 }
 0x2da   :  { %v4820_v14 = vmax.f32 %v2005_v18, %v2006_v53  ;;  %v1901_v50 = vpop.permute.xlu2 %1900 }
 0x2db   :  { %2190 = vmatpush.msrb.mxu2 %v3045_v30 }
 0x2dc   :  { %3032 = vmatmul.msk.f32.gmra.mxu2 %vm2052_vm3, %v4820_v14 }
 0x2dd   :  { %2306 = vmatpush.msra.mxu2 %v3087_v2 }
 0x2de   :  { %v1893_v24 = vpop.permute.xlu1 %1892 }
 0x2df   :  { %v1959_v41 = vsel %vm1948_vm2, %v1893_v24, %v1895_v31  ;;  %v3086_v24 = vld [vmem:[%s5279_s3 + $0x158] sm:$0xff] }
 0x2e0   :  { %v2007_v3 = vmax.f32 %v1776_v62, %v1959_v41  ;;  %2307 = vmatpush.msra.mxu2 %v3086_v24 }
 0x2e6   :  { %v1899_v28 = vpop.permute.xlu1 %1898  ;;  %v1897_v25 = vpop.permute.xlu0 %1896 }
 0x2e7   :  { %v1960_v17 = vsel %vm1948_vm2, %v1897_v25, %v1899_v28 }
 0x2e8   :  { %v2008_v43 = vmax.f32 %v1778_v6, %v1960_v17  ;;  %v1907_v6 = vpop.permute.xlu2 %1906 }
 0x2ea   :  { %v4839_v11 = vmax.f32 %v2007_v3, %v2008_v43  ;;  %v3067_v43 = vld [vmem:[%s5279_s3 + $0x100] sm:$0xff] }
 0x2ec   :  { %3033 = vmatmul.msk.f32.gmra.mxu2 %vm2052_vm3, %v4839_v11 }
 0x2ee   :  { %v1903_v62 = vpop.permute.xlu0 %1902 }
 0x2ef   :  { %v1961_v38 = vsel %vm1948_vm2, %v1901_v50, %v1903_v62 }
 0x2f0   :  { %v2009_v9 = vmax.f32 %v1780_v52, %v1961_v38  ;;  %v3070_v52 = vld [vmem:[%s5279_s3 + $0x118] sm:$0xff]  ;;  %v1913_v13 = vpop.permute.xlu2 %1912 }
 0x2f1   :  { %2244 = vmatpush.msrb.mxu3 %v3070_v52  ;;  %v3066_v38 = vld [vmem:[%s5279_s3 + $0xf8] sm:$0xff] }
 0x2f3   :  { %2245 = vmatpush.msrb.mxu3 %v3069_v27 }
 0x2f6   :  { %v1905_v23 = vpop.permute.xlu1 %1904 }
 0x2f7   :  { %v1962_v1 = vsel %vm1948_vm2, %v1905_v23, %v1907_v6  ;;  %v3083_v6 = vld [vmem:[%s5279_s3 + $0x140] sm:$0xff] }
 0x2f8   :  { %v2010_v40 = vmax.f32 %v1782_v33, %v1962_v1  ;;  %v1919_v37 = vpop.permute.xlu2 %1918  ;;  %v3080_v1 = vld [vmem:[%s5279_s3 + $0x128] sm:$0xff] }
 0x2fa   :  { %v4858_v26 = vmax.f32 %v2009_v9, %v2010_v40  ;;  %v3079_v9 = vld [vmem:[%s5279_s3 + $0x120] sm:$0xff] }
 0x2fc   :  { %3034 = vmatmul.msk.f32.gmra.mxu2 %vm2052_vm3, %v4858_v26 }
 0x2fe   :  { %v1909_v58 = vpop.permute.xlu0 %1908  ;;  %v1911_v20 = vpop.permute.xlu1 %1910 }
 0x2ff   :  { %v1963_v33 = vsel %vm1948_vm2, %v1909_v58, %v1911_v20 }
 0x300   :  { %v2011_v18 = vmax.f32 %v1784_v54, %v1963_v33  ;;  %v3068_v54 = vld [vmem:[%s5279_s3 + $0x108] sm:$0xff]  ;;  %v1859_v50 = vpop.permute.xlu2 %1858 }
 0x301   :  { %2246 = vmatpush.msrb.mxu3 %v3068_v54 }
 0x303   :  { %2247 = vmatpush.msrb.mxu3 %v3067_v43 }
 0x305   :  { %2248 = vmatpush.msrb.mxu3 %v3066_v38 }
 0x306   :  { %v1915_v42 = vpop.permute.xlu0 %1914 }
 0x307   :  { %v1964_v57 = vsel %vm1948_vm2, %v1913_v13, %v1915_v42  ;;  %2249 = vmatpush.msrb.mxu3 %v3065_v22 }
 0x308   :  { %v2012_v53 = vmax.f32 %v1786_v15, %v1964_v57  ;;  %v3085_v15 = vld [vmem:[%s5279_s3 + $0x150] sm:$0xff] }
 0x309   :  { %2308 = vmatpush.msra.mxu2 %v3085_v15  ;;  %2250 = vmatpush.msrb.mxu3 %v3064_v8 }
 0x30a   :  { %v4880_v34 = vmax.f32 %v2011_v18, %v2012_v53 }
 0x30b   :  { %2309 = vmatpush.msra.mxu2 %v3084_v32 }
 0x30c   :  { %3035 = vmatmul.msk.f32.gmra.mxu2 %vm2052_vm3, %v4880_v34 }
 0x30d   :  { %2310 = vmatpush.msra.mxu2 %v3083_v6 }
 0x30e   :  { %v1917_v16 = vpop.permute.xlu1 %1916 }
 0x30f   :  { %v1965_v55 = vsel %vm1948_vm2, %v1917_v16, %v1919_v37  ;;  %v1929_v58 = vpop.permute.xlu2 %1928 }
 0x310   :  { %v2013_v25 = vmax.f32 %v1788_v12, %v1965_v55 }
 0x316   :  { %v1923_v31 = vpop.permute.xlu1 %1922  ;;  %v1921_v41 = vpop.permute.xlu0 %1920 }
 0x317   :  { %v1966_v28 = vsel %vm1948_vm2, %v1921_v41, %v1923_v31 }
 0x318   :  { %v2014_v17 = vmax.f32 %v1790_v61, %v1966_v28 }
 0x31a   :  { %v4902_v3 = vmax.f32 %v2013_v25, %v2014_v17 }
 0x31c   :  { %3036 = vmatmul.msk.f32.gmra.mxu2 %vm2052_vm3, %v4902_v3 }
 0x31e   :  { %v1855_v59 = vpop.permute.xlu0 %1854  ;;  %v1857_v12 = vpop.permute.xlu1 %1856 }
 0x31f   :  { %v1949_v21 = vsel %vm1948_vm2, %v4668_v51, %v1855_v59  ;;  %v1950_v61 = vsel %vm1948_vm2, %v1857_v12, %v1859_v50  ;;  %v3082_v51 = vld [vmem:[%s5279_s3 + $0x138] sm:$0xff] }
 0x320   :  { %v1997_v46 = vmax.f32 %v5402_v48, %v1949_v21  ;;  %v1998_v62 = vmax.f32 %v1758_v45, %v1950_v61  ;;  %2311 = vmatpush.msra.mxu2 %v3082_v51  ;;  %v3081_v45 = vld [vmem:[%s5279_s3 + $0x130] sm:$0xff] }
 0x322   :  { %v2021_v23 = vmax.f32 %v1997_v46, %v1998_v62  ;;  %2312 = vmatpush.msra.mxu2 %v3081_v45 }
 0x324   :  { %3037 = vmatmul.msk.f32.vlgmr.msra.gmra.mxu3 %vm2052_vm3, %v2021_v23  ;;  %3054 = vmatmul.msk.f32.vlgmr.msrb.gmra.mxu2 %vm2052_vm3, %v4748_v5 }
 0x325   :  { %2313 = vmatpush.msra.mxu2 %v3080_v1 }
 0x326   :  { %v1925_v40 = vpop.permute.xlu0 %1924 }
 0x327   :  { %2314 = vmatpush.msra.mxu2 %v3079_v9  ;;  %v1927_v20 = vpop.permute.xlu1 %1926 }
 0x328   :  { %v1967_v52 = vsel %vm1948_vm2, %v1925_v40, %v1927_v20  ;;  %v3118_v20 = vld [vmem:[%s5281_s4] ss:$0 sm:$0xff]  ;;  %s3123_s4 = smov 64  }
 0x329   :  { %v2015_v33 = vmax.f32 %v1792_v29, %v1967_v52 }
 0x32c   :  { %3038 = vmatmul.msk.f32.gmra.mxu3 %vm2052_vm3, %v4718_v49  ;;  %3055 = vmatmul.msk.f32.gmra.mxu2 %vm2052_vm3, %v4791_v35  ;;  %v3063_v49 = vld [vmem:[%s5279_s3 + $0xe0] sm:$0xff] }
 0x32d   :  { %2251 = vmatpush.msrb.mxu3 %v3063_v49 }
 0x32e   :  { %v1931_v10 = vpop.permute.xlu0 %1930 }
 0x32f   :  { %v1968_v30 = vsel %vm1948_vm2, %v1929_v58, %v1931_v10  ;;  %v1933_v29 = vpop.permute.xlu1 %1932 }
 0x330   :  { %v2016_v2 = vmax.f32 %v1794_v0, %v1968_v30  ;;  %v1935_v0 = vpop.permute.xlu2 %1934 }
 0x332   :  { %v2030_v13 = vmax.f32 %v2015_v33, %v2016_v2 }
 0x334   :  { %3039 = vmatmul.msk.f32.gmra.mxu3 %vm2052_vm3, %v4748_v5  ;;  %3056 = vmatmul.msk.f32.gmra.mxu2 %vm2052_vm3, %v4820_v14  ;;  %v3062_v5 = vld [vmem:[%s5279_s3 + $0xd8] sm:$0xff] }
 0x335   :  { %2252 = vmatpush.msrb.mxu3 %v3062_v5 }
 0x336   :  { %v1937_v57 = vpop.permute.xlu0 %1936 }
 0x337   :  { %v2094_v42 = vpop.f32.mrf.mxu2  ;;  %v1939_v18 = vpop.permute.xlu1 %1938 }
 0x338   :  { %v1970_v53 = vsel %vm1948_vm2, %v1937_v57, %v1939_v18 }
 0x339   :  { %v2018_v27 = vmax.f32 %v1798_v63, %v1970_v53 }
 0x33c   :  { %3040 = vmatmul.msk.f32.gmra.mxu3 %vm2052_vm3, %v4791_v35  ;;  %3057 = vmatmul.msk.f32.gmra.mxu2 %vm2052_vm3, %v4839_v11 }
 0x33e   :  { %v1943_v15 = vpop.permute.xlu0 %1942 }
 0x33f   :  { %v4993_v4 = vpop.f32.mrf.mxu2 }
 0x344   :  { %3041 = vmatmul.msk.f32.gmra.mxu3 %vm2052_vm3, %v4820_v14  ;;  %3058 = vmatmul.msk.f32.gmra.mxu2 %vm2052_vm3, %v4858_v26 }
 0x346   :  { %v1945_v16 = vpop.permute.xlu1 %1944 }
 0x34c   :  { %3042 = vmatmul.msk.f32.gmra.mxu3 %vm2052_vm3, %v4839_v11  ;;  %3059 = vmatmul.msk.f32.gmra.mxu2 %vm2052_vm3, %v4880_v34 }
 0x350   :  { %v2100_v56 = vpop.f32.mrf.mxu2 }
 0x354   :  { %3043 = vmatmul.msk.f32.gmra.mxu3 %vm2052_vm3, %v4858_v26  ;;  %3060 = vmatmul.msk.f32.gmra.mxu2 %vm2052_vm3, %v4902_v3 }
 0x35c   :  { %3044 = vmatmul.msk.f32.gmra.mxu3 %vm2052_vm3, %v4880_v34  ;;  %3061 = vmatmul.msk.f32.gmra.mxu2 %vm2052_vm3, %v2030_v13 }
 0x364   :  { %3071 = vmatmul.msk.f32.vlgmr.msrb.gmra.mxu3 %vm2052_vm3, %v4791_v35  ;;  %3088 = vmatmul.msk.f32.vlgmr.msra.gmra.mxu2 %vm2052_vm3, %v4820_v14  ;;  %v5003_v35 = vpop.f32.mrf.mxu2 }
 0x36c   :  { %3072 = vmatmul.msk.f32.gmra.mxu3 %vm2052_vm3, %v4820_v14  ;;  %3089 = vmatmul.msk.f32.gmra.mxu2 %vm2052_vm3, %v4839_v11  ;;  %v1941_v14 = vpop.permute.xlu2 %1940 }
 0x36d   :  { %v1971_v31 = vsel %vm1948_vm2, %v1941_v14, %v1943_v15 }
 0x36e   :  { %v2019_v60 = vmax.f32 %v1800_v47, %v1971_v31 }
 0x374   :  { %3073 = vmatmul.msk.f32.gmra.mxu3 %vm2052_vm3, %v4839_v11  ;;  %3090 = vmatmul.msk.f32.gmra.mxu2 %vm2052_vm3, %v4858_v26  ;;  %v2106_v11 = vpop.f32.mrf.mxu2  ;;  %v1947_v54 = vpop.permute.xlu2 %1946 }
 0x375   :  { %v1972_v55 = vsel %vm1948_vm2, %v1945_v16, %v1947_v54 }
 0x376   :  { %v2020_v7 = vmax.f32 %v1802_v44, %v1972_v55 }
 0x37c   :  { %3074 = vmatmul.msk.f32.gmra.mxu3 %vm2052_vm3, %v4858_v26  ;;  %3091 = vmatmul.msk.f32.gmra.mxu2 %vm2052_vm3, %v4880_v34  ;;  %v1969_v26 = vsel %vm1948_vm2, %v1933_v29, %v1935_v0 }
 0x37d   :  { %v2017_v24 = vmax.f32 %v1796_v19, %v1969_v26  ;;  %v2032_v19 = vmax.f32 %v2019_v60, %v2020_v7 }
 0x37f   :  { %v2031_v37 = vmax.f32 %v2017_v24, %v2018_v27 }
 0x384   :  { %3075 = vmatmul.msk.f32.gmra.mxu3 %vm2052_vm3, %v4880_v34  ;;  %3092 = vmatmul.msk.f32.gmra.mxu2 %vm2052_vm3, %v4902_v3  ;;  %v2109_v34 = vpop.f32.mrf.mxu2 }
 0x38c   :  { %3076 = vmatmul.msk.f32.gmra.mxu3 %vm2052_vm3, %v4902_v3  ;;  %3093 = vmatmul.msk.f32.gmra.mxu2 %vm2052_vm3, %v2030_v13 }
 0x38f   :  { %v2112_v63 = vpop.f32.mrf.mxu2 }
 0x394   :  { %3077 = vmatmul.msk.f32.gmra.mxu3 %vm2052_vm3, %v2030_v13  ;;  %3094 = vmatmul.msk.f32.gmra.mxu2 %vm2052_vm3, %v2031_v37 }
 0x39c   :  { %3078 = vmatmul.msk.f32.gmra.mxu3 %vm2052_vm3, %v2031_v37  ;;  %3095 = vmatmul.msk.f32.gmra.mxu2 %vm2052_vm3, %v2032_v19 }
 0x39f   :  { %v5028_v41 = vpop.f32.mrf.mxu2 }
 0x3a7   :  { %v2138_v28 = vpop.f32.mrf.mxu3  ;;  %v2192_v25 = vpop.f32.mrf.mxu2 }
 0x3a8   :  { %v2139_v17 = vadd.f32 %v2138_v28, %v2094_v42 }
 0x3aa   :  { %v2216_v3 = vadd.f32 %v2192_v25, %v2139_v17 }
 0x3af   :  { %v2141_v43 = vpop.f32.mrf.mxu3  ;;  %v2195_v32 = vpop.f32.mrf.mxu2 }
 0x3b0   :  { %v2142_v9 = vadd.f32 %v2141_v43, %v4993_v4 }
 0x3b2   :  { %v2217_v10 = vadd.f32 %v2195_v32, %v2142_v9  ;;  %v2437_v9 = vld [vmem:[%s5282_s5 + $0x70] sm:$0xff] }
 0x3b7   :  { %v2144_v50 = vpop.f32.mrf.mxu3  ;;  %v2198_v39 = vpop.f32.mrf.mxu2 }
 0x3b8   :  { %v2145_v44 = vadd.f32 %v2144_v50, %v2100_v56 }
 0x3ba   :  { %v2218_v59 = vadd.f32 %v2198_v39, %v2145_v44 }
 0x3bf   :  { %v2147_v12 = vpop.f32.mrf.mxu3  ;;  %v2201_v36 = vpop.f32.mrf.mxu2 }
 0x3c7   :  { %v2150_v47 = vpop.f32.mrf.mxu3  ;;  %v2204_v21 = vpop.f32.mrf.mxu2 }
 0x3c8   :  { %v2151_v61 = vadd.f32 %v2150_v47, %v2106_v11  ;;  %v2148_v11 = vadd.f32 %v2147_v12, %v5003_v35 }
 0x3ca   :  { %v2220_v48 = vadd.f32 %v2204_v21, %v2151_v61  ;;  %v2219_v18 = vadd.f32 %v2201_v36, %v2148_v11  ;;  %v2429_v11 = vld [vmem:[%s5282_s5 + $0x30] sm:$0xff] }
 0x3cf   :  { %v2153_v46 = vpop.f32.mrf.mxu3  ;;  %v2207_v62 = vpop.f32.mrf.mxu2 }
 0x3d0   :  { %v2154_v38 = vadd.f32 %v2153_v46, %v2109_v34 }
 0x3d2   :  { %v2221_v6 = vadd.f32 %v2207_v62, %v2154_v38 }
 0x3d7   :  { %v2156_v23 = vpop.f32.mrf.mxu3  ;;  %v2210_v22 = vpop.f32.mrf.mxu2 }
 0x3d8   :  { %v2157_v51 = vadd.f32 %v2156_v23, %v2112_v63 }
 0x3da   :  { %v2222_v8 = vadd.f32 %v2210_v22, %v2157_v51 }
 0x3df   :  { %v2159_v45 = vpop.f32.mrf.mxu3  ;;  %v2213_v49 = vpop.f32.mrf.mxu2 }
 0x3e7   :  { %v2254_v1 = vpop.f32.mrf.mxu3  ;;  %v2316_v5 = vpop.f32.mrf.mxu2 }
 0x3e8   :  { %v2278_v40 = vadd.f32 %v2254_v1, %v2216_v3  ;;  %v2160_v3 = vadd.f32 %v2159_v45, %v5028_v41 }
 0x3ea   :  { %v2340_v58 = vadd.f32 %v2316_v5, %v2278_v40  ;;  %v2223_v32 = vadd.f32 %v2213_v49, %v2160_v3  ;;  %v2438_v5 = vld [vmem:[%s5282_s5 + $0x78] sm:$0xff] }
 0x3eb   :  { %2459 = vmatpush.msra.mxu3 %v2438_v5  ;;  %v2515_v40 = vld [vmem:[%s5283_s7 + $0x78] sm:$0xff] }
 0x3ec   :  { %v5034_v33 = vadd.f32 %v3118_v20, %v2340_v58  ;;  %2520 = vmatpush.msrb.mxu0 %v2515_v40  ;;  %v2514_v58 = vld [vmem:[%s5283_s7 + $0x70] sm:$0xff]  ;;  %v2446_v3 = vld [vmem:[%s5282_s5 + $0xb8] sm:$0xff] }
 0x3ed   :  { %2460 = vmatpush.msra.mxu3 %v2437_v9  ;;  %v2503_v5 = vld [vmem:[%s5283_s7 + $0x18] sm:$0xff] }
 0x3ee   :  { %v2360_v56 = vmax.f32 %v5034_v33, 0.0  ;;  %2521 = vmatpush.msrb.mxu0 %v2514_v58  ;;  %v2501_v58 = vld [vmem:[%s5283_s7 + $0x8] sm:$0xff] }
 0x3ef   :  { %v2257_v30 = vpop.f32.mrf.mxu3  ;;  %v2319_v52 = vpop.f32.mrf.mxu2 }
 0x3f0   :  { %v2279_v2 = vadd.f32 %v2257_v30, %v2217_v10  ;;  %v2436_v10 = vld [vmem:[%s5282_s5 + $0x68] sm:$0xff]  ;;  %v2434_v30 = vld [vmem:[%s5282_s5 + $0x58] sm:$0xff] }
 0x3f1   :  { %2461 = vmatpush.msra.mxu3 %v2436_v10  ;;  %v2502_v10 = vld [vmem:[%s5283_s7 + $0x10] sm:$0xff] }
 0x3f2   :  { %v2341_v13 = vadd.f32 %v2319_v52, %v2279_v2  ;;  %v2513_v52 = vld [vmem:[%s5283_s7 + $0x68] sm:$0xff]  ;;  %v2433_v2 = vld [vmem:[%s5282_s5 + $0x50] sm:$0xff] }
 0x3f3   :  { %2522 = vmatpush.msrb.mxu0 %v2513_v52 }
 0x3f4   :  { %v5036_v42 = vadd.f32 %v3118_v20, %v2341_v13  ;;  %v2432_v13 = vld [vmem:[%s5282_s5 + $0x48] sm:$0xff] }
 0x3f6   :  { %v2361_v29 = vmax.f32 %v5036_v42, 0.0 }
 0x3f7   :  { %v2260_v4 = vpop.f32.mrf.mxu3  ;;  %v2322_v0 = vpop.f32.mrf.mxu2 }
 0x3f8   :  { %v3108_v14 = vpack.i.bf16 %v2361_v29, %v2360_v56  ;;  %v2280_v57 = vadd.f32 %v2260_v4, %v2218_v59  ;;  %v2512_v4 = vld [vmem:[%s5283_s7 + $0x60] sm:$0xff] }
 0x3f9   :  { %2523 = vmatpush.msrb.mxu0 %v2512_v4 }
 0x3fa   :  { %3109 = vrot.lane.b32.xlu2 %v3108_v14, %s3123_s4  ;;  %v2342_v53 = vadd.f32 %v2322_v0, %v2280_v57  ;;  %v2431_v0 = vld [vmem:[%s5282_s5 + $0x40] sm:$0xff]  ;;  %v2430_v14 = vld [vmem:[%s5282_s5 + $0x38] sm:$0xff]  ;;  %v2428_v57 = vld [vmem:[%s5282_s5 + $0x28] sm:$0xff] }
 0x3fc   :  { %v2354_v24 = vadd.f32 %v3118_v20, %v2342_v53  ;;  %v2426_v53 = vld [vmem:[%s5282_s5 + $0x18] sm:$0xff] }
 0x3fe   :  { %v2362_v37 = vmax.f32 %v2354_v24, 0.0  ;;  %v2425_v24 = vld [vmem:[%s5282_s5 + $0x10] sm:$0xff] }
 0x3ff   :  { %v2263_v26 = vpop.f32.mrf.mxu3  ;;  %v2325_v27 = vpop.f32.mrf.mxu2 }
 0x400   :  { %v2281_v34 = vadd.f32 %v2263_v26, %v2219_v18  ;;  %v2427_v18 = vld [vmem:[%s5282_s5 + $0x20] sm:$0xff] }
 0x402   :  { %v2343_v16 = vadd.f32 %v2325_v27, %v2281_v34 }
 0x404   :  { %v2355_v54 = vadd.f32 %v3118_v20, %v2343_v16 }
 0x406   :  { %v2363_v15 = vmax.f32 %v2355_v54, 0.0 }
 0x407   :  { %v2266_v55 = vpop.f32.mrf.mxu3  ;;  %v2328_v31 = vpop.f32.mrf.mxu2 }
 0x408   :  { %v2282_v7 = vadd.f32 %v2266_v55, %v2220_v48  ;;  %v3098_v63 = vpack.i.bf16 %v2363_v15, %v2362_v37  ;;  %v2423_v55 = vld [vmem:[%s5282_s5] sm:$0xff] }
 0x40a   :  { %v2344_v60 = vadd.f32 %v2328_v31, %v2282_v7  ;;  %3099 = vrot.lane.b32.xlu0 %v3098_v63, %s3123_s4  ;;  %v2454_v31 = vld [vmem:[%s5282_s5 + $0xf8] sm:$0xff]  ;;  %v2453_v7 = vld [vmem:[%s5282_s5 + $0xf0] sm:$0xff]  ;;  %v2452_v63 = vld [vmem:[%s5282_s5 + $0xe8] sm:$0xff] }
 0x40c   :  { %v5047_v35 = vadd.f32 %v3118_v20, %v2344_v60  ;;  %v2451_v60 = vld [vmem:[%s5282_s5 + $0xe0] sm:$0xff] }
 0x40e   :  { %v2364_v45 = vmax.f32 %v5047_v35, 0.0  ;;  %v2550_v35 = vld [vmem:[%s5285_s9 + $0x48] sm:$0xff] }
 0x40f   :  { %v2269_v19 = vpop.f32.mrf.mxu3  ;;  %v2331_v28 = vpop.f32.mrf.mxu2 }
 0x410   :  { %v2283_v47 = vadd.f32 %v2269_v19, %v2221_v6  ;;  %v2450_v19 = vld [vmem:[%s5282_s5 + $0xd8] sm:$0xff] }
 0x412   :  { %v2345_v46 = vadd.f32 %v2331_v28, %v2283_v47  ;;  %v2449_v28 = vld [vmem:[%s5282_s5 + $0xd0] sm:$0xff] }
 0x413   :  { %v2510_v47 = vld [vmem:[%s5283_s7 + $0x50] sm:$0xff] }
 0x414   :  { %v5054_v38 = vadd.f32 %v3118_v20, %v2345_v46  ;;  %v2555_v46 = vld [vmem:[%s5285_s9 + $0x70] sm:$0xff] }
 0x416   :  { %v2365_v41 = vmax.f32 %v5054_v38, 0.0  ;;  %v2549_v38 = vld [vmem:[%s5285_s9 + $0x40] sm:$0xff] }
 0x417   :  { %v2272_v25 = vpop.f32.mrf.mxu3  ;;  %v2334_v17 = vpop.f32.mrf.mxu2 }
 0x418   :  { %v2284_v43 = vadd.f32 %v2272_v25, %v2222_v8  ;;  %v2448_v25 = vld [vmem:[%s5282_s5 + $0xc8] sm:$0xff] }
 0x41a   :  { %v2346_v50 = vadd.f32 %v2334_v17, %v2284_v43  ;;  %v2447_v17 = vld [vmem:[%s5282_s5 + $0xc0] sm:$0xff]  ;;  %v2445_v43 = vld [vmem:[%s5282_s5 + $0xb0] sm:$0xff] }
 0x41c   :  { %v5050_v12 = vadd.f32 %v3118_v20, %v2346_v50  ;;  %v2443_v50 = vld [vmem:[%s5282_s5 + $0xa0] sm:$0xff] }
 0x41e   :  { %v2366_v61 = vmax.f32 %v5050_v12, 0.0  ;;  %v2440_v12 = vld [vmem:[%s5282_s5 + $0x88] sm:$0xff] }
 0x41f   :  { %v2275_v39 = vpop.f32.mrf.mxu3  ;;  %v2337_v59 = vpop.f32.mrf.mxu2 }
 0x420   :  { %v2285_v44 = vadd.f32 %v2275_v39, %v2223_v32  ;;  %v2444_v32 = vld [vmem:[%s5282_s5 + $0xa8] sm:$0xff]  ;;  %v2511_v39 = vld [vmem:[%s5283_s7 + $0x58] sm:$0xff] }
 0x421   :  { %2524 = vmatpush.msrb.mxu0 %v2511_v39 }
 0x422   :  { %v2347_v36 = vadd.f32 %v2337_v59, %v2285_v44  ;;  %v2442_v44 = vld [vmem:[%s5282_s5 + $0x98] sm:$0xff]  ;;  %v2441_v59 = vld [vmem:[%s5282_s5 + $0x90] sm:$0xff] }
 0x423   :  { %2525 = vmatpush.msrb.mxu0 %v2510_v47 }
 0x424   :  { %v2359_v21 = vadd.f32 %v3118_v20, %v2347_v36  ;;  %v2435_v20 = vld [vmem:[%s5282_s5 + $0x60] sm:$0xff] }
 0x425   :  { %2462 = vmatpush.msra.mxu3 %v2435_v20  ;;  %v2439_v36 = vld [vmem:[%s5282_s5 + $0x80] sm:$0xff] }
 0x426   :  { %v2367_v48 = vmax.f32 %v2359_v21, 0.0  ;;  %v2509_v21 = vld [vmem:[%s5283_s7 + $0x48] sm:$0xff] }
 0x427   :  { %2463 = vmatpush.msra.mxu3 %v2434_v30  ;;  %2526 = vmatpush.msrb.mxu0 %v2509_v21 }
 0x428   :  { %v3103_v62 = vpack.i.bf16 %v2367_v48, %v2366_v61 }
 0x429   :  { %2464 = vmatpush.msra.mxu3 %v2433_v2 }
 0x42a   :  { %3104 = vrot.lane.b32.xlu1 %v3103_v62, %s3123_s4  ;;  %v2507_v62 = vld [vmem:[%s5283_s7 + $0x38] sm:$0xff] }
 0x42b   :  { %2465 = vmatpush.msra.mxu3 %v2432_v13 }
 0x42d   :  { %2466 = vmatpush.msra.mxu3 %v2431_v0 }
 0x42f   :  { %2467 = vmatpush.msra.mxu3 %v2430_v14 }
 0x431   :  { %2468 = vmatpush.msra.mxu3 %v2429_v11 }
 0x432   :  { %2386 = vrot.lane.b32.xlu1 %v2365_v41, %s3123_s4 }
 0x433   :  { %2469 = vmatpush.msra.mxu3 %v2428_v57 }
 0x435   :  { %2470 = vmatpush.msra.mxu3 %v2427_v18  ;;  %v2551_v18 = vld [vmem:[%s5285_s9 + $0x50] sm:$0xff] }
 0x437   :  { %2471 = vmatpush.msra.mxu3 %v2426_v53  ;;  %v2546_v53 = vld [vmem:[%s5285_s9 + $0x28] sm:$0xff] }
 0x439   :  { %2472 = vmatpush.msra.mxu3 %v2425_v24  ;;  %v2542_v24 = vld [vmem:[%s5285_s9 + $0x8] sm:$0xff] }
 0x47c   :  { %v3100_v23 = vpop.permute.xlu0 %3099 }
 0x47d   :  { %v3102_v22 = vunpack.i.h.bf16 %v3100_v23  ;;  %v3101_v51 = vunpack.i.l.bf16 %v3100_v23  ;;  %v2554_v23 = vld [vmem:[%s5285_s9 + $0x68] sm:$0xff] }
 0x47f   :  { %v2403_v6 = vmax.f32 %v2363_v15, %v3102_v22  ;;  %v2402_v8 = vmax.f32 %v2362_v37, %v3101_v51  ;;  %v2424_v37 = vld [vmem:[%s5282_s5 + $0x8] sm:$0xff]  ;;  %v2506_v22 = vld [vmem:[%s5283_s7 + $0x30] sm:$0xff]  ;;  %v2553_v51 = vld [vmem:[%s5285_s9 + $0x60] sm:$0xff] }
 0x480   :  { %2473 = vmatpush.msra.mxu3 %v2424_v37  ;;  %v3119_v37 = vld [vmem:[%s5284_s6] ss:$0 sm:$0xff] }
 0x481   :  { %v2409_v49 = vmax.f32 %v2402_v8, %v2403_v6  ;;  %v2505_v6 = vld [vmem:[%s5283_s7 + $0x28] sm:$0xff]  ;;  %v2552_v8 = vld [vmem:[%s5285_s9 + $0x58] sm:$0xff] }
 0x482   :  { %2474 = vmatpush.msra.mxu3 %v2423_v55 }
 0x483   :  { %v3113_v1 = vpack.i.bf16 %v2364_v45, %v2409_v49  ;;  %v3110_v49 = vpop.permute.xlu2 %3109 }
 0x484   :  { %2479 = vmatpush.msrb.mxu3 %v2454_v31  ;;  %v3112_v9 = vunpack.i.h.bf16 %v3110_v49  ;;  %v3111_v40 = vunpack.i.l.bf16 %v3110_v49 }
 0x485   :  { %3114 = vrot.lane.b32.xlu0 %v3113_v1, %s3123_s4  ;;  %v2504_v1 = vld [vmem:[%s5283_s7 + $0x20] sm:$0xff] }
 0x486   :  { %2480 = vmatpush.msrb.mxu3 %v2453_v7  ;;  %v2401_v20 = vmax.f32 %v2361_v29, %v3112_v9  ;;  %v2400_v30 = vmax.f32 %v2360_v56, %v3111_v40  ;;  %v2500_v56 = vld [vmem:[%s5283_s7] sm:$0xff] }
 0x488   :  { %2481 = vmatpush.msrb.mxu3 %v2452_v63  ;;  %v2408_v2 = vmax.f32 %v2400_v30, %v2401_v20  ;;  %v3120_v63 = vld [vmem:[%s5286_s8] ss:$0 sm:$0xff] }
 0x48a   :  { %2482 = vmatpush.msrb.mxu3 %v2451_v60 }
 0x48c   :  { %2483 = vmatpush.msrb.mxu3 %v2450_v19 }
 0x48e   :  { %2484 = vmatpush.msrb.mxu3 %v2449_v28 }
 0x490   :  { %2485 = vmatpush.msrb.mxu3 %v2448_v25  ;;  %v3121_v25 = vld [vmem:[%s5287_s10] ss:$0 sm:$0xff] }
 0x492   :  { %2486 = vmatpush.msrb.mxu3 %v2447_v17 }
 0x494   :  { %2487 = vmatpush.msrb.mxu3 %v2446_v3 }
 0x496   :  { %2488 = vmatpush.msrb.mxu3 %v2445_v43 }
 0x498   :  { %2489 = vmatpush.msrb.mxu3 %v2444_v32 }
 0x49a   :  { %2490 = vmatpush.msrb.mxu3 %v2443_v50 }
 0x49c   :  { %v3105_v26 = vpop.permute.xlu1 %3104  ;;  %2491 = vmatpush.msrb.mxu3 %v2442_v44 }
 0x49d   :  { %v3107_v27 = vunpack.i.h.bf16 %v3105_v26  ;;  %v3106_v34 = vunpack.i.l.bf16 %v3105_v26  ;;  %v2545_v26 = vld [vmem:[%s5285_s9 + $0x20] sm:$0xff] }
 0x49e   :  { %2492 = vmatpush.msrb.mxu3 %v2441_v59 }
 0x49f   :  { %v2407_v16 = vmax.f32 %v2367_v48, %v3107_v27  ;;  %v2406_v54 = vmax.f32 %v2366_v61, %v3106_v34  ;;  %v2508_v61 = vld [vmem:[%s5283_s7 + $0x40] sm:$0xff]  ;;  %v2556_v48 = vld [vmem:[%s5285_s9 + $0x78] sm:$0xff]  ;;  %v2543_v34 = vld [vmem:[%s5285_s9 + $0x10] sm:$0xff] }
 0x4a0   :  { %2493 = vmatpush.msrb.mxu3 %v2440_v12  ;;  %2561 = vmatpush.msrb.mxu1 %v2556_v48  ;;  %v2544_v27 = vld [vmem:[%s5285_s9 + $0x18] sm:$0xff] }
 0x4a1   :  { %v2411_v15 = vmax.f32 %v2406_v54, %v2407_v16  ;;  %2527 = vmatpush.msrb.mxu0 %v2508_v61  ;;  %v2541_v16 = vld [vmem:[%s5285_s9] sm:$0xff] }
 0x4a2   :  { %2494 = vmatpush.msrb.mxu3 %v2439_v36  ;;  %2562 = vmatpush.msrb.mxu1 %v2555_v46 }
 0x4a3   :  { %2417 = vrot.lane.b32.xlu2 %v2411_v15, %s3123_s4  ;;  %2528 = vmatpush.msrb.mxu0 %v2507_v62 }
 0x4a4   :  { %2563 = vmatpush.msrb.mxu1 %v2554_v23  ;;  %v2387_v0 = vpop.permute.xlu1 %2386 }
 0x4a5   :  { %2529 = vmatpush.msrb.mxu0 %v2506_v22  ;;  %v2405_v42 = vmax.f32 %v2365_v41, %v2387_v0  ;;  %v2548_v41 = vld [vmem:[%s5285_s9 + $0x38] sm:$0xff] }
 0x4a6   :  { %2564 = vmatpush.msrb.mxu1 %v2553_v51 }
 0x4a7   :  { %2530 = vmatpush.msrb.mxu0 %v2505_v6 }
 0x4a8   :  { %2565 = vmatpush.msrb.mxu1 %v2552_v8 }
 0x4a9   :  { %2531 = vmatpush.msrb.mxu0 %v2504_v1 }
 0x4aa   :  { %2566 = vmatpush.msrb.mxu1 %v2551_v18 }
 0x4ab   :  { %2532 = vmatpush.msrb.mxu0 %v2503_v5 }
 0x4ac   :  { %2567 = vmatpush.msrb.mxu1 %v2550_v35 }
 0x4ad   :  { %2533 = vmatpush.msrb.mxu0 %v2502_v10 }
 0x4ae   :  { %2568 = vmatpush.msrb.mxu1 %v2549_v38 }
 0x4af   :  { %2534 = vmatpush.msrb.mxu0 %v2501_v58 }
 0x4b0   :  { %2569 = vmatpush.msrb.mxu1 %v2548_v41 }
 0x4b1   :  { %2535 = vmatpush.msrb.mxu0 %v2500_v56 }
 0x4f7   :  { %v3115_v52 = vpop.permute.xlu0 %3114 }
 0x4f8   :  { %v3117_v13 = vunpack.i.h.bf16 %v3115_v52  ;;  %v3116_v4 = vunpack.i.l.bf16 %v3115_v52 }
 0x4fa   :  { %v2404_v14 = vmax.f32 %v2364_v45, %v3117_v13  ;;  %v2421_v11 = vsel %vm2420_vm4, %v2408_v2, %v3116_v4  ;;  %v2547_v45 = vld [vmem:[%s5285_s9 + $0x30] sm:$0xff] }
 0x4fb   :  { %2475 = vmatmul.f32.vlgmr.msra.gmra.mxu3 %v2421_v11  ;;  %2570 = vmatpush.msrb.mxu1 %v2547_v45 }
 0x4fc   :  { %v2410_v29 = vmax.f32 %v2404_v14, %v2405_v42 }
 0x4fd   :  { %v2418_v57 = vpop.permute.xlu2 %2417  ;;  %2571 = vmatpush.msrb.mxu1 %v2546_v53 }
 0x4fe   :  { %v2422_v33 = vsel %vm2420_vm4, %v2410_v29, %v2418_v57 }
 0x4ff   :  { %2572 = vmatpush.msrb.mxu1 %v2545_v26 }
 0x501   :  { %2573 = vmatpush.msrb.mxu1 %v2544_v27 }
 0x503   :  { %2495 = vmatmul.f32.vlgmr.msrb.gmra.mxu3 %v2422_v33  ;;  %2574 = vmatpush.msrb.mxu1 %v2543_v34 }
 0x505   :  { %2575 = vmatpush.msrb.mxu1 %v2542_v24 }
 0x507   :  { %2576 = vmatpush.msrb.mxu1 %v2541_v16 }
 0x57e   :  { %v2476_v54 = vpop.f32.mrf.mxu3 }
 0x57f   :  { %v2477_v15 = vadd.f32 %v3119_v37, %v2476_v54 }
 0x586   :  { %v2496_v55 = vpop.f32.mrf.mxu3 }
 0x587   :  { %v2497_v31 = vadd.f32 %v2496_v55, %v2477_v15 }
 0x589   :  { %v2499_v7 = vmax.f32 %v2497_v31, 0.0 }
 0x58b   :  { %2536 = vmatmul.f32.vlgmr.msrb.gmra.mxu0 %v2499_v7 }
 0x608   :  { %v2537_v60 = vpop.f32.mrf.mxu0 }
 0x609   :  { %v2538_v19 = vadd.f32 %v3120_v63, %v2537_v60 }
 0x60b   :  { %v2540_v28 = vmax.f32 %v2538_v19, 0.0 }
 0x60d   :  { %2577 = vmatmul.f32.vlgmr.msrb.gmra.mxu1 %v2540_v28 }
 0x68a   :  { %v2578_v17 = vpop.f32.mrf.mxu1 }
 0x68b   :  { %v2579_v3 = vadd.f32 %v3121_v25, %v2578_v17 }
 0x68d   :  { %2581 = vst [vmem:[%s5288_s11] sm:$0xff] %v2579_v3 }

</bundles_post_ra>
